<compile_context>
chip_gen: v6e
topology: v6e:2x2x1
jax: 0.10.0
libtpu: 0.0.40
codegen_flags: <defaults>
</compile_context>

<pallas_src>
import functools

import jax
import jax.numpy as jnp
from jax.experimental import pallas as pl
from jax.experimental.pallas import tpu as pltpu


def _round_up(v, m):
    return (v + m - 1) // m * m


def _default_vmem_limit_bytes():
    # v5e/v6e: 128 MiB physical -> 96 MiB scoped; v7x: 64 MiB -> 48 MiB.
    try:
        cap = pltpu.get_tpu_info().vmem_capacity_bytes
    except Exception:
        cap = 64 * 1024 * 1024  # conservative fallback (v7x per-core)
    return int(min(96 * 1024 * 1024, cap * 3 // 4))


_VMEM_LIMIT = _default_vmem_limit_bytes()


# ----------------------------------------------------------------------------
# Pallas kernel: serial recurrence (both layers) + fc head.
# ----------------------------------------------------------------------------
def _news_lstm_kernel(gx0_ref,     # (Tc, Bblk, 4*Hp) gx_dtype  precomputed x-gates (layer 0)
                      whh0_ref,    # (Hp, 4*Hp)       mm_dtype
                      wih1_ref,    # (Hp, 4*Hp)       mm_dtype
                      whh1_ref,    # (Hp, 4*Hp)       mm_dtype
                      b1_ref,      # (1, 4*Hp)        f32
                      fcw_ref,     # (1, Hp)          f32
                      fcb_ref,     # (1, 1)           f32
                      out_ref,     # (Bblk, 1)        f32
                      h0_s, c0_s, h1_s, c1_s,         # (Bblk, Hp) f32 scratch
                      *, hidden, seq_len, time_chunk, mm_dtype):
    Hp = hidden
    t_chunk = pl.program_id(1)          # time must be the innermost grid axis
    nt = pl.num_programs(1)
    b_blk = h0_s.shape[0]
    f32 = jnp.float32

    @pl.when(t_chunk == 0)
    def _init():
        h0_s[...] = jnp.zeros_like(h0_s)
        c0_s[...] = jnp.zeros_like(c0_s)
        h1_s[...] = jnp.zeros_like(h1_s)
        c1_s[...] = jnp.zeros_like(c1_s)
        out_ref[...] = jnp.zeros_like(out_ref)

    # Hoisted out of the time loop: weight loads (JAX does not CSE these).
    whh0 = whh0_ref[...]
    wih1 = wih1_ref[...]
    whh1 = whh1_ref[...]
    if b_blk <= 16:
        # Small block: hoisting the full bias broadcast costs few vregs.
        b1 = jnp.broadcast_to(b1_ref[...], (b_blk, 4 * Hp))
    else:
        # Large block: keep (1, 4Hp) live and sublane-broadcast at use-site so
        # the unrolled loop does not pin b_blk/8 * 4Hp/128 vregs.
        b1 = b1_ref[...]

    def sig(x):
        # sigmoid(x) == 0.5 * tanh(0.5*x) + 0.5  -> single EUP push.
        return 0.5 * jnp.tanh(0.5 * x) + 0.5

    ragged = (seq_len % time_chunk) != 0

    def step(s, carry):
        h0, c0, h1, c1 = carry

        # ---- layer 0: only the recurrent matmul stays on the serial path ---
        g0 = gx0_ref[s].astype(f32) + jnp.dot(
            h0.astype(mm_dtype), whh0, preferred_element_type=f32)
        i0 = sig(g0[:, 0 * Hp:1 * Hp])
        f0 = sig(g0[:, 1 * Hp:2 * Hp])
        gg0 = jnp.tanh(g0[:, 2 * Hp:3 * Hp])
        o0 = sig(g0[:, 3 * Hp:4 * Hp])
        c0n = f0 * c0 + i0 * gg0
        h0n = o0 * jnp.tanh(c0n)

        # TODO(synk): inter-layer dropout (p=0.2) is active only in training
        # mode; eval-mode forward (reproduced here) is identity.

        # ---- layer 1: two K=Hp matmuls, no per-step concatenate/copy --------
        g1 = (jnp.dot(h0n.astype(mm_dtype), wih1, preferred_element_type=f32)
              + jnp.dot(h1.astype(mm_dtype), whh1, preferred_element_type=f32)
              + b1)
        i1 = sig(g1[:, 0 * Hp:1 * Hp])
        f1 = sig(g1[:, 1 * Hp:2 * Hp])
        gg1 = jnp.tanh(g1[:, 2 * Hp:3 * Hp])
        o1 = sig(g1[:, 3 * Hp:4 * Hp])
        c1n = f1 * c1 + i1 * gg1
        h1n = o1 * jnp.tanh(c1n)

        if ragged:  # mask padded tail timesteps (state frozen past seq_len)
            valid = (t_chunk * time_chunk + s) < seq_len
            h0n = jnp.where(valid, h0n, h0)
            c0n = jnp.where(valid, c0n, c0)
            h1n = jnp.where(valid, h1n, h1)
            c1n = jnp.where(valid, c1n, c1)
        return (h0n, c0n, h1n, c1n)

    carry = (h0_s[...], c0_s[...], h1_s[...], c1_s[...])
    unroll = True if time_chunk <= 16 else 4
    h0, c0, h1, c1 = jax.lax.fori_loop(0, time_chunk, step, carry,
                                       unroll=unroll)

    # State touches VMEM only at chunk boundaries.
    h0_s[...] = h0
    c0_s[...] = c0
    h1_s[...] = h1
    c1_s[...] = c1

    @pl.when(t_chunk == nt - 1)
    def _finalize():
        # fc head on the VPU (multiply + lane reduction); padded hidden lanes
        # carry zero weight so they contribute nothing.
        out_ref[...] = (jnp.sum(h1 * fcw_ref[...], axis=-1, keepdims=True)
                        + fcb_ref[...])


# ----------------------------------------------------------------------------
# Wrapper: layout transforms, padding, layer-0 input-projection precompute.
# ----------------------------------------------------------------------------
@functools.partial(jax.jit,
                   static_argnames=("hidden_size", "time_chunk", "batch_block",
                                    "mm_dtype", "gx_dtype"))
def news_lstm_forward(x, params, *, hidden_size, time_chunk=16,
                      batch_block=None, mm_dtype=jnp.bfloat16,
                      gx_dtype=jnp.bfloat16):
    """Mirrors NewsLSTM.forward (eval mode): returns (out, None), out (B, 1)."""
    if x.ndim == 2:
        x = x[:, None, :]                        # unsqueeze(1) -> (B, 1, F)
    B, T, F = x.shape
    H = hidden_size
    f32 = jnp.float32

    Hp = _round_up(H, 128)                       # lane-aligned gate blocks
    # Sublane alignment for the streamed gx0 dtype (8 for f32, 16 for bf16).
    sub_align = max(8, 32 // jnp.dtype(gx_dtype).itemsize)
    Bp = _round_up(B, sub_align)

    if batch_block is None:
        # Keep the four f32 state tiles at ~<=32 vregs:
        #   4 * (b_blk/8) * (Hp/128) <= 32  ->  b_blk <= 8192 / Hp.
        tgt = max(sub_align, (8192 // Hp) // sub_align * sub_align)
        b_blk = min(tgt, Bp)
    else:
        b_blk = min(_round_up(batch_block, sub_align), Bp)
    Bp = _round_up(Bp, b_blk)
    nb = Bp // b_blk

    Tc = max(1, min(time_chunk, T))
    T_pad = _round_up(T, Tc)
    nt = T_pad // Tc

    # ---- pad PyTorch-layout weights into lane-aligned, gate-blocked form ----
    def gate_cols(w_t):                          # (in, 4H) -> (in, 4Hp)
        out = jnp.zeros((w_t.shape[0], 4 * Hp), f32)
        for k in range(4):
            out = out.at[:, k * Hp:k * Hp + H].set(w_t[:, k * H:(k + 1) * H])
        return out

    def pad_rows(w, rows):                       # zero-pad leading dim
        return jnp.zeros((rows, w.shape[1]), w.dtype).at[:w.shape[0]].set(w)

    def gate_vec(b):                             # (4H,) -> (1, 4Hp)
        out = jnp.zeros((4 * Hp,), f32)
        for k in range(4):
            out = out.at[k * Hp:k * Hp + H].set(b[k * H:(k + 1) * H])
        return out[None, :]

    wih0 = gate_cols(params["weight_ih_l0"].astype(f32).T)             # (F, 4Hp)
    whh0 = pad_rows(gate_cols(params["weight_hh_l0"].astype(f32).T), Hp)
    b0 = gate_vec(params["bias_ih_l0"].astype(f32)
                  + params["bias_hh_l0"].astype(f32))
    wih1 = pad_rows(gate_cols(params["weight_ih_l1"].astype(f32).T), Hp)
    whh1 = pad_rows(gate_cols(params["weight_hh_l1"].astype(f32).T), Hp)
    b1 = gate_vec(params["bias_ih_l1"].astype(f32)
                  + params["bias_hh_l1"].astype(f32))
    fcw = jnp.zeros((1, Hp), f32).at[:, :H].set(params["fc_weight"].astype(f32))
    fcb = params["fc_bias"].astype(f32)[None, :]                        # (1, 1)

    # ---- hoist the layer-0 input projection out of the recurrence:
    #      one bf16 (T*Bp, F) @ (F, 4Hp) matmul for the whole sequence,
    #      f32 accumulation, bias added in f32 -------------------------------
    x_tbf = jnp.transpose(x, (1, 0, 2)).astype(f32)                     # (T, B, F)
    x_tbf = jnp.pad(x_tbf, ((0, 0), (0, Bp - B), (0, 0)))               # (T, Bp, F)
    gx0 = jnp.einsum("tbf,fg->tbg",
                     x_tbf.astype(mm_dtype), wih0.astype(mm_dtype),
                     preferred_element_type=f32) + b0                   # (T, Bp, 4Hp)
    gx0 = gx0.astype(gx_dtype)                   # stream in bf16 (halves HBM/VMEM)
    if T_pad != T:
        gx0 = jnp.pad(gx0, ((0, T_pad - T), (0, 0), (0, 0)))

    # bf16 matmul operands for the recurrence (f32 accumulation in-kernel).
    whh0 = whh0.astype(mm_dtype)
    wih1 = wih1.astype(mm_dtype)
    whh1 = whh1.astype(mm_dtype)

    const = lambda b, t: (0, 0)
    # TODO(synk): single-buffer the grid-constant weight specs
    # (pipeline_mode=pl.Buffered(1)) once available/verified on the target
    # jax version — saves one weight copy of VMEM on v7x.

    out = pl.pallas_call(
        functools.partial(_news_lstm_kernel, hidden=Hp, seq_len=T,
                          time_chunk=Tc, mm_dtype=mm_dtype),
        out_shape=jax.ShapeDtypeStruct((Bp, 1), f32),
        grid_spec=pltpu.PrefetchScalarGridSpec(
            num_scalar_prefetch=0,
            grid=(nb, nt),                       # time MUST stay innermost
            in_specs=[
                pl.BlockSpec((Tc, b_blk, 4 * Hp), lambda b, t: (t, b, 0)),
                pl.BlockSpec((Hp, 4 * Hp), const),
                pl.BlockSpec((Hp, 4 * Hp), const),
                pl.BlockSpec((Hp, 4 * Hp), const),
                pl.BlockSpec((1, 4 * Hp), const),
                pl.BlockSpec((1, Hp), const),
                pl.BlockSpec((1, 1), const),
            ],
            out_specs=pl.BlockSpec((b_blk, 1), lambda b, t: (b, 0)),
            scratch_shapes=[pltpu.VMEM((b_blk, Hp), f32)] * 4,
        ),
        compiler_params=pltpu.CompilerParams(
            dimension_semantics=("parallel", "arbitrary"),   # batch || , time serial
            vmem_limit_bytes=_VMEM_LIMIT,
        ),
    )(gx0, whh0, wih1, whh1, b1, fcw, fcb)

    return out[:B], None


# ----------------------------------------------------------------------------
# Deterministic parameter construction + pure-JAX reference for verification
# ----------------------------------------------------------------------------
def make_params(key, input_size, hidden_size):
    H = hidden_size
    ks = jax.random.split(key, 10)
    scale = 1.0 / jnp.sqrt(H)
    u = lambda k, shape: jax.random.uniform(k, shape, jnp.float32, -scale, scale)
    return {
        "weight_ih_l0": u(ks[0], (4 * H, input_size)),
        "weight_hh_l0": u(ks[1], (4 * H, H)),
        "bias_ih_l0":   u(ks[2], (4 * H,)),
        "bias_hh_l0":   u(ks[3], (4 * H,)),
        "weight_ih_l1": u(ks[4], (4 * H, H)),
        "weight_hh_l1": u(ks[5], (4 * H, H)),
        "bias_ih_l1":   u(ks[6], (4 * H,)),
        "bias_hh_l1":   u(ks[7], (4 * H,)),
        "fc_weight":    u(ks[8], (1, H)),
        "fc_bias":      u(ks[9], (1,)),
    }


def reference_forward(x, params, hidden_size):
    """Pure-jnp reimplementation of torch.nn.LSTM(num_layers=2) + Linear."""
    if x.ndim == 2:
        x = x[:, None, :]
    B, T, _ = x.shape
    H = hidden_size

    def cell(x_in, h, c, wih, whh, bih, bhh):
        gates = x_in @ wih.T + bih + h @ whh.T + bhh
        i = jax.nn.sigmoid(gates[:, 0 * H:1 * H])
        f = jax.nn.sigmoid(gates[:, 1 * H:2 * H])
        g = jnp.tanh(gates[:, 2 * H:3 * H])
        o = jax.nn.sigmoid(gates[:, 3 * H:4 * H])
        c_new = f * c + i * g
        return o * jnp.tanh(c_new), c_new

    h0 = c0 = h1 = c1 = jnp.zeros((B, H), jnp.float32)
    for t in range(T):
        h0, c0 = cell(x[:, t, :], h0, c0, params["weight_ih_l0"],
                      params["weight_hh_l0"], params["bias_ih_l0"],
                      params["bias_hh_l0"])
        h1, c1 = cell(h0, h1, c1, params["weight_ih_l1"],
                      params["weight_hh_l1"], params["bias_ih_l1"],
                      params["bias_hh_l1"])
    return h1 @ params["fc_weight"].T + params["fc_bias"]


if __name__ == "__main__":
    B, T, F, H = 2, 8, 16, 32

    key = jax.random.PRNGKey(0)
    k_x, k_p = jax.random.split(key)
    x = jax.random.normal(k_x, (B, T, F), jnp.float32)
    params = make_params(k_p, input_size=F, hidden_size=H)

    ref = reference_forward(x, params, H)

    # Default: one time chunk covers the whole sequence (grid time axis = 1).
    out, _ = news_lstm_forward(x, params, hidden_size=H)
    out = jax.block_until_ready(out)
    assert out.shape == (B, 1), out.shape
    assert jnp.allclose(out, ref, atol=5e-2, rtol=5e-2), (out, ref)

    # Exercise the multi-chunk + ragged-tail path (T=8, Tc=3 -> 3 chunks).
    out2, _ = news_lstm_forward(x, params, hidden_size=H, time_chunk=3)
    out2 = jax.block_until_ready(out2)
    assert jnp.allclose(out2, ref, atol=5e-2, rtol=5e-2), (out2, ref)

    # Exercise the f32 escape hatch (tight tolerance).
    out3, _ = news_lstm_forward(x, params, hidden_size=H,
                                mm_dtype=jnp.float32, gx_dtype=jnp.float32)
    out3 = jax.block_until_ready(out3)
    assert jnp.allclose(out3, ref, atol=1e-4, rtol=1e-4), (out3, ref)

    print("KERNEL_OK")
</pallas_src>

<mosaic_0001>
module attributes {stable_mosaic.version = 11 : i64} {
  func.func @_news_lstm_kernel(%arg0: i32, %arg1: i32, %arg2: memref<8x16x512xbf16, #tpu.memory_space<vmem>>, %arg3: memref<128x512xbf16, #tpu.memory_space<vmem>>, %arg4: memref<128x512xbf16, #tpu.memory_space<vmem>>, %arg5: memref<128x512xbf16, #tpu.memory_space<vmem>>, %arg6: memref<1x512xf32, #tpu.memory_space<vmem>>, %arg7: memref<1x128xf32, #tpu.memory_space<vmem>>, %arg8: memref<1x1xf32, #tpu.memory_space<vmem>>, %arg9: memref<16x1xf32, #tpu.memory_space<vmem>>, %arg10: memref<16x128xf32, #tpu.memory_space<vmem>>, %arg11: memref<16x128xf32, #tpu.memory_space<vmem>>, %arg12: memref<16x128xf32, #tpu.memory_space<vmem>>, %arg13: memref<16x128xf32, #tpu.memory_space<vmem>>) attributes {dimension_semantics = [#tpu.dimension_semantics<parallel>, #tpu.dimension_semantics<arbitrary>], iteration_bounds = array<i64: 1, 1>, scalar_prefetch = 0 : i64, scratch_operands = 4 : i64, tpu.core_type = #tpu.core_type<tc>, window_params = [{transform_indices = @transform_0, window_bounds = array<i64: 8, 16, 512>}, {pipeline_mode = #tpu.pipeline_mode<synchronous>, transform_indices = @transform_1, window_bounds = array<i64: 128, 512>}, {pipeline_mode = #tpu.pipeline_mode<synchronous>, transform_indices = @transform_2, window_bounds = array<i64: 128, 512>}, {pipeline_mode = #tpu.pipeline_mode<synchronous>, transform_indices = @transform_3, window_bounds = array<i64: 128, 512>}, {pipeline_mode = #tpu.pipeline_mode<synchronous>, transform_indices = @transform_4, window_bounds = array<i64: 1, 512>}, {pipeline_mode = #tpu.pipeline_mode<synchronous>, transform_indices = @transform_5, window_bounds = array<i64: 1, 128>}, {pipeline_mode = #tpu.pipeline_mode<synchronous>, transform_indices = @transform_6, window_bounds = array<i64: 1, 1>}, {transform_indices = @transform_7, window_bounds = array<i64: 16, 1>}]} {
    %c0_i32 = arith.constant 0 : i32
    %0 = arith.cmpi eq, %arg1, %c0_i32 : i32
    %1 = arith.extui %0 : i1 to i32
    %c0_i32_0 = arith.constant 0 : i32
    %2 = arith.cmpi ne, %1, %c0_i32_0 : i32
    scf.if %2 {
      %cst_210 = arith.constant 0.000000e+00 : f32
      %620 = vector.broadcast %cst_210 : f32 to vector<16x128xf32>
      %c0_211 = arith.constant 0 : index
      %c0_212 = arith.constant 0 : index
      %621 = vector.load %arg10[%c0_211, %c0_212] : memref<16x128xf32, #tpu.memory_space<vmem>>, vector<16x128xf32>
      tpu.vector_store %arg10[%c0_211, %c0_212], %620 {strides = array<i32>} : memref<16x128xf32, #tpu.memory_space<vmem>>, vector<16x128xf32>,
      %cst_213 = arith.constant 0.000000e+00 : f32
      %622 = vector.broadcast %cst_213 : f32 to vector<16x128xf32>
      %c0_214 = arith.constant 0 : index
      %c0_215 = arith.constant 0 : index
      %623 = vector.load %arg11[%c0_214, %c0_215] : memref<16x128xf32, #tpu.memory_space<vmem>>, vector<16x128xf32>
      tpu.vector_store %arg11[%c0_214, %c0_215], %622 {strides = array<i32>} : memref<16x128xf32, #tpu.memory_space<vmem>>, vector<16x128xf32>,
      %cst_216 = arith.constant 0.000000e+00 : f32
      %624 = vector.broadcast %cst_216 : f32 to vector<16x128xf32>
      %c0_217 = arith.constant 0 : index
      %c0_218 = arith.constant 0 : index
      %625 = vector.load %arg12[%c0_217, %c0_218] : memref<16x128xf32, #tpu.memory_space<vmem>>, vector<16x128xf32>
      tpu.vector_store %arg12[%c0_217, %c0_218], %624 {strides = array<i32>} : memref<16x128xf32, #tpu.memory_space<vmem>>, vector<16x128xf32>,
      %cst_219 = arith.constant 0.000000e+00 : f32
      %626 = vector.broadcast %cst_219 : f32 to vector<16x128xf32>
      %c0_220 = arith.constant 0 : index
      %c0_221 = arith.constant 0 : index
      %627 = vector.load %arg13[%c0_220, %c0_221] : memref<16x128xf32, #tpu.memory_space<vmem>>, vector<16x128xf32>
      tpu.vector_store %arg13[%c0_220, %c0_221], %626 {strides = array<i32>} : memref<16x128xf32, #tpu.memory_space<vmem>>, vector<16x128xf32>,
      %cst_222 = arith.constant 0.000000e+00 : f32
      %628 = vector.broadcast %cst_222 : f32 to vector<16x1xf32>
      %c0_223 = arith.constant 0 : index
      %c0_224 = arith.constant 0 : index
      %629 = vector.load %arg9[%c0_223, %c0_224] : memref<16x1xf32, #tpu.memory_space<vmem>>, vector<16x1xf32>
      tpu.vector_store %arg9[%c0_223, %c0_224], %628 {strides = array<i32>} : memref<16x1xf32, #tpu.memory_space<vmem>>, vector<16x1xf32>,
    } else {
    }
    %c0 = arith.constant 0 : index
    %c0_1 = arith.constant 0 : index
    %3 = vector.load %arg3[%c0, %c0_1] : memref<128x512xbf16, #tpu.memory_space<vmem>>, vector<128x512xbf16>
    %c0_2 = arith.constant 0 : index
    %c0_3 = arith.constant 0 : index
    %4 = vector.load %arg4[%c0_2, %c0_3] : memref<128x512xbf16, #tpu.memory_space<vmem>>, vector<128x512xbf16>
    %c0_4 = arith.constant 0 : index
    %c0_5 = arith.constant 0 : index
    %5 = vector.load %arg5[%c0_4, %c0_5] : memref<128x512xbf16, #tpu.memory_space<vmem>>, vector<128x512xbf16>
    %c0_6 = arith.constant 0 : index
    %c0_7 = arith.constant 0 : index
    %6 = vector.load %arg6[%c0_6, %c0_7] : memref<1x512xf32, #tpu.memory_space<vmem>>, vector<1x512xf32>
    %7 = vector.shape_cast %6 : vector<1x512xf32> to vector<1x512xf32>
    %8 = vector.broadcast %7 : vector<1x512xf32> to vector<16x512xf32>
    %c0_8 = arith.constant 0 : index
    %c0_9 = arith.constant 0 : index
    %9 = vector.load %arg10[%c0_8, %c0_9] : memref<16x128xf32, #tpu.memory_space<vmem>>, vector<16x128xf32>
    %c0_10 = arith.constant 0 : index
    %c0_11 = arith.constant 0 : index
    %10 = vector.load %arg11[%c0_10, %c0_11] : memref<16x128xf32, #tpu.memory_space<vmem>>, vector<16x128xf32>
    %c0_12 = arith.constant 0 : index
    %c0_13 = arith.constant 0 : index
    %11 = vector.load %arg12[%c0_12, %c0_13] : memref<16x128xf32, #tpu.memory_space<vmem>>, vector<16x128xf32>
    %c0_14 = arith.constant 0 : index
    %c0_15 = arith.constant 0 : index
    %12 = vector.load %arg13[%c0_14, %c0_15] : memref<16x128xf32, #tpu.memory_space<vmem>>, vector<16x128xf32>
    %c0_i32_16 = arith.constant 0 : i32
    %13 = arith.index_cast %c0_i32_16 : i32 to index
    %c0_17 = arith.constant 0 : index
    %c0_18 = arith.constant 0 : index
    %14 = vector.load %arg2[%13, %c0_17, %c0_18] : memref<8x16x512xbf16, #tpu.memory_space<vmem>>, vector<1x16x512xbf16>
    %15 = vector.shape_cast %14 : vector<1x16x512xbf16> to vector<16x512xbf16>
    %16 = arith.extf %15 : vector<16x512xbf16> to vector<16x512xf32>
    %17 = arith.truncf %9 : vector<16x128xf32> to vector<16x128xbf16>
    %cst = arith.constant dense<0.000000e+00> : vector<16x512xf32>
    %18 = tpu.matmul %17, %3, %cst {dimension_numbers = #tpu.dot_dimension_numbers<[1], [0], [0], [1], [0, 0, 1, 1], [], []>} : vector<16x128xbf16>, vector<128x512xbf16>, vector<16x512xf32> -> vector<16x512xf32>
    %19 = arith.addf %16, %18 : vector<16x512xf32>
    %20 = vector.extract_strided_slice %19 {offsets = [0, 0], sizes = [16, 128], strides = [1, 1]} : vector<16x512xf32> to vector<16x128xf32>
    %cst_19 = arith.constant 5.000000e-01 : f32
    %21 = vector.broadcast %cst_19 : f32 to vector<16x128xf32>
    %22 = arith.mulf %21, %20 : vector<16x128xf32>
    %23 = math.tanh %22 : vector<16x128xf32>
    %cst_20 = arith.constant 5.000000e-01 : f32
    %24 = vector.broadcast %cst_20 : f32 to vector<16x128xf32>
    %25 = arith.mulf %24, %23 : vector<16x128xf32>
    %cst_21 = arith.constant 5.000000e-01 : f32
    %26 = vector.broadcast %cst_21 : f32 to vector<16x128xf32>
    %27 = arith.addf %25, %26 : vector<16x128xf32>
    %28 = vector.extract_strided_slice %19 {offsets = [0, 128], sizes = [16, 128], strides = [1, 1]} : vector<16x512xf32> to vector<16x128xf32>
    %cst_22 = arith.constant 5.000000e-01 : f32
    %29 = vector.broadcast %cst_22 : f32 to vector<16x128xf32>
    %30 = arith.mulf %29, %28 : vector<16x128xf32>
    %31 = math.tanh %30 : vector<16x128xf32>
    %cst_23 = arith.constant 5.000000e-01 : f32
    %32 = vector.broadcast %cst_23 : f32 to vector<16x128xf32>
    %33 = arith.mulf %32, %31 : vector<16x128xf32>
    %cst_24 = arith.constant 5.000000e-01 : f32
    %34 = vector.broadcast %cst_24 : f32 to vector<16x128xf32>
    %35 = arith.addf %33, %34 : vector<16x128xf32>
    %36 = vector.extract_strided_slice %19 {offsets = [0, 256], sizes = [16, 128], strides = [1, 1]} : vector<16x512xf32> to vector<16x128xf32>
    %37 = math.tanh %36 : vector<16x128xf32>
    %38 = vector.extract_strided_slice %19 {offsets = [0, 384], sizes = [16, 128], strides = [1, 1]} : vector<16x512xf32> to vector<16x128xf32>
    %cst_25 = arith.constant 5.000000e-01 : f32
    %39 = vector.broadcast %cst_25 : f32 to vector<16x128xf32>
    %40 = arith.mulf %39, %38 : vector<16x128xf32>
    %41 = math.tanh %40 : vector<16x128xf32>
    %cst_26 = arith.constant 5.000000e-01 : f32
    %42 = vector.broadcast %cst_26 : f32 to vector<16x128xf32>
    %43 = arith.mulf %42, %41 : vector<16x128xf32>
    %cst_27 = arith.constant 5.000000e-01 : f32
    %44 = vector.broadcast %cst_27 : f32 to vector<16x128xf32>
    %45 = arith.addf %43, %44 : vector<16x128xf32>
    %46 = arith.mulf %35, %10 : vector<16x128xf32>
    %47 = arith.mulf %27, %37 : vector<16x128xf32>
    %48 = arith.addf %46, %47 : vector<16x128xf32>
    %49 = math.tanh %48 : vector<16x128xf32>
    %50 = arith.mulf %45, %49 : vector<16x128xf32>
    %51 = arith.truncf %50 : vector<16x128xf32> to vector<16x128xbf16>
    %cst_28 = arith.constant dense<0.000000e+00> : vector<16x512xf32>
    %52 = tpu.matmul %51, %4, %cst_28 {dimension_numbers = #tpu.dot_dimension_numbers<[1], [0], [0], [1], [0, 0, 1, 1], [], []>} : vector<16x128xbf16>, vector<128x512xbf16>, vector<16x512xf32> -> vector<16x512xf32>
    %53 = arith.truncf %11 : vector<16x128xf32> to vector<16x128xbf16>
    %cst_29 = arith.constant dense<0.000000e+00> : vector<16x512xf32>
    %54 = tpu.matmul %53, %5, %cst_29 {dimension_numbers = #tpu.dot_dimension_numbers<[1], [0], [0], [1], [0, 0, 1, 1], [], []>} : vector<16x128xbf16>, vector<128x512xbf16>, vector<16x512xf32> -> vector<16x512xf32>
    %55 = arith.addf %52, %54 : vector<16x512xf32>
    %56 = arith.addf %55, %8 : vector<16x512xf32>
    %57 = vector.extract_strided_slice %56 {offsets = [0, 0], sizes = [16, 128], strides = [1, 1]} : vector<16x512xf32> to vector<16x128xf32>
    %cst_30 = arith.constant 5.000000e-01 : f32
    %58 = vector.broadcast %cst_30 : f32 to vector<16x128xf32>
    %59 = arith.mulf %58, %57 : vector<16x128xf32>
    %60 = math.tanh %59 : vector<16x128xf32>
    %cst_31 = arith.constant 5.000000e-01 : f32
    %61 = vector.broadcast %cst_31 : f32 to vector<16x128xf32>
    %62 = arith.mulf %61, %60 : vector<16x128xf32>
    %cst_32 = arith.constant 5.000000e-01 : f32
    %63 = vector.broadcast %cst_32 : f32 to vector<16x128xf32>
    %64 = arith.addf %62, %63 : vector<16x128xf32>
    %65 = vector.extract_strided_slice %56 {offsets = [0, 128], sizes = [16, 128], strides = [1, 1]} : vector<16x512xf32> to vector<16x128xf32>
    %cst_33 = arith.constant 5.000000e-01 : f32
    %66 = vector.broadcast %cst_33 : f32 to vector<16x128xf32>
    %67 = arith.mulf %66, %65 : vector<16x128xf32>
    %68 = math.tanh %67 : vector<16x128xf32>
    %cst_34 = arith.constant 5.000000e-01 : f32
    %69 = vector.broadcast %cst_34 : f32 to vector<16x128xf32>
    %70 = arith.mulf %69, %68 : vector<16x128xf32>
    %cst_35 = arith.constant 5.000000e-01 : f32
    %71 = vector.broadcast %cst_35 : f32 to vector<16x128xf32>
    %72 = arith.addf %70, %71 : vector<16x128xf32>
    %73 = vector.extract_strided_slice %56 {offsets = [0, 256], sizes = [16, 128], strides = [1, 1]} : vector<16x512xf32> to vector<16x128xf32>
    %74 = math.tanh %73 : vector<16x128xf32>
    %75 = vector.extract_strided_slice %56 {offsets = [0, 384], sizes = [16, 128], strides = [1, 1]} : vector<16x512xf32> to vector<16x128xf32>
    %cst_36 = arith.constant 5.000000e-01 : f32
    %76 = vector.broadcast %cst_36 : f32 to vector<16x128xf32>
    %77 = arith.mulf %76, %75 : vector<16x128xf32>
    %78 = math.tanh %77 : vector<16x128xf32>
    %cst_37 = arith.constant 5.000000e-01 : f32
    %79 = vector.broadcast %cst_37 : f32 to vector<16x128xf32>
    %80 = arith.mulf %79, %78 : vector<16x128xf32>
    %cst_38 = arith.constant 5.000000e-01 : f32
    %81 = vector.broadcast %cst_38 : f32 to vector<16x128xf32>
    %82 = arith.addf %80, %81 : vector<16x128xf32>
    %83 = arith.mulf %72, %12 : vector<16x128xf32>
    %84 = arith.mulf %64, %74 : vector<16x128xf32>
    %85 = arith.addf %83, %84 : vector<16x128xf32>
    %86 = math.tanh %85 : vector<16x128xf32>
    %87 = arith.mulf %82, %86 : vector<16x128xf32>
    %c1_i32 = arith.constant 1 : i32
    %88 = arith.index_cast %c1_i32 : i32 to index
    %c0_39 = arith.constant 0 : index
    %c0_40 = arith.constant 0 : index
    %89 = vector.load %arg2[%88, %c0_39, %c0_40] : memref<8x16x512xbf16, #tpu.memory_space<vmem>>, vector<1x16x512xbf16>
    %90 = vector.shape_cast %89 : vector<1x16x512xbf16> to vector<16x512xbf16>
    %91 = arith.extf %90 : vector<16x512xbf16> to vector<16x512xf32>
    %92 = arith.truncf %50 : vector<16x128xf32> to vector<16x128xbf16>
    %cst_41 = arith.constant dense<0.000000e+00> : vector<16x512xf32>
    %93 = tpu.matmul %92, %3, %cst_41 {dimension_numbers = #tpu.dot_dimension_numbers<[1], [0], [0], [1], [0, 0, 1, 1], [], []>} : vector<16x128xbf16>, vector<128x512xbf16>, vector<16x512xf32> -> vector<16x512xf32>
    %94 = arith.addf %91, %93 : vector<16x512xf32>
    %95 = vector.extract_strided_slice %94 {offsets = [0, 0], sizes = [16, 128], strides = [1, 1]} : vector<16x512xf32> to vector<16x128xf32>
    %cst_42 = arith.constant 5.000000e-01 : f32
    %96 = vector.broadcast %cst_42 : f32 to vector<16x128xf32>
    %97 = arith.mulf %96, %95 : vector<16x128xf32>
    %98 = math.tanh %97 : vector<16x128xf32>
    %cst_43 = arith.constant 5.000000e-01 : f32
    %99 = vector.broadcast %cst_43 : f32 to vector<16x128xf32>
    %100 = arith.mulf %99, %98 : vector<16x128xf32>
    %cst_44 = arith.constant 5.000000e-01 : f32
    %101 = vector.broadcast %cst_44 : f32 to vector<16x128xf32>
    %102 = arith.addf %100, %101 : vector<16x128xf32>
    %103 = vector.extract_strided_slice %94 {offsets = [0, 128], sizes = [16, 128], strides = [1, 1]} : vector<16x512xf32> to vector<16x128xf32>
    %cst_45 = arith.constant 5.000000e-01 : f32
    %104 = vector.broadcast %cst_45 : f32 to vector<16x128xf32>
    %105 = arith.mulf %104, %103 : vector<16x128xf32>
    %106 = math.tanh %105 : vector<16x128xf32>
    %cst_46 = arith.constant 5.000000e-01 : f32
    %107 = vector.broadcast %cst_46 : f32 to vector<16x128xf32>
    %108 = arith.mulf %107, %106 : vector<16x128xf32>
    %cst_47 = arith.constant 5.000000e-01 : f32
    %109 = vector.broadcast %cst_47 : f32 to vector<16x128xf32>
    %110 = arith.addf %108, %109 : vector<16x128xf32>
    %111 = vector.extract_strided_slice %94 {offsets = [0, 256], sizes = [16, 128], strides = [1, 1]} : vector<16x512xf32> to vector<16x128xf32>
    %112 = math.tanh %111 : vector<16x128xf32>
    %113 = vector.extract_strided_slice %94 {offsets = [0, 384], sizes = [16, 128], strides = [1, 1]} : vector<16x512xf32> to vector<16x128xf32>
    %cst_48 = arith.constant 5.000000e-01 : f32
    %114 = vector.broadcast %cst_48 : f32 to vector<16x128xf32>
    %115 = arith.mulf %114, %113 : vector<16x128xf32>
    %116 = math.tanh %115 : vector<16x128xf32>
    %cst_49 = arith.constant 5.000000e-01 : f32
    %117 = vector.broadcast %cst_49 : f32 to vector<16x128xf32>
    %118 = arith.mulf %117, %116 : vector<16x128xf32>
    %cst_50 = arith.constant 5.000000e-01 : f32
    %119 = vector.broadcast %cst_50 : f32 to vector<16x128xf32>
    %120 = arith.addf %118, %119 : vector<16x128xf32>
    %121 = arith.mulf %110, %48 : vector<16x128xf32>
    %122 = arith.mulf %102, %112 : vector<16x128xf32>
    %123 = arith.addf %121, %122 : vector<16x128xf32>
    %124 = math.tanh %123 : vector<16x128xf32>
    %125 = arith.mulf %120, %124 : vector<16x128xf32>
    %126 = arith.truncf %125 : vector<16x128xf32> to vector<16x128xbf16>
    %cst_51 = arith.constant dense<0.000000e+00> : vector<16x512xf32>
    %127 = tpu.matmul %126, %4, %cst_51 {dimension_numbers = #tpu.dot_dimension_numbers<[1], [0], [0], [1], [0, 0, 1, 1], [], []>} : vector<16x128xbf16>, vector<128x512xbf16>, vector<16x512xf32> -> vector<16x512xf32>
    %128 = arith.truncf %87 : vector<16x128xf32> to vector<16x128xbf16>
    %cst_52 = arith.constant dense<0.000000e+00> : vector<16x512xf32>
    %129 = tpu.matmul %128, %5, %cst_52 {dimension_numbers = #tpu.dot_dimension_numbers<[1], [0], [0], [1], [0, 0, 1, 1], [], []>} : vector<16x128xbf16>, vector<128x512xbf16>, vector<16x512xf32> -> vector<16x512xf32>
    %130 = arith.addf %127, %129 : vector<16x512xf32>
    %131 = arith.addf %130, %8 : vector<16x512xf32>
    %132 = vector.extract_strided_slice %131 {offsets = [0, 0], sizes = [16, 128], strides = [1, 1]} : vector<16x512xf32> to vector<16x128xf32>
    %cst_53 = arith.constant 5.000000e-01 : f32
    %133 = vector.broadcast %cst_53 : f32 to vector<16x128xf32>
    %134 = arith.mulf %133, %132 : vector<16x128xf32>
    %135 = math.tanh %134 : vector<16x128xf32>
    %cst_54 = arith.constant 5.000000e-01 : f32
    %136 = vector.broadcast %cst_54 : f32 to vector<16x128xf32>
    %137 = arith.mulf %136, %135 : vector<16x128xf32>
    %cst_55 = arith.constant 5.000000e-01 : f32
    %138 = vector.broadcast %cst_55 : f32 to vector<16x128xf32>
    %139 = arith.addf %137, %138 : vector<16x128xf32>
    %140 = vector.extract_strided_slice %131 {offsets = [0, 128], sizes = [16, 128], strides = [1, 1]} : vector<16x512xf32> to vector<16x128xf32>
    %cst_56 = arith.constant 5.000000e-01 : f32
    %141 = vector.broadcast %cst_56 : f32 to vector<16x128xf32>
    %142 = arith.mulf %141, %140 : vector<16x128xf32>
    %143 = math.tanh %142 : vector<16x128xf32>
    %cst_57 = arith.constant 5.000000e-01 : f32
    %144 = vector.broadcast %cst_57 : f32 to vector<16x128xf32>
    %145 = arith.mulf %144, %143 : vector<16x128xf32>
    %cst_58 = arith.constant 5.000000e-01 : f32
    %146 = vector.broadcast %cst_58 : f32 to vector<16x128xf32>
    %147 = arith.addf %145, %146 : vector<16x128xf32>
    %148 = vector.extract_strided_slice %131 {offsets = [0, 256], sizes = [16, 128], strides = [1, 1]} : vector<16x512xf32> to vector<16x128xf32>
    %149 = math.tanh %148 : vector<16x128xf32>
    %150 = vector.extract_strided_slice %131 {offsets = [0, 384], sizes = [16, 128], strides = [1, 1]} : vector<16x512xf32> to vector<16x128xf32>
    %cst_59 = arith.constant 5.000000e-01 : f32
    %151 = vector.broadcast %cst_59 : f32 to vector<16x128xf32>
    %152 = arith.mulf %151, %150 : vector<16x128xf32>
    %153 = math.tanh %152 : vector<16x128xf32>
    %cst_60 = arith.constant 5.000000e-01 : f32
    %154 = vector.broadcast %cst_60 : f32 to vector<16x128xf32>
    %155 = arith.mulf %154, %153 : vector<16x128xf32>
    %cst_61 = arith.constant 5.000000e-01 : f32
    %156 = vector.broadcast %cst_61 : f32 to vector<16x128xf32>
    %157 = arith.addf %155, %156 : vector<16x128xf32>
    %158 = arith.mulf %147, %85 : vector<16x128xf32>
    %159 = arith.mulf %139, %149 : vector<16x128xf32>
    %160 = arith.addf %158, %159 : vector<16x128xf32>
    %161 = math.tanh %160 : vector<16x128xf32>
    %162 = arith.mulf %157, %161 : vector<16x128xf32>
    %c2_i32 = arith.constant 2 : i32
    %163 = arith.index_cast %c2_i32 : i32 to index
    %c0_62 = arith.constant 0 : index
    %c0_63 = arith.constant 0 : index
    %164 = vector.load %arg2[%163, %c0_62, %c0_63] : memref<8x16x512xbf16, #tpu.memory_space<vmem>>, vector<1x16x512xbf16>
    %165 = vector.shape_cast %164 : vector<1x16x512xbf16> to vector<16x512xbf16>
    %166 = arith.extf %165 : vector<16x512xbf16> to vector<16x512xf32>
    %167 = arith.truncf %125 : vector<16x128xf32> to vector<16x128xbf16>
    %cst_64 = arith.constant dense<0.000000e+00> : vector<16x512xf32>
    %168 = tpu.matmul %167, %3, %cst_64 {dimension_numbers = #tpu.dot_dimension_numbers<[1], [0], [0], [1], [0, 0, 1, 1], [], []>} : vector<16x128xbf16>, vector<128x512xbf16>, vector<16x512xf32> -> vector<16x512xf32>
    %169 = arith.addf %166, %168 : vector<16x512xf32>
    %170 = vector.extract_strided_slice %169 {offsets = [0, 0], sizes = [16, 128], strides = [1, 1]} : vector<16x512xf32> to vector<16x128xf32>
    %cst_65 = arith.constant 5.000000e-01 : f32
    %171 = vector.broadcast %cst_65 : f32 to vector<16x128xf32>
    %172 = arith.mulf %171, %170 : vector<16x128xf32>
    %173 = math.tanh %172 : vector<16x128xf32>
    %cst_66 = arith.constant 5.000000e-01 : f32
    %174 = vector.broadcast %cst_66 : f32 to vector<16x128xf32>
    %175 = arith.mulf %174, %173 : vector<16x128xf32>
    %cst_67 = arith.constant 5.000000e-01 : f32
    %176 = vector.broadcast %cst_67 : f32 to vector<16x128xf32>
    %177 = arith.addf %175, %176 : vector<16x128xf32>
    %178 = vector.extract_strided_slice %169 {offsets = [0, 128], sizes = [16, 128], strides = [1, 1]} : vector<16x512xf32> to vector<16x128xf32>
    %cst_68 = arith.constant 5.000000e-01 : f32
    %179 = vector.broadcast %cst_68 : f32 to vector<16x128xf32>
    %180 = arith.mulf %179, %178 : vector<16x128xf32>
    %181 = math.tanh %180 : vector<16x128xf32>
    %cst_69 = arith.constant 5.000000e-01 : f32
    %182 = vector.broadcast %cst_69 : f32 to vector<16x128xf32>
    %183 = arith.mulf %182, %181 : vector<16x128xf32>
    %cst_70 = arith.constant 5.000000e-01 : f32
    %184 = vector.broadcast %cst_70 : f32 to vector<16x128xf32>
    %185 = arith.addf %183, %184 : vector<16x128xf32>
    %186 = vector.extract_strided_slice %169 {offsets = [0, 256], sizes = [16, 128], strides = [1, 1]} : vector<16x512xf32> to vector<16x128xf32>
    %187 = math.tanh %186 : vector<16x128xf32>
    %188 = vector.extract_strided_slice %169 {offsets = [0, 384], sizes = [16, 128], strides = [1, 1]} : vector<16x512xf32> to vector<16x128xf32>
    %cst_71 = arith.constant 5.000000e-01 : f32
    %189 = vector.broadcast %cst_71 : f32 to vector<16x128xf32>
    %190 = arith.mulf %189, %188 : vector<16x128xf32>
    %191 = math.tanh %190 : vector<16x128xf32>
    %cst_72 = arith.constant 5.000000e-01 : f32
    %192 = vector.broadcast %cst_72 : f32 to vector<16x128xf32>
    %193 = arith.mulf %192, %191 : vector<16x128xf32>
    %cst_73 = arith.constant 5.000000e-01 : f32
    %194 = vector.broadcast %cst_73 : f32 to vector<16x128xf32>
    %195 = arith.addf %193, %194 : vector<16x128xf32>
    %196 = arith.mulf %185, %123 : vector<16x128xf32>
    %197 = arith.mulf %177, %187 : vector<16x128xf32>
    %198 = arith.addf %196, %197 : vector<16x128xf32>
    %199 = math.tanh %198 : vector<16x128xf32>
    %200 = arith.mulf %195, %199 : vector<16x128xf32>
    %201 = arith.truncf %200 : vector<16x128xf32> to vector<16x128xbf16>
    %cst_74 = arith.constant dense<0.000000e+00> : vector<16x512xf32>
    %202 = tpu.matmul %201, %4, %cst_74 {dimension_numbers = #tpu.dot_dimension_numbers<[1], [0], [0], [1], [0, 0, 1, 1], [], []>} : vector<16x128xbf16>, vector<128x512xbf16>, vector<16x512xf32> -> vector<16x512xf32>
    %203 = arith.truncf %162 : vector<16x128xf32> to vector<16x128xbf16>
    %cst_75 = arith.constant dense<0.000000e+00> : vector<16x512xf32>
    %204 = tpu.matmul %203, %5, %cst_75 {dimension_numbers = #tpu.dot_dimension_numbers<[1], [0], [0], [1], [0, 0, 1, 1], [], []>} : vector<16x128xbf16>, vector<128x512xbf16>, vector<16x512xf32> -> vector<16x512xf32>
    %205 = arith.addf %202, %204 : vector<16x512xf32>
    %206 = arith.addf %205, %8 : vector<16x512xf32>
    %207 = vector.extract_strided_slice %206 {offsets = [0, 0], sizes = [16, 128], strides = [1, 1]} : vector<16x512xf32> to vector<16x128xf32>
    %cst_76 = arith.constant 5.000000e-01 : f32
    %208 = vector.broadcast %cst_76 : f32 to vector<16x128xf32>
    %209 = arith.mulf %208, %207 : vector<16x128xf32>
    %210 = math.tanh %209 : vector<16x128xf32>
    %cst_77 = arith.constant 5.000000e-01 : f32
    %211 = vector.broadcast %cst_77 : f32 to vector<16x128xf32>
    %212 = arith.mulf %211, %210 : vector<16x128xf32>
    %cst_78 = arith.constant 5.000000e-01 : f32
    %213 = vector.broadcast %cst_78 : f32 to vector<16x128xf32>
    %214 = arith.addf %212, %213 : vector<16x128xf32>
    %215 = vector.extract_strided_slice %206 {offsets = [0, 128], sizes = [16, 128], strides = [1, 1]} : vector<16x512xf32> to vector<16x128xf32>
    %cst_79 = arith.constant 5.000000e-01 : f32
    %216 = vector.broadcast %cst_79 : f32 to vector<16x128xf32>
    %217 = arith.mulf %216, %215 : vector<16x128xf32>
    %218 = math.tanh %217 : vector<16x128xf32>
    %cst_80 = arith.constant 5.000000e-01 : f32
    %219 = vector.broadcast %cst_80 : f32 to vector<16x128xf32>
    %220 = arith.mulf %219, %218 : vector<16x128xf32>
    %cst_81 = arith.constant 5.000000e-01 : f32
    %221 = vector.broadcast %cst_81 : f32 to vector<16x128xf32>
    %222 = arith.addf %220, %221 : vector<16x128xf32>
    %223 = vector.extract_strided_slice %206 {offsets = [0, 256], sizes = [16, 128], strides = [1, 1]} : vector<16x512xf32> to vector<16x128xf32>
    %224 = math.tanh %223 : vector<16x128xf32>
    %225 = vector.extract_strided_slice %206 {offsets = [0, 384], sizes = [16, 128], strides = [1, 1]} : vector<16x512xf32> to vector<16x128xf32>
    %cst_82 = arith.constant 5.000000e-01 : f32
    %226 = vector.broadcast %cst_82 : f32 to vector<16x128xf32>
    %227 = arith.mulf %226, %225 : vector<16x128xf32>
    %228 = math.tanh %227 : vector<16x128xf32>
    %cst_83 = arith.constant 5.000000e-01 : f32
    %229 = vector.broadcast %cst_83 : f32 to vector<16x128xf32>
    %230 = arith.mulf %229, %228 : vector<16x128xf32>
    %cst_84 = arith.constant 5.000000e-01 : f32
    %231 = vector.broadcast %cst_84 : f32 to vector<16x128xf32>
    %232 = arith.addf %230, %231 : vector<16x128xf32>
    %233 = arith.mulf %222, %160 : vector<16x128xf32>
    %234 = arith.mulf %214, %224 : vector<16x128xf32>
    %235 = arith.addf %233, %234 : vector<16x128xf32>
    %236 = math.tanh %235 : vector<16x128xf32>
    %237 = arith.mulf %232, %236 : vector<16x128xf32>
    %c3_i32 = arith.constant 3 : i32
    %238 = arith.index_cast %c3_i32 : i32 to index
    %c0_85 = arith.constant 0 : index
    %c0_86 = arith.constant 0 : index
    %239 = vector.load %arg2[%238, %c0_85, %c0_86] : memref<8x16x512xbf16, #tpu.memory_space<vmem>>, vector<1x16x512xbf16>
    %240 = vector.shape_cast %239 : vector<1x16x512xbf16> to vector<16x512xbf16>
    %241 = arith.extf %240 : vector<16x512xbf16> to vector<16x512xf32>
    %242 = arith.truncf %200 : vector<16x128xf32> to vector<16x128xbf16>
    %cst_87 = arith.constant dense<0.000000e+00> : vector<16x512xf32>
    %243 = tpu.matmul %242, %3, %cst_87 {dimension_numbers = #tpu.dot_dimension_numbers<[1], [0], [0], [1], [0, 0, 1, 1], [], []>} : vector<16x128xbf16>, vector<128x512xbf16>, vector<16x512xf32> -> vector<16x512xf32>
    %244 = arith.addf %241, %243 : vector<16x512xf32>
    %245 = vector.extract_strided_slice %244 {offsets = [0, 0], sizes = [16, 128], strides = [1, 1]} : vector<16x512xf32> to vector<16x128xf32>
    %cst_88 = arith.constant 5.000000e-01 : f32
    %246 = vector.broadcast %cst_88 : f32 to vector<16x128xf32>
    %247 = arith.mulf %246, %245 : vector<16x128xf32>
    %248 = math.tanh %247 : vector<16x128xf32>
    %cst_89 = arith.constant 5.000000e-01 : f32
    %249 = vector.broadcast %cst_89 : f32 to vector<16x128xf32>
    %250 = arith.mulf %249, %248 : vector<16x128xf32>
    %cst_90 = arith.constant 5.000000e-01 : f32
    %251 = vector.broadcast %cst_90 : f32 to vector<16x128xf32>
    %252 = arith.addf %250, %251 : vector<16x128xf32>
    %253 = vector.extract_strided_slice %244 {offsets = [0, 128], sizes = [16, 128], strides = [1, 1]} : vector<16x512xf32> to vector<16x128xf32>
    %cst_91 = arith.constant 5.000000e-01 : f32
    %254 = vector.broadcast %cst_91 : f32 to vector<16x128xf32>
    %255 = arith.mulf %254, %253 : vector<16x128xf32>
    %256 = math.tanh %255 : vector<16x128xf32>
    %cst_92 = arith.constant 5.000000e-01 : f32
    %257 = vector.broadcast %cst_92 : f32 to vector<16x128xf32>
    %258 = arith.mulf %257, %256 : vector<16x128xf32>
    %cst_93 = arith.constant 5.000000e-01 : f32
    %259 = vector.broadcast %cst_93 : f32 to vector<16x128xf32>
    %260 = arith.addf %258, %259 : vector<16x128xf32>
    %261 = vector.extract_strided_slice %244 {offsets = [0, 256], sizes = [16, 128], strides = [1, 1]} : vector<16x512xf32> to vector<16x128xf32>
    %262 = math.tanh %261 : vector<16x128xf32>
    %263 = vector.extract_strided_slice %244 {offsets = [0, 384], sizes = [16, 128], strides = [1, 1]} : vector<16x512xf32> to vector<16x128xf32>
    %cst_94 = arith.constant 5.000000e-01 : f32
    %264 = vector.broadcast %cst_94 : f32 to vector<16x128xf32>
    %265 = arith.mulf %264, %263 : vector<16x128xf32>
    %266 = math.tanh %265 : vector<16x128xf32>
    %cst_95 = arith.constant 5.000000e-01 : f32
    %267 = vector.broadcast %cst_95 : f32 to vector<16x128xf32>
    %268 = arith.mulf %267, %266 : vector<16x128xf32>
    %cst_96 = arith.constant 5.000000e-01 : f32
    %269 = vector.broadcast %cst_96 : f32 to vector<16x128xf32>
    %270 = arith.addf %268, %269 : vector<16x128xf32>
    %271 = arith.mulf %260, %198 : vector<16x128xf32>
    %272 = arith.mulf %252, %262 : vector<16x128xf32>
    %273 = arith.addf %271, %272 : vector<16x128xf32>
    %274 = math.tanh %273 : vector<16x128xf32>
    %275 = arith.mulf %270, %274 : vector<16x128xf32>
    %276 = arith.truncf %275 : vector<16x128xf32> to vector<16x128xbf16>
    %cst_97 = arith.constant dense<0.000000e+00> : vector<16x512xf32>
    %277 = tpu.matmul %276, %4, %cst_97 {dimension_numbers = #tpu.dot_dimension_numbers<[1], [0], [0], [1], [0, 0, 1, 1], [], []>} : vector<16x128xbf16>, vector<128x512xbf16>, vector<16x512xf32> -> vector<16x512xf32>
    %278 = arith.truncf %237 : vector<16x128xf32> to vector<16x128xbf16>
    %cst_98 = arith.constant dense<0.000000e+00> : vector<16x512xf32>
    %279 = tpu.matmul %278, %5, %cst_98 {dimension_numbers = #tpu.dot_dimension_numbers<[1], [0], [0], [1], [0, 0, 1, 1], [], []>} : vector<16x128xbf16>, vector<128x512xbf16>, vector<16x512xf32> -> vector<16x512xf32>
    %280 = arith.addf %277, %279 : vector<16x512xf32>
    %281 = arith.addf %280, %8 : vector<16x512xf32>
    %282 = vector.extract_strided_slice %281 {offsets = [0, 0], sizes = [16, 128], strides = [1, 1]} : vector<16x512xf32> to vector<16x128xf32>
    %cst_99 = arith.constant 5.000000e-01 : f32
    %283 = vector.broadcast %cst_99 : f32 to vector<16x128xf32>
    %284 = arith.mulf %283, %282 : vector<16x128xf32>
    %285 = math.tanh %284 : vector<16x128xf32>
    %cst_100 = arith.constant 5.000000e-01 : f32
    %286 = vector.broadcast %cst_100 : f32 to vector<16x128xf32>
    %287 = arith.mulf %286, %285 : vector<16x128xf32>
    %cst_101 = arith.constant 5.000000e-01 : f32
    %288 = vector.broadcast %cst_101 : f32 to vector<16x128xf32>
    %289 = arith.addf %287, %288 : vector<16x128xf32>
    %290 = vector.extract_strided_slice %281 {offsets = [0, 128], sizes = [16, 128], strides = [1, 1]} : vector<16x512xf32> to vector<16x128xf32>
    %cst_102 = arith.constant 5.000000e-01 : f32
    %291 = vector.broadcast %cst_102 : f32 to vector<16x128xf32>
    %292 = arith.mulf %291, %290 : vector<16x128xf32>
    %293 = math.tanh %292 : vector<16x128xf32>
    %cst_103 = arith.constant 5.000000e-01 : f32
    %294 = vector.broadcast %cst_103 : f32 to vector<16x128xf32>
    %295 = arith.mulf %294, %293 : vector<16x128xf32>
    %cst_104 = arith.constant 5.000000e-01 : f32
    %296 = vector.broadcast %cst_104 : f32 to vector<16x128xf32>
    %297 = arith.addf %295, %296 : vector<16x128xf32>
    %298 = vector.extract_strided_slice %281 {offsets = [0, 256], sizes = [16, 128], strides = [1, 1]} : vector<16x512xf32> to vector<16x128xf32>
    %299 = math.tanh %298 : vector<16x128xf32>
    %300 = vector.extract_strided_slice %281 {offsets = [0, 384], sizes = [16, 128], strides = [1, 1]} : vector<16x512xf32> to vector<16x128xf32>
    %cst_105 = arith.constant 5.000000e-01 : f32
    %301 = vector.broadcast %cst_105 : f32 to vector<16x128xf32>
    %302 = arith.mulf %301, %300 : vector<16x128xf32>
    %303 = math.tanh %302 : vector<16x128xf32>
    %cst_106 = arith.constant 5.000000e-01 : f32
    %304 = vector.broadcast %cst_106 : f32 to vector<16x128xf32>
    %305 = arith.mulf %304, %303 : vector<16x128xf32>
    %cst_107 = arith.constant 5.000000e-01 : f32
    %306 = vector.broadcast %cst_107 : f32 to vector<16x128xf32>
    %307 = arith.addf %305, %306 : vector<16x128xf32>
    %308 = arith.mulf %297, %235 : vector<16x128xf32>
    %309 = arith.mulf %289, %299 : vector<16x128xf32>
    %310 = arith.addf %308, %309 : vector<16x128xf32>
    %311 = math.tanh %310 : vector<16x128xf32>
    %312 = arith.mulf %307, %311 : vector<16x128xf32>
    %c4_i32 = arith.constant 4 : i32
    %313 = arith.index_cast %c4_i32 : i32 to index
    %c0_108 = arith.constant 0 : index
    %c0_109 = arith.constant 0 : index
    %314 = vector.load %arg2[%313, %c0_108, %c0_109] : memref<8x16x512xbf16, #tpu.memory_space<vmem>>, vector<1x16x512xbf16>
    %315 = vector.shape_cast %314 : vector<1x16x512xbf16> to vector<16x512xbf16>
    %316 = arith.extf %315 : vector<16x512xbf16> to vector<16x512xf32>
    %317 = arith.truncf %275 : vector<16x128xf32> to vector<16x128xbf16>
    %cst_110 = arith.constant dense<0.000000e+00> : vector<16x512xf32>
    %318 = tpu.matmul %317, %3, %cst_110 {dimension_numbers = #tpu.dot_dimension_numbers<[1], [0], [0], [1], [0, 0, 1, 1], [], []>} : vector<16x128xbf16>, vector<128x512xbf16>, vector<16x512xf32> -> vector<16x512xf32>
    %319 = arith.addf %316, %318 : vector<16x512xf32>
    %320 = vector.extract_strided_slice %319 {offsets = [0, 0], sizes = [16, 128], strides = [1, 1]} : vector<16x512xf32> to vector<16x128xf32>
    %cst_111 = arith.constant 5.000000e-01 : f32
    %321 = vector.broadcast %cst_111 : f32 to vector<16x128xf32>
    %322 = arith.mulf %321, %320 : vector<16x128xf32>
    %323 = math.tanh %322 : vector<16x128xf32>
    %cst_112 = arith.constant 5.000000e-01 : f32
    %324 = vector.broadcast %cst_112 : f32 to vector<16x128xf32>
    %325 = arith.mulf %324, %323 : vector<16x128xf32>
    %cst_113 = arith.constant 5.000000e-01 : f32
    %326 = vector.broadcast %cst_113 : f32 to vector<16x128xf32>
    %327 = arith.addf %325, %326 : vector<16x128xf32>
    %328 = vector.extract_strided_slice %319 {offsets = [0, 128], sizes = [16, 128], strides = [1, 1]} : vector<16x512xf32> to vector<16x128xf32>
    %cst_114 = arith.constant 5.000000e-01 : f32
    %329 = vector.broadcast %cst_114 : f32 to vector<16x128xf32>
    %330 = arith.mulf %329, %328 : vector<16x128xf32>
    %331 = math.tanh %330 : vector<16x128xf32>
    %cst_115 = arith.constant 5.000000e-01 : f32
    %332 = vector.broadcast %cst_115 : f32 to vector<16x128xf32>
    %333 = arith.mulf %332, %331 : vector<16x128xf32>
    %cst_116 = arith.constant 5.000000e-01 : f32
    %334 = vector.broadcast %cst_116 : f32 to vector<16x128xf32>
    %335 = arith.addf %333, %334 : vector<16x128xf32>
    %336 = vector.extract_strided_slice %319 {offsets = [0, 256], sizes = [16, 128], strides = [1, 1]} : vector<16x512xf32> to vector<16x128xf32>
    %337 = math.tanh %336 : vector<16x128xf32>
    %338 = vector.extract_strided_slice %319 {offsets = [0, 384], sizes = [16, 128], strides = [1, 1]} : vector<16x512xf32> to vector<16x128xf32>
    %cst_117 = arith.constant 5.000000e-01 : f32
    %339 = vector.broadcast %cst_117 : f32 to vector<16x128xf32>
    %340 = arith.mulf %339, %338 : vector<16x128xf32>
    %341 = math.tanh %340 : vector<16x128xf32>
    %cst_118 = arith.constant 5.000000e-01 : f32
    %342 = vector.broadcast %cst_118 : f32 to vector<16x128xf32>
    %343 = arith.mulf %342, %341 : vector<16x128xf32>
    %cst_119 = arith.constant 5.000000e-01 : f32
    %344 = vector.broadcast %cst_119 : f32 to vector<16x128xf32>
    %345 = arith.addf %343, %344 : vector<16x128xf32>
    %346 = arith.mulf %335, %273 : vector<16x128xf32>
    %347 = arith.mulf %327, %337 : vector<16x128xf32>
    %348 = arith.addf %346, %347 : vector<16x128xf32>
    %349 = math.tanh %348 : vector<16x128xf32>
    %350 = arith.mulf %345, %349 : vector<16x128xf32>
    %351 = arith.truncf %350 : vector<16x128xf32> to vector<16x128xbf16>
    %cst_120 = arith.constant dense<0.000000e+00> : vector<16x512xf32>
    %352 = tpu.matmul %351, %4, %cst_120 {dimension_numbers = #tpu.dot_dimension_numbers<[1], [0], [0], [1], [0, 0, 1, 1], [], []>} : vector<16x128xbf16>, vector<128x512xbf16>, vector<16x512xf32> -> vector<16x512xf32>
    %353 = arith.truncf %312 : vector<16x128xf32> to vector<16x128xbf16>
    %cst_121 = arith.constant dense<0.000000e+00> : vector<16x512xf32>
    %354 = tpu.matmul %353, %5, %cst_121 {dimension_numbers = #tpu.dot_dimension_numbers<[1], [0], [0], [1], [0, 0, 1, 1], [], []>} : vector<16x128xbf16>, vector<128x512xbf16>, vector<16x512xf32> -> vector<16x512xf32>
    %355 = arith.addf %352, %354 : vector<16x512xf32>
    %356 = arith.addf %355, %8 : vector<16x512xf32>
    %357 = vector.extract_strided_slice %356 {offsets = [0, 0], sizes = [16, 128], strides = [1, 1]} : vector<16x512xf32> to vector<16x128xf32>
    %cst_122 = arith.constant 5.000000e-01 : f32
    %358 = vector.broadcast %cst_122 : f32 to vector<16x128xf32>
    %359 = arith.mulf %358, %357 : vector<16x128xf32>
    %360 = math.tanh %359 : vector<16x128xf32>
    %cst_123 = arith.constant 5.000000e-01 : f32
    %361 = vector.broadcast %cst_123 : f32 to vector<16x128xf32>
    %362 = arith.mulf %361, %360 : vector<16x128xf32>
    %cst_124 = arith.constant 5.000000e-01 : f32
    %363 = vector.broadcast %cst_124 : f32 to vector<16x128xf32>
    %364 = arith.addf %362, %363 : vector<16x128xf32>
    %365 = vector.extract_strided_slice %356 {offsets = [0, 128], sizes = [16, 128], strides = [1, 1]} : vector<16x512xf32> to vector<16x128xf32>
    %cst_125 = arith.constant 5.000000e-01 : f32
    %366 = vector.broadcast %cst_125 : f32 to vector<16x128xf32>
    %367 = arith.mulf %366, %365 : vector<16x128xf32>
    %368 = math.tanh %367 : vector<16x128xf32>
    %cst_126 = arith.constant 5.000000e-01 : f32
    %369 = vector.broadcast %cst_126 : f32 to vector<16x128xf32>
    %370 = arith.mulf %369, %368 : vector<16x128xf32>
    %cst_127 = arith.constant 5.000000e-01 : f32
    %371 = vector.broadcast %cst_127 : f32 to vector<16x128xf32>
    %372 = arith.addf %370, %371 : vector<16x128xf32>
    %373 = vector.extract_strided_slice %356 {offsets = [0, 256], sizes = [16, 128], strides = [1, 1]} : vector<16x512xf32> to vector<16x128xf32>
    %374 = math.tanh %373 : vector<16x128xf32>
    %375 = vector.extract_strided_slice %356 {offsets = [0, 384], sizes = [16, 128], strides = [1, 1]} : vector<16x512xf32> to vector<16x128xf32>
    %cst_128 = arith.constant 5.000000e-01 : f32
    %376 = vector.broadcast %cst_128 : f32 to vector<16x128xf32>
    %377 = arith.mulf %376, %375 : vector<16x128xf32>
    %378 = math.tanh %377 : vector<16x128xf32>
    %cst_129 = arith.constant 5.000000e-01 : f32
    %379 = vector.broadcast %cst_129 : f32 to vector<16x128xf32>
    %380 = arith.mulf %379, %378 : vector<16x128xf32>
    %cst_130 = arith.constant 5.000000e-01 : f32
    %381 = vector.broadcast %cst_130 : f32 to vector<16x128xf32>
    %382 = arith.addf %380, %381 : vector<16x128xf32>
    %383 = arith.mulf %372, %310 : vector<16x128xf32>
    %384 = arith.mulf %364, %374 : vector<16x128xf32>
    %385 = arith.addf %383, %384 : vector<16x128xf32>
    %386 = math.tanh %385 : vector<16x128xf32>
    %387 = arith.mulf %382, %386 : vector<16x128xf32>
    %c5_i32 = arith.constant 5 : i32
    %388 = arith.index_cast %c5_i32 : i32 to index
    %c0_131 = arith.constant 0 : index
    %c0_132 = arith.constant 0 : index
    %389 = vector.load %arg2[%388, %c0_131, %c0_132] : memref<8x16x512xbf16, #tpu.memory_space<vmem>>, vector<1x16x512xbf16>
    %390 = vector.shape_cast %389 : vector<1x16x512xbf16> to vector<16x512xbf16>
    %391 = arith.extf %390 : vector<16x512xbf16> to vector<16x512xf32>
    %392 = arith.truncf %350 : vector<16x128xf32> to vector<16x128xbf16>
    %cst_133 = arith.constant dense<0.000000e+00> : vector<16x512xf32>
    %393 = tpu.matmul %392, %3, %cst_133 {dimension_numbers = #tpu.dot_dimension_numbers<[1], [0], [0], [1], [0, 0, 1, 1], [], []>} : vector<16x128xbf16>, vector<128x512xbf16>, vector<16x512xf32> -> vector<16x512xf32>
    %394 = arith.addf %391, %393 : vector<16x512xf32>
    %395 = vector.extract_strided_slice %394 {offsets = [0, 0], sizes = [16, 128], strides = [1, 1]} : vector<16x512xf32> to vector<16x128xf32>
    %cst_134 = arith.constant 5.000000e-01 : f32
    %396 = vector.broadcast %cst_134 : f32 to vector<16x128xf32>
    %397 = arith.mulf %396, %395 : vector<16x128xf32>
    %398 = math.tanh %397 : vector<16x128xf32>
    %cst_135 = arith.constant 5.000000e-01 : f32
    %399 = vector.broadcast %cst_135 : f32 to vector<16x128xf32>
    %400 = arith.mulf %399, %398 : vector<16x128xf32>
    %cst_136 = arith.constant 5.000000e-01 : f32
    %401 = vector.broadcast %cst_136 : f32 to vector<16x128xf32>
    %402 = arith.addf %400, %401 : vector<16x128xf32>
    %403 = vector.extract_strided_slice %394 {offsets = [0, 128], sizes = [16, 128], strides = [1, 1]} : vector<16x512xf32> to vector<16x128xf32>
    %cst_137 = arith.constant 5.000000e-01 : f32
    %404 = vector.broadcast %cst_137 : f32 to vector<16x128xf32>
    %405 = arith.mulf %404, %403 : vector<16x128xf32>
    %406 = math.tanh %405 : vector<16x128xf32>
    %cst_138 = arith.constant 5.000000e-01 : f32
    %407 = vector.broadcast %cst_138 : f32 to vector<16x128xf32>
    %408 = arith.mulf %407, %406 : vector<16x128xf32>
    %cst_139 = arith.constant 5.000000e-01 : f32
    %409 = vector.broadcast %cst_139 : f32 to vector<16x128xf32>
    %410 = arith.addf %408, %409 : vector<16x128xf32>
    %411 = vector.extract_strided_slice %394 {offsets = [0, 256], sizes = [16, 128], strides = [1, 1]} : vector<16x512xf32> to vector<16x128xf32>
    %412 = math.tanh %411 : vector<16x128xf32>
    %413 = vector.extract_strided_slice %394 {offsets = [0, 384], sizes = [16, 128], strides = [1, 1]} : vector<16x512xf32> to vector<16x128xf32>
    %cst_140 = arith.constant 5.000000e-01 : f32
    %414 = vector.broadcast %cst_140 : f32 to vector<16x128xf32>
    %415 = arith.mulf %414, %413 : vector<16x128xf32>
    %416 = math.tanh %415 : vector<16x128xf32>
    %cst_141 = arith.constant 5.000000e-01 : f32
    %417 = vector.broadcast %cst_141 : f32 to vector<16x128xf32>
    %418 = arith.mulf %417, %416 : vector<16x128xf32>
    %cst_142 = arith.constant 5.000000e-01 : f32
    %419 = vector.broadcast %cst_142 : f32 to vector<16x128xf32>
    %420 = arith.addf %418, %419 : vector<16x128xf32>
    %421 = arith.mulf %410, %348 : vector<16x128xf32>
    %422 = arith.mulf %402, %412 : vector<16x128xf32>
    %423 = arith.addf %421, %422 : vector<16x128xf32>
    %424 = math.tanh %423 : vector<16x128xf32>
    %425 = arith.mulf %420, %424 : vector<16x128xf32>
    %426 = arith.truncf %425 : vector<16x128xf32> to vector<16x128xbf16>
    %cst_143 = arith.constant dense<0.000000e+00> : vector<16x512xf32>
    %427 = tpu.matmul %426, %4, %cst_143 {dimension_numbers = #tpu.dot_dimension_numbers<[1], [0], [0], [1], [0, 0, 1, 1], [], []>} : vector<16x128xbf16>, vector<128x512xbf16>, vector<16x512xf32> -> vector<16x512xf32>
    %428 = arith.truncf %387 : vector<16x128xf32> to vector<16x128xbf16>
    %cst_144 = arith.constant dense<0.000000e+00> : vector<16x512xf32>
    %429 = tpu.matmul %428, %5, %cst_144 {dimension_numbers = #tpu.dot_dimension_numbers<[1], [0], [0], [1], [0, 0, 1, 1], [], []>} : vector<16x128xbf16>, vector<128x512xbf16>, vector<16x512xf32> -> vector<16x512xf32>
    %430 = arith.addf %427, %429 : vector<16x512xf32>
    %431 = arith.addf %430, %8 : vector<16x512xf32>
    %432 = vector.extract_strided_slice %431 {offsets = [0, 0], sizes = [16, 128], strides = [1, 1]} : vector<16x512xf32> to vector<16x128xf32>
    %cst_145 = arith.constant 5.000000e-01 : f32
    %433 = vector.broadcast %cst_145 : f32 to vector<16x128xf32>
    %434 = arith.mulf %433, %432 : vector<16x128xf32>
    %435 = math.tanh %434 : vector<16x128xf32>
    %cst_146 = arith.constant 5.000000e-01 : f32
    %436 = vector.broadcast %cst_146 : f32 to vector<16x128xf32>
    %437 = arith.mulf %436, %435 : vector<16x128xf32>
    %cst_147 = arith.constant 5.000000e-01 : f32
    %438 = vector.broadcast %cst_147 : f32 to vector<16x128xf32>
    %439 = arith.addf %437, %438 : vector<16x128xf32>
    %440 = vector.extract_strided_slice %431 {offsets = [0, 128], sizes = [16, 128], strides = [1, 1]} : vector<16x512xf32> to vector<16x128xf32>
    %cst_148 = arith.constant 5.000000e-01 : f32
    %441 = vector.broadcast %cst_148 : f32 to vector<16x128xf32>
    %442 = arith.mulf %441, %440 : vector<16x128xf32>
    %443 = math.tanh %442 : vector<16x128xf32>
    %cst_149 = arith.constant 5.000000e-01 : f32
    %444 = vector.broadcast %cst_149 : f32 to vector<16x128xf32>
    %445 = arith.mulf %444, %443 : vector<16x128xf32>
    %cst_150 = arith.constant 5.000000e-01 : f32
    %446 = vector.broadcast %cst_150 : f32 to vector<16x128xf32>
    %447 = arith.addf %445, %446 : vector<16x128xf32>
    %448 = vector.extract_strided_slice %431 {offsets = [0, 256], sizes = [16, 128], strides = [1, 1]} : vector<16x512xf32> to vector<16x128xf32>
    %449 = math.tanh %448 : vector<16x128xf32>
    %450 = vector.extract_strided_slice %431 {offsets = [0, 384], sizes = [16, 128], strides = [1, 1]} : vector<16x512xf32> to vector<16x128xf32>
    %cst_151 = arith.constant 5.000000e-01 : f32
    %451 = vector.broadcast %cst_151 : f32 to vector<16x128xf32>
    %452 = arith.mulf %451, %450 : vector<16x128xf32>
    %453 = math.tanh %452 : vector<16x128xf32>
    %cst_152 = arith.constant 5.000000e-01 : f32
    %454 = vector.broadcast %cst_152 : f32 to vector<16x128xf32>
    %455 = arith.mulf %454, %453 : vector<16x128xf32>
    %cst_153 = arith.constant 5.000000e-01 : f32
    %456 = vector.broadcast %cst_153 : f32 to vector<16x128xf32>
    %457 = arith.addf %455, %456 : vector<16x128xf32>
    %458 = arith.mulf %447, %385 : vector<16x128xf32>
    %459 = arith.mulf %439, %449 : vector<16x128xf32>
    %460 = arith.addf %458, %459 : vector<16x128xf32>
    %461 = math.tanh %460 : vector<16x128xf32>
    %462 = arith.mulf %457, %461 : vector<16x128xf32>
    %c6_i32 = arith.constant 6 : i32
    %463 = arith.index_cast %c6_i32 : i32 to index
    %c0_154 = arith.constant 0 : index
    %c0_155 = arith.constant 0 : index
    %464 = vector.load %arg2[%463, %c0_154, %c0_155] : memref<8x16x512xbf16, #tpu.memory_space<vmem>>, vector<1x16x512xbf16>
    %465 = vector.shape_cast %464 : vector<1x16x512xbf16> to vector<16x512xbf16>
    %466 = arith.extf %465 : vector<16x512xbf16> to vector<16x512xf32>
    %467 = arith.truncf %425 : vector<16x128xf32> to vector<16x128xbf16>
    %cst_156 = arith.constant dense<0.000000e+00> : vector<16x512xf32>
    %468 = tpu.matmul %467, %3, %cst_156 {dimension_numbers = #tpu.dot_dimension_numbers<[1], [0], [0], [1], [0, 0, 1, 1], [], []>} : vector<16x128xbf16>, vector<128x512xbf16>, vector<16x512xf32> -> vector<16x512xf32>
    %469 = arith.addf %466, %468 : vector<16x512xf32>
    %470 = vector.extract_strided_slice %469 {offsets = [0, 0], sizes = [16, 128], strides = [1, 1]} : vector<16x512xf32> to vector<16x128xf32>
    %cst_157 = arith.constant 5.000000e-01 : f32
    %471 = vector.broadcast %cst_157 : f32 to vector<16x128xf32>
    %472 = arith.mulf %471, %470 : vector<16x128xf32>
    %473 = math.tanh %472 : vector<16x128xf32>
    %cst_158 = arith.constant 5.000000e-01 : f32
    %474 = vector.broadcast %cst_158 : f32 to vector<16x128xf32>
    %475 = arith.mulf %474, %473 : vector<16x128xf32>
    %cst_159 = arith.constant 5.000000e-01 : f32
    %476 = vector.broadcast %cst_159 : f32 to vector<16x128xf32>
    %477 = arith.addf %475, %476 : vector<16x128xf32>
    %478 = vector.extract_strided_slice %469 {offsets = [0, 128], sizes = [16, 128], strides = [1, 1]} : vector<16x512xf32> to vector<16x128xf32>
    %cst_160 = arith.constant 5.000000e-01 : f32
    %479 = vector.broadcast %cst_160 : f32 to vector<16x128xf32>
    %480 = arith.mulf %479, %478 : vector<16x128xf32>
    %481 = math.tanh %480 : vector<16x128xf32>
    %cst_161 = arith.constant 5.000000e-01 : f32
    %482 = vector.broadcast %cst_161 : f32 to vector<16x128xf32>
    %483 = arith.mulf %482, %481 : vector<16x128xf32>
    %cst_162 = arith.constant 5.000000e-01 : f32
    %484 = vector.broadcast %cst_162 : f32 to vector<16x128xf32>
    %485 = arith.addf %483, %484 : vector<16x128xf32>
    %486 = vector.extract_strided_slice %469 {offsets = [0, 256], sizes = [16, 128], strides = [1, 1]} : vector<16x512xf32> to vector<16x128xf32>
    %487 = math.tanh %486 : vector<16x128xf32>
    %488 = vector.extract_strided_slice %469 {offsets = [0, 384], sizes = [16, 128], strides = [1, 1]} : vector<16x512xf32> to vector<16x128xf32>
    %cst_163 = arith.constant 5.000000e-01 : f32
    %489 = vector.broadcast %cst_163 : f32 to vector<16x128xf32>
    %490 = arith.mulf %489, %488 : vector<16x128xf32>
    %491 = math.tanh %490 : vector<16x128xf32>
    %cst_164 = arith.constant 5.000000e-01 : f32
    %492 = vector.broadcast %cst_164 : f32 to vector<16x128xf32>
    %493 = arith.mulf %492, %491 : vector<16x128xf32>
    %cst_165 = arith.constant 5.000000e-01 : f32
    %494 = vector.broadcast %cst_165 : f32 to vector<16x128xf32>
    %495 = arith.addf %493, %494 : vector<16x128xf32>
    %496 = arith.mulf %485, %423 : vector<16x128xf32>
    %497 = arith.mulf %477, %487 : vector<16x128xf32>
    %498 = arith.addf %496, %497 : vector<16x128xf32>
    %499 = math.tanh %498 : vector<16x128xf32>
    %500 = arith.mulf %495, %499 : vector<16x128xf32>
    %501 = arith.truncf %500 : vector<16x128xf32> to vector<16x128xbf16>
    %cst_166 = arith.constant dense<0.000000e+00> : vector<16x512xf32>
    %502 = tpu.matmul %501, %4, %cst_166 {dimension_numbers = #tpu.dot_dimension_numbers<[1], [0], [0], [1], [0, 0, 1, 1], [], []>} : vector<16x128xbf16>, vector<128x512xbf16>, vector<16x512xf32> -> vector<16x512xf32>
    %503 = arith.truncf %462 : vector<16x128xf32> to vector<16x128xbf16>
    %cst_167 = arith.constant dense<0.000000e+00> : vector<16x512xf32>
    %504 = tpu.matmul %503, %5, %cst_167 {dimension_numbers = #tpu.dot_dimension_numbers<[1], [0], [0], [1], [0, 0, 1, 1], [], []>} : vector<16x128xbf16>, vector<128x512xbf16>, vector<16x512xf32> -> vector<16x512xf32>
    %505 = arith.addf %502, %504 : vector<16x512xf32>
    %506 = arith.addf %505, %8 : vector<16x512xf32>
    %507 = vector.extract_strided_slice %506 {offsets = [0, 0], sizes = [16, 128], strides = [1, 1]} : vector<16x512xf32> to vector<16x128xf32>
    %cst_168 = arith.constant 5.000000e-01 : f32
    %508 = vector.broadcast %cst_168 : f32 to vector<16x128xf32>
    %509 = arith.mulf %508, %507 : vector<16x128xf32>
    %510 = math.tanh %509 : vector<16x128xf32>
    %cst_169 = arith.constant 5.000000e-01 : f32
    %511 = vector.broadcast %cst_169 : f32 to vector<16x128xf32>
    %512 = arith.mulf %511, %510 : vector<16x128xf32>
    %cst_170 = arith.constant 5.000000e-01 : f32
    %513 = vector.broadcast %cst_170 : f32 to vector<16x128xf32>
    %514 = arith.addf %512, %513 : vector<16x128xf32>
    %515 = vector.extract_strided_slice %506 {offsets = [0, 128], sizes = [16, 128], strides = [1, 1]} : vector<16x512xf32> to vector<16x128xf32>
    %cst_171 = arith.constant 5.000000e-01 : f32
    %516 = vector.broadcast %cst_171 : f32 to vector<16x128xf32>
    %517 = arith.mulf %516, %515 : vector<16x128xf32>
    %518 = math.tanh %517 : vector<16x128xf32>
    %cst_172 = arith.constant 5.000000e-01 : f32
    %519 = vector.broadcast %cst_172 : f32 to vector<16x128xf32>
    %520 = arith.mulf %519, %518 : vector<16x128xf32>
    %cst_173 = arith.constant 5.000000e-01 : f32
    %521 = vector.broadcast %cst_173 : f32 to vector<16x128xf32>
    %522 = arith.addf %520, %521 : vector<16x128xf32>
    %523 = vector.extract_strided_slice %506 {offsets = [0, 256], sizes = [16, 128], strides = [1, 1]} : vector<16x512xf32> to vector<16x128xf32>
    %524 = math.tanh %523 : vector<16x128xf32>
    %525 = vector.extract_strided_slice %506 {offsets = [0, 384], sizes = [16, 128], strides = [1, 1]} : vector<16x512xf32> to vector<16x128xf32>
    %cst_174 = arith.constant 5.000000e-01 : f32
    %526 = vector.broadcast %cst_174 : f32 to vector<16x128xf32>
    %527 = arith.mulf %526, %525 : vector<16x128xf32>
    %528 = math.tanh %527 : vector<16x128xf32>
    %cst_175 = arith.constant 5.000000e-01 : f32
    %529 = vector.broadcast %cst_175 : f32 to vector<16x128xf32>
    %530 = arith.mulf %529, %528 : vector<16x128xf32>
    %cst_176 = arith.constant 5.000000e-01 : f32
    %531 = vector.broadcast %cst_176 : f32 to vector<16x128xf32>
    %532 = arith.addf %530, %531 : vector<16x128xf32>
    %533 = arith.mulf %522, %460 : vector<16x128xf32>
    %534 = arith.mulf %514, %524 : vector<16x128xf32>
    %535 = arith.addf %533, %534 : vector<16x128xf32>
    %536 = math.tanh %535 : vector<16x128xf32>
    %537 = arith.mulf %532, %536 : vector<16x128xf32>
    %c7_i32 = arith.constant 7 : i32
    %538 = arith.index_cast %c7_i32 : i32 to index
    %c0_177 = arith.constant 0 : index
    %c0_178 = arith.constant 0 : index
    %539 = vector.load %arg2[%538, %c0_177, %c0_178] : memref<8x16x512xbf16, #tpu.memory_space<vmem>>, vector<1x16x512xbf16>
    %540 = vector.shape_cast %539 : vector<1x16x512xbf16> to vector<16x512xbf16>
    %541 = arith.extf %540 : vector<16x512xbf16> to vector<16x512xf32>
    %542 = arith.truncf %500 : vector<16x128xf32> to vector<16x128xbf16>
    %cst_179 = arith.constant dense<0.000000e+00> : vector<16x512xf32>
    %543 = tpu.matmul %542, %3, %cst_179 {dimension_numbers = #tpu.dot_dimension_numbers<[1], [0], [0], [1], [0, 0, 1, 1], [], []>} : vector<16x128xbf16>, vector<128x512xbf16>, vector<16x512xf32> -> vector<16x512xf32>
    %544 = arith.addf %541, %543 : vector<16x512xf32>
    %545 = vector.extract_strided_slice %544 {offsets = [0, 0], sizes = [16, 128], strides = [1, 1]} : vector<16x512xf32> to vector<16x128xf32>
    %cst_180 = arith.constant 5.000000e-01 : f32
    %546 = vector.broadcast %cst_180 : f32 to vector<16x128xf32>
    %547 = arith.mulf %546, %545 : vector<16x128xf32>
    %548 = math.tanh %547 : vector<16x128xf32>
    %cst_181 = arith.constant 5.000000e-01 : f32
    %549 = vector.broadcast %cst_181 : f32 to vector<16x128xf32>
    %550 = arith.mulf %549, %548 : vector<16x128xf32>
    %cst_182 = arith.constant 5.000000e-01 : f32
    %551 = vector.broadcast %cst_182 : f32 to vector<16x128xf32>
    %552 = arith.addf %550, %551 : vector<16x128xf32>
    %553 = vector.extract_strided_slice %544 {offsets = [0, 128], sizes = [16, 128], strides = [1, 1]} : vector<16x512xf32> to vector<16x128xf32>
    %cst_183 = arith.constant 5.000000e-01 : f32
    %554 = vector.broadcast %cst_183 : f32 to vector<16x128xf32>
    %555 = arith.mulf %554, %553 : vector<16x128xf32>
    %556 = math.tanh %555 : vector<16x128xf32>
    %cst_184 = arith.constant 5.000000e-01 : f32
    %557 = vector.broadcast %cst_184 : f32 to vector<16x128xf32>
    %558 = arith.mulf %557, %556 : vector<16x128xf32>
    %cst_185 = arith.constant 5.000000e-01 : f32
    %559 = vector.broadcast %cst_185 : f32 to vector<16x128xf32>
    %560 = arith.addf %558, %559 : vector<16x128xf32>
    %561 = vector.extract_strided_slice %544 {offsets = [0, 256], sizes = [16, 128], strides = [1, 1]} : vector<16x512xf32> to vector<16x128xf32>
    %562 = math.tanh %561 : vector<16x128xf32>
    %563 = vector.extract_strided_slice %544 {offsets = [0, 384], sizes = [16, 128], strides = [1, 1]} : vector<16x512xf32> to vector<16x128xf32>
    %cst_186 = arith.constant 5.000000e-01 : f32
    %564 = vector.broadcast %cst_186 : f32 to vector<16x128xf32>
    %565 = arith.mulf %564, %563 : vector<16x128xf32>
    %566 = math.tanh %565 : vector<16x128xf32>
    %cst_187 = arith.constant 5.000000e-01 : f32
    %567 = vector.broadcast %cst_187 : f32 to vector<16x128xf32>
    %568 = arith.mulf %567, %566 : vector<16x128xf32>
    %cst_188 = arith.constant 5.000000e-01 : f32
    %569 = vector.broadcast %cst_188 : f32 to vector<16x128xf32>
    %570 = arith.addf %568, %569 : vector<16x128xf32>
    %571 = arith.mulf %560, %498 : vector<16x128xf32>
    %572 = arith.mulf %552, %562 : vector<16x128xf32>
    %573 = arith.addf %571, %572 : vector<16x128xf32>
    %574 = math.tanh %573 : vector<16x128xf32>
    %575 = arith.mulf %570, %574 : vector<16x128xf32>
    %576 = arith.truncf %575 : vector<16x128xf32> to vector<16x128xbf16>
    %cst_189 = arith.constant dense<0.000000e+00> : vector<16x512xf32>
    %577 = tpu.matmul %576, %4, %cst_189 {dimension_numbers = #tpu.dot_dimension_numbers<[1], [0], [0], [1], [0, 0, 1, 1], [], []>} : vector<16x128xbf16>, vector<128x512xbf16>, vector<16x512xf32> -> vector<16x512xf32>
    %578 = arith.truncf %537 : vector<16x128xf32> to vector<16x128xbf16>
    %cst_190 = arith.constant dense<0.000000e+00> : vector<16x512xf32>
    %579 = tpu.matmul %578, %5, %cst_190 {dimension_numbers = #tpu.dot_dimension_numbers<[1], [0], [0], [1], [0, 0, 1, 1], [], []>} : vector<16x128xbf16>, vector<128x512xbf16>, vector<16x512xf32> -> vector<16x512xf32>
    %580 = arith.addf %577, %579 : vector<16x512xf32>
    %581 = arith.addf %580, %8 : vector<16x512xf32>
    %582 = vector.extract_strided_slice %581 {offsets = [0, 0], sizes = [16, 128], strides = [1, 1]} : vector<16x512xf32> to vector<16x128xf32>
    %cst_191 = arith.constant 5.000000e-01 : f32
    %583 = vector.broadcast %cst_191 : f32 to vector<16x128xf32>
    %584 = arith.mulf %583, %582 : vector<16x128xf32>
    %585 = math.tanh %584 : vector<16x128xf32>
    %cst_192 = arith.constant 5.000000e-01 : f32
    %586 = vector.broadcast %cst_192 : f32 to vector<16x128xf32>
    %587 = arith.mulf %586, %585 : vector<16x128xf32>
    %cst_193 = arith.constant 5.000000e-01 : f32
    %588 = vector.broadcast %cst_193 : f32 to vector<16x128xf32>
    %589 = arith.addf %587, %588 : vector<16x128xf32>
    %590 = vector.extract_strided_slice %581 {offsets = [0, 128], sizes = [16, 128], strides = [1, 1]} : vector<16x512xf32> to vector<16x128xf32>
    %cst_194 = arith.constant 5.000000e-01 : f32
    %591 = vector.broadcast %cst_194 : f32 to vector<16x128xf32>
    %592 = arith.mulf %591, %590 : vector<16x128xf32>
    %593 = math.tanh %592 : vector<16x128xf32>
    %cst_195 = arith.constant 5.000000e-01 : f32
    %594 = vector.broadcast %cst_195 : f32 to vector<16x128xf32>
    %595 = arith.mulf %594, %593 : vector<16x128xf32>
    %cst_196 = arith.constant 5.000000e-01 : f32
    %596 = vector.broadcast %cst_196 : f32 to vector<16x128xf32>
    %597 = arith.addf %595, %596 : vector<16x128xf32>
    %598 = vector.extract_strided_slice %581 {offsets = [0, 256], sizes = [16, 128], strides = [1, 1]} : vector<16x512xf32> to vector<16x128xf32>
    %599 = math.tanh %598 : vector<16x128xf32>
    %600 = vector.extract_strided_slice %581 {offsets = [0, 384], sizes = [16, 128], strides = [1, 1]} : vector<16x512xf32> to vector<16x128xf32>
    %cst_197 = arith.constant 5.000000e-01 : f32
    %601 = vector.broadcast %cst_197 : f32 to vector<16x128xf32>
    %602 = arith.mulf %601, %600 : vector<16x128xf32>
    %603 = math.tanh %602 : vector<16x128xf32>
    %cst_198 = arith.constant 5.000000e-01 : f32
    %604 = vector.broadcast %cst_198 : f32 to vector<16x128xf32>
    %605 = arith.mulf %604, %603 : vector<16x128xf32>
    %cst_199 = arith.constant 5.000000e-01 : f32
    %606 = vector.broadcast %cst_199 : f32 to vector<16x128xf32>
    %607 = arith.addf %605, %606 : vector<16x128xf32>
    %608 = arith.mulf %597, %535 : vector<16x128xf32>
    %609 = arith.mulf %589, %599 : vector<16x128xf32>
    %610 = arith.addf %608, %609 : vector<16x128xf32>
    %611 = math.tanh %610 : vector<16x128xf32>
    %612 = arith.mulf %607, %611 : vector<16x128xf32>
    %c8_i32 = arith.constant 8 : i32
    %c0_200 = arith.constant 0 : index
    %c0_201 = arith.constant 0 : index
    %613 = vector.load %arg10[%c0_200, %c0_201] : memref<16x128xf32, #tpu.memory_space<vmem>>, vector<16x128xf32>
    tpu.vector_store %arg10[%c0_200, %c0_201], %575 {strides = array<i32>} : memref<16x128xf32, #tpu.memory_space<vmem>>, vector<16x128xf32>,
    %c0_202 = arith.constant 0 : index
    %c0_203 = arith.constant 0 : index
    %614 = vector.load %arg11[%c0_202, %c0_203] : memref<16x128xf32, #tpu.memory_space<vmem>>, vector<16x128xf32>
    tpu.vector_store %arg11[%c0_202, %c0_203], %573 {strides = array<i32>} : memref<16x128xf32, #tpu.memory_space<vmem>>, vector<16x128xf32>,
    %c0_204 = arith.constant 0 : index
    %c0_205 = arith.constant 0 : index
    %615 = vector.load %arg12[%c0_204, %c0_205] : memref<16x128xf32, #tpu.memory_space<vmem>>, vector<16x128xf32>
    tpu.vector_store %arg12[%c0_204, %c0_205], %612 {strides = array<i32>} : memref<16x128xf32, #tpu.memory_space<vmem>>, vector<16x128xf32>,
    %c0_206 = arith.constant 0 : index
    %c0_207 = arith.constant 0 : index
    %616 = vector.load %arg13[%c0_206, %c0_207] : memref<16x128xf32, #tpu.memory_space<vmem>>, vector<16x128xf32>
    tpu.vector_store %arg13[%c0_206, %c0_207], %610 {strides = array<i32>} : memref<16x128xf32, #tpu.memory_space<vmem>>, vector<16x128xf32>,
    %c0_i32_208 = arith.constant 0 : i32
    %617 = arith.cmpi eq, %arg1, %c0_i32_208 : i32
    %618 = arith.extui %617 : i1 to i32
    %c0_i32_209 = arith.constant 0 : i32
    %619 = arith.cmpi ne, %618, %c0_i32_209 : i32
    scf.if %619 {
      %c0_210 = arith.constant 0 : index
      %c0_211 = arith.constant 0 : index
      %620 = vector.load %arg7[%c0_210, %c0_211] : memref<1x128xf32, #tpu.memory_space<vmem>>, vector<1x128xf32>
      %621 = vector.broadcast %620 : vector<1x128xf32> to vector<16x128xf32>
      %622 = arith.mulf %612, %621 : vector<16x128xf32>
      %cst_212 = arith.constant dense<0.000000e+00> : vector<16xf32>
      %623 = vector.multi_reduction <add>, %622, %cst_212 [1] : vector<16x128xf32> to vector<16xf32>
      %624 = vector.shape_cast %623 : vector<16xf32> to vector<16x1xf32>
      %c0_213 = arith.constant 0 : index
      %c0_214 = arith.constant 0 : index
      %625 = vector.load %arg8[%c0_213, %c0_214] : memref<1x1xf32, #tpu.memory_space<vmem>>, vector<1x1xf32>
      %626 = vector.broadcast %625 : vector<1x1xf32> to vector<16x1xf32>
      %627 = arith.addf %624, %626 : vector<16x1xf32>
      %c0_215 = arith.constant 0 : index
      %c0_216 = arith.constant 0 : index
      %628 = vector.load %arg9[%c0_215, %c0_216] : memref<16x1xf32, #tpu.memory_space<vmem>>, vector<16x1xf32>
      tpu.vector_store %arg9[%c0_215, %c0_216], %627 {strides = array<i32>} : memref<16x1xf32, #tpu.memory_space<vmem>>, vector<16x1xf32>,
    } else {
    }
    return
  }
  func.func @transform_0(%arg0: i32, %arg1: i32) -> (i32, i32, i32) {
    %c0_i32 = arith.constant 0 : i32
    %c0_i32_0 = arith.constant 0 : i32
    return %arg1, %arg0, %c0_i32 : i32, i32, i32
  }
  func.func @transform_1(%arg0: i32, %arg1: i32) -> (i32, i32) {
    %c0_i32 = arith.constant 0 : i32
    %c0_i32_0 = arith.constant 0 : i32
    %c0_i32_1 = arith.constant 0 : i32
    return %c0_i32, %c0_i32_0 : i32, i32
  }
  func.func @transform_2(%arg0: i32, %arg1: i32) -> (i32, i32) {
    %c0_i32 = arith.constant 0 : i32
    %c0_i32_0 = arith.constant 0 : i32
    %c0_i32_1 = arith.constant 0 : i32
    return %c0_i32, %c0_i32_0 : i32, i32
  }
  func.func @transform_3(%arg0: i32, %arg1: i32) -> (i32, i32) {
    %c0_i32 = arith.constant 0 : i32
    %c0_i32_0 = arith.constant 0 : i32
    %c0_i32_1 = arith.constant 0 : i32
    return %c0_i32, %c0_i32_0 : i32, i32
  }
  func.func @transform_4(%arg0: i32, %arg1: i32) -> (i32, i32) {
    %c0_i32 = arith.constant 0 : i32
    %c0_i32_0 = arith.constant 0 : i32
    %c0_i32_1 = arith.constant 0 : i32
    return %c0_i32, %c0_i32_0 : i32, i32
  }
  func.func @transform_5(%arg0: i32, %arg1: i32) -> (i32, i32) {
    %c0_i32 = arith.constant 0 : i32
    %c0_i32_0 = arith.constant 0 : i32
    %c0_i32_1 = arith.constant 0 : i32
    return %c0_i32, %c0_i32_0 : i32, i32
  }
  func.func @transform_6(%arg0: i32, %arg1: i32) -> (i32, i32) {
    %c0_i32 = arith.constant 0 : i32
    %c0_i32_0 = arith.constant 0 : i32
    %c0_i32_1 = arith.constant 0 : i32
    return %c0_i32, %c0_i32_0 : i32, i32
  }
  func.func @transform_7(%arg0: i32, %arg1: i32) -> (i32, i32) {
    %c0_i32 = arith.constant 0 : i32
    %c0_i32_0 = arith.constant 0 : i32
    return %arg0, %c0_i32 : i32, i32
  }
}

</mosaic_0001>

<bundles_post_ra>
// kernel: news_lstm_forward.1
= control target key start
LH: loop header
LB: loop body
LE: loop exit
PB: predicated region body
PF: predicated region fallthrough
CT: control target
= control target key end

     0   :  { %v7573_v1 = vmov 0   ;;  %v7575_v40 = vmov 0.0|0.0   ;;  %vm41_vm0 = vcmask 7168   ;;  %s7565_s1 = inlined_call_operand.vmem [shape: bf16[128,512], index: 1, kind: input, shape index: {}]   ;;  %s7566_s3 = inlined_call_operand.vmem [shape: bf16[128,512], index: 3, kind: input, shape index: {}]   ;;  %s7567_s2 = inlined_call_operand.vmem [shape: bf16[128,512], index: 2, kind: input, shape index: {}]   ;;  %s7568_s0 = inlined_call_operand.vmem [shape: bf16[8,16,512], index: 0, kind: input, shape index: {}]   ;;  %s7569_s4 = inlined_call_operand.vmem [shape: f32[1,512], index: 4, kind: input, shape index: {}]   ;;  %s7570_s6 = inlined_call_operand.<no memory space> [shape: f32[1,1], index: 6, kind: input, shape index: {}]   ;;  %s7571_s7 = inlined_call_operand.vmem [shape: f32[16,1], index: 7, kind: output, shape index: {}]   ;;  %s7572_s5 = inlined_call_operand.vmem [shape: f32[1,128], index: 5, kind: input, shape index: {}]  }
   0x1   :  { %v4505_v0 = vld [vmem:[%s7565_s1 + $0xe4] ss:$16 sps:$4 sm:$0xff]   ;;  %375 = vmatprep.mubr.bf16.mxu0 %v7573_v1  ;;  %418 = vmatprep.mubr.bf16.mxu1 %v7573_v1  ;;  %v4512_v2 = vld [vmem:[%s7565_s1 + $0xe0] ss:$16 sps:$4 sm:$0xff]   ;;  %v4518_v3 = vld [vmem:[%s7565_s1 + $0xec] ss:$16 sps:$4 sm:$0xff]  }
   0x2   :  { %343 = vmatprep.subr.bf16.mxu0 %v4505_v0  ;;  %v4523_v4 = vld [vmem:[%s7565_s1 + $0xe8] ss:$16 sps:$4 sm:$0xff]   ;;  %v4529_v5 = vld [vmem:[%s7565_s1 + $0xc4] ss:$16 sps:$4 sm:$0xff]   ;;  %v4534_v6 = vld [vmem:[%s7565_s1 + $0xc0] ss:$16 sps:$4 sm:$0xff]   ;;  %386 = vmatprep.subr.bf16.mxu1 %v4518_v3 }
   0x3   :  { %344 = vmatpush1.bf16.msra.mxu0 %v4512_v2  ;;  %v4540_v7 = vld [vmem:[%s7565_s1 + $0xcc] ss:$16 sps:$4 sm:$0xff]   ;;  %387 = vmatpush1.bf16.msra.mxu1 %v4523_v4  ;;  %v4547_v8 = vld [vmem:[%s7565_s1 + $0xc8] ss:$16 sps:$4 sm:$0xff]   ;;  %v4553_v9 = vld [vmem:[%s7565_s1 + $0xa4] ss:$16 sps:$4 sm:$0xff]  }
   0x4   :  { %345 = vmatprep.subr.bf16.mxu0 %v4529_v5  ;;  %388 = vmatprep.subr.bf16.mxu1 %v4540_v7  ;;  %v4559_v10 = vld [vmem:[%s7565_s1 + $0xa0] ss:$16 sps:$4 sm:$0xff]   ;;  %v4564_v11 = vld [vmem:[%s7565_s1 + $0xac] ss:$16 sps:$4 sm:$0xff]   ;;  %v4570_v12 = vld [vmem:[%s7565_s1 + $0x84] ss:$16 sps:$4 sm:$0xff]  }
   0x5   :  { %v4576_v13 = vld [vmem:[%s7565_s1 + $0xa8] ss:$16 sps:$4 sm:$0xff]   ;;  %v4582_v14 = vld [vmem:[%s7565_s1 + $0x8c] ss:$16 sps:$4 sm:$0xff]   ;;  %v4588_v15 = vld [vmem:[%s7565_s1 + $0x80] ss:$16 sps:$4 sm:$0xff]  }
   0x6   :  { %v4594_v16 = vld [vmem:[%s7565_s1 + $0x64] ss:$16 sps:$4 sm:$0xff]   ;;  %v4600_v17 = vld [vmem:[%s7565_s1 + $0x88] ss:$16 sps:$4 sm:$0xff]   ;;  %v4606_v18 = vld [vmem:[%s7565_s1 + $0x6c] ss:$16 sps:$4 sm:$0xff]  }
   0x7   :  { %346 = vmatpush1.bf16.msra.mxu0 %v4534_v6  ;;  %389 = vmatpush1.bf16.msra.mxu1 %v4547_v8  ;;  %v4612_v19 = vld [vmem:[%s7565_s1 + $0x60] ss:$16 sps:$4 sm:$0xff]   ;;  %v4618_v20 = vld [vmem:[%s7565_s1 + $0x44] ss:$16 sps:$4 sm:$0xff]   ;;  %v4624_v21 = vld [vmem:[%s7565_s1 + $0x68] ss:$16 sps:$4 sm:$0xff]  }
   0x8   :  { %347 = vmatprep.subr.bf16.mxu0 %v4553_v9  ;;  %390 = vmatprep.subr.bf16.mxu1 %v4564_v11  ;;  %v4630_v22 = vld [vmem:[%s7565_s1 + $0x4c] ss:$16 sps:$4 sm:$0xff]   ;;  %v4636_v23 = vld [vmem:[%s7565_s1 + $0x40] ss:$16 sps:$4 sm:$0xff]   ;;  %v4642_v24 = vld [vmem:[%s7565_s1 + $0x24] ss:$16 sps:$4 sm:$0xff]  }
   0x9   :  { %v4648_v25 = vld [vmem:[%s7565_s1 + $0x48] ss:$16 sps:$4 sm:$0xff]   ;;  %v4654_v26 = vld [vmem:[%s7565_s1 + $0x2c] ss:$16 sps:$4 sm:$0xff]   ;;  %v4660_v27 = vld [vmem:[%s7565_s1 + $0x20] ss:$16 sps:$4 sm:$0xff]  }
   0xa   :  { %v4666_v28 = vld [vmem:[%s7565_s1 + $0x4] ss:$16 sps:$4 sm:$0xff]   ;;  %v4672_v29 = vld [vmem:[%s7565_s1 + $0x28] ss:$16 sps:$4 sm:$0xff]   ;;  %v4678_v30 = vld [vmem:[%s7565_s1 + $0xc] ss:$16 sps:$4 sm:$0xff]  }
   0xb   :  { %348 = vmatpush1.bf16.msra.mxu0 %v4559_v10  ;;  %391 = vmatpush1.bf16.msra.mxu1 %v4576_v13  ;;  %v4684_v31 = vld [vmem:[%s7565_s1] ss:$16 sps:$4 sm:$0xff]   ;;  %v4690_v32 = vld [vmem:[%s7566_s3 + $0xe4] ss:$16 sps:$4 sm:$0xff]   ;;  %v4696_v33 = vld [vmem:[%s7565_s1 + $0x8] ss:$16 sps:$4 sm:$0xff]  }
   0xc   :  { %349 = vmatprep.subr.bf16.mxu0 %v4570_v12  ;;  %392 = vmatprep.subr.bf16.mxu1 %v4582_v14  ;;  %v4702_v34 = vld [vmem:[%s7566_s3 + $0xec] ss:$16 sps:$4 sm:$0xff]   ;;  %v4708_v35 = vld [vmem:[%s7566_s3 + $0xe0] ss:$16 sps:$4 sm:$0xff]   ;;  %v4714_v36 = vld [vmem:[%s7566_s3 + $0xc4] ss:$16 sps:$4 sm:$0xff]  }
   0xd   :  { %v4720_v37 = vld [vmem:[%s7566_s3 + $0xc0] ss:$16 sps:$4 sm:$0xff]   ;;  %v4725_v38 = vld [vmem:[%s7566_s3 + $0xe8] ss:$16 sps:$4 sm:$0xff]   ;;  %v4730_v39 = vld [vmem:[%s7566_s3 + $0xcc] ss:$16 sps:$4 sm:$0xff]  }
   0xe   :  { %v4737_v41 = vld [vmem:[%s7566_s3 + $0xa4] ss:$16 sps:$4 sm:$0xff]   ;;  %v4743_v42 = vld [vmem:[%s7566_s3 + $0xc8] ss:$16 sps:$4 sm:$0xff]   ;;  %v4754_v43 = vld [vmem:[%s7566_s3 + $0xac] ss:$16 sps:$4 sm:$0xff]  }
   0xf   :  { %350 = vmatpush1.bf16.msra.mxu0 %v4588_v15  ;;  %393 = vmatpush1.bf16.msra.mxu1 %v4600_v17  ;;  %v4760_v44 = vld [vmem:[%s7566_s3 + $0xa0] ss:$16 sps:$4 sm:$0xff]   ;;  %v4766_v45 = vld [vmem:[%s7566_s3 + $0x84] ss:$16 sps:$4 sm:$0xff]   ;;  %v4772_v46 = vld [vmem:[%s7566_s3 + $0xa8] ss:$16 sps:$4 sm:$0xff]  }
  0x10   :  { %351 = vmatprep.subr.bf16.mxu0 %v4594_v16  ;;  %394 = vmatprep.subr.bf16.mxu1 %v4606_v18  ;;  %7769 = vst [vmem:[#allocation7_spill] sm:$0xff] %v4760_v44  ;;  %7770 = vst [vmem:[#allocation8_spill] sm:$0xff] %v4766_v45  ;;  %v4778_v47 = vld [vmem:[%s7566_s3 + $0x8c] ss:$16 sps:$4 sm:$0xff]   ;;  %v4784_v48 = vld [vmem:[%s7566_s3 + $0x80] ss:$16 sps:$4 sm:$0xff]  }
  0x11   :  { %7771 = vst [vmem:[#allocation9_spill] sm:$0xff] %v4772_v46  ;;  %7772 = vst [vmem:[#allocation10_spill] sm:$0xff] %v4778_v47  ;;  %v4790_v49 = vld [vmem:[%s7566_s3 + $0x64] ss:$16 sps:$4 sm:$0xff]   ;;  %v4796_v50 = vld [vmem:[%s7566_s3 + $0x88] ss:$16 sps:$4 sm:$0xff]  }
  0x12   :  { %7773 = vst [vmem:[#allocation11_spill] sm:$0xff] %v4784_v48  ;;  %7774 = vst [vmem:[#allocation12_spill] sm:$0xff] %v4790_v49  ;;  %v4803_v51 = vld [vmem:[%s7566_s3 + $0x60] ss:$16 sps:$4 sm:$0xff]   ;;  %v4811_v52 = vld [vmem:[%s7566_s3 + $0x44] ss:$16 sps:$4 sm:$0xff]  }
  0x13   :  { %352 = vmatpush1.bf16.msra.mxu0 %v4612_v19  ;;  %395 = vmatpush1.bf16.msra.mxu1 %v4624_v21  ;;  %7775 = vst [vmem:[#allocation13_spill] sm:$0xff] %v4796_v50  ;;  %7776 = vst [vmem:[#allocation14_spill] sm:$0xff] %v4803_v51  ;;  %v4816_v53 = vld [vmem:[%s7566_s3 + $0x6c] ss:$16 sps:$4 sm:$0xff]   ;;  %v4821_v54 = vld [vmem:[%s7566_s3 + $0x40] ss:$16 sps:$4 sm:$0xff]  }
  0x14   :  { %353 = vmatprep.subr.bf16.mxu0 %v4618_v20  ;;  %396 = vmatprep.subr.bf16.mxu1 %v4630_v22  ;;  %7777 = vst [vmem:[#allocation15_spill] sm:$0xff] %v4811_v52  ;;  %7778 = vst [vmem:[#allocation16_spill] sm:$0xff] %v4816_v53  ;;  %v4826_v55 = vld [vmem:[%s7566_s3 + $0x68] ss:$16 sps:$4 sm:$0xff]   ;;  %v4835_v56 = vld [vmem:[%s7566_s3 + $0x24] ss:$16 sps:$4 sm:$0xff]  }
  0x15   :  { %7779 = vst [vmem:[#allocation17_spill] sm:$0xff] %v4821_v54  ;;  %7780 = vst [vmem:[#allocation18_spill] sm:$0xff] %v4826_v55  ;;  %v4840_v57 = vld [vmem:[%s7566_s3 + $0x4c] ss:$16 sps:$4 sm:$0xff]   ;;  %v4845_v58 = vld [vmem:[%s7566_s3 + $0x20] ss:$16 sps:$4 sm:$0xff]  }
  0x16   :  { %7781 = vst [vmem:[#allocation19_spill] sm:$0xff] %v4835_v56  ;;  %7782 = vst [vmem:[#allocation20_spill] sm:$0xff] %v4840_v57  ;;  %v4850_v59 = vld [vmem:[%s7566_s3 + $0x48] ss:$16 sps:$4 sm:$0xff]   ;;  %v4859_v60 = vld [vmem:[%s7566_s3 + $0x4] ss:$16 sps:$4 sm:$0xff]  }
  0x17   :  { %354 = vmatpush1.bf16.msra.mxu0 %v4636_v23  ;;  %397 = vmatpush1.bf16.msra.mxu1 %v4648_v25  ;;  %7783 = vst [vmem:[#allocation21_spill] sm:$0xff] %v4845_v58  ;;  %7784 = vst [vmem:[#allocation22_spill] sm:$0xff] %v4850_v59  ;;  %v4864_v61 = vld [vmem:[%s7566_s3 + $0x2c] ss:$16 sps:$4 sm:$0xff]   ;;  %v4869_v62 = vld [vmem:[%s7566_s3] ss:$16 sps:$4 sm:$0xff]  }
  0x18   :  { %355 = vmatprep.subr.bf16.mxu0 %v4642_v24  ;;  %398 = vmatprep.subr.bf16.mxu1 %v4654_v26  ;;  %7785 = vst [vmem:[#allocation23_spill] sm:$0xff] %v4859_v60  ;;  %7786 = vst [vmem:[#allocation24_spill] sm:$0xff] %v4864_v61  ;;  %v4874_v63 = vld [vmem:[%s7566_s3 + $0x28] ss:$16 sps:$4 sm:$0xff]  }
  0x19   :  { %7787 = vst [vmem:[#allocation25_spill] sm:$0xff] %v4869_v62  ;;  %7788 = vst [vmem:[#allocation26_spill] sm:$0xff] %v4874_v63 }
  0x1b   :  { %356 = vmatpush1.bf16.msra.mxu0 %v4660_v27  ;;  %399 = vmatpush1.bf16.msra.mxu1 %v4672_v29 }
  0x1c   :  { %357 = vmatprep.subr.bf16.mxu0 %v4666_v28  ;;  %400 = vmatprep.subr.bf16.mxu1 %v4678_v30 }
  0x1f   :  { %358 = vmatpush1.bf16.msra.mxu0 %v4684_v31  ;;  %401 = vmatpush1.bf16.msra.mxu1 %v4696_v33 }
  0x20   :  { %635 = vmatprep.subr.bf16.mxu0 %v4690_v32  ;;  %678 = vmatprep.subr.bf16.mxu1 %v4702_v34 }
  0x22   :  { %376 = vmatmul.mubr.bf16.vlgmr.msra.gmra.mxu0 %v7575_v40  ;;  %419 = vmatmul.mubr.bf16.vlgmr.msra.gmra.mxu1 %v7575_v40  ;;  %v4888_v40 = vld [vmem:[%s7566_s3 + $0x8] ss:$16 sps:$4 sm:$0xff]  }
  0x23   :  { %636 = vmatpush1.bf16.msra.mxu0 %v4708_v35  ;;  %667 = vmatprep.mubr.bf16.mxu0 %v7573_v1  ;;  %7790 = vst [vmem:[#allocation28_spill] sm:$0xff] %v4888_v40 }
  0x24   :  { %637 = vmatprep.subr.bf16.mxu0 %v4714_v36  ;;  %679 = vmatpush1.bf16.msra.mxu1 %v4725_v38 }
  0x25   :  { %710 = vmatprep.mubr.bf16.mxu1 %v7573_v1  ;;  %680 = vmatprep.subr.bf16.mxu1 %v4730_v39  ;;  %v4883_v1 = vld [vmem:[%s7566_s3 + $0xc] ss:$16 sps:$4 sm:$0xff]  }
  0x26   :  { %7789 = vst [vmem:[#allocation27_spill] sm:$0xff] %v4883_v1 }
  0x27   :  { %638 = vmatpush1.bf16.msra.mxu0 %v4720_v37 }
  0x28   :  { %639 = vmatprep.subr.bf16.mxu0 %v4737_v41  ;;  %681 = vmatpush1.bf16.msra.mxu1 %v4743_v42 }
  0x29   :  { %682 = vmatprep.subr.bf16.mxu1 %v4754_v43 }
  0x2b   :  { %640 = vmatpush1.bf16.msra.mxu0 %v4760_v44 }
  0x2c   :  { %641 = vmatprep.subr.bf16.mxu0 %v4766_v45  ;;  %683 = vmatpush1.bf16.msra.mxu1 %v4772_v46 }
  0x2d   :  { %684 = vmatprep.subr.bf16.mxu1 %v4778_v47 }
  0x2f   :  { %642 = vmatpush1.bf16.msra.mxu0 %v4784_v48 }
  0x30   :  { %643 = vmatprep.subr.bf16.mxu0 %v4790_v49  ;;  %685 = vmatpush1.bf16.msra.mxu1 %v4796_v50  ;;  %v173_v49 = vld [vmem:[%s7568_s0 + $0x18] sm:$0xff] }
  0x31   :  { %686 = vmatprep.subr.bf16.mxu1 %v4816_v53 }
  0x33   :  { %644 = vmatpush1.bf16.msra.mxu0 %v4803_v51 }
  0x34   :  { %645 = vmatprep.subr.bf16.mxu0 %v4811_v52  ;;  %687 = vmatpush1.bf16.msra.mxu1 %v4826_v55 }
  0x35   :  { %688 = vmatprep.subr.bf16.mxu1 %v4840_v57 }
  0x37   :  { %646 = vmatpush1.bf16.msra.mxu0 %v4821_v54 }
  0x38   :  { %647 = vmatprep.subr.bf16.mxu0 %v4835_v56  ;;  %689 = vmatpush1.bf16.msra.mxu1 %v4850_v59  ;;  %v171_v56 = vld [vmem:[%s7568_s0 + $0x8] sm:$0xff] }
  0x39   :  { %690 = vmatprep.subr.bf16.mxu1 %v4864_v61  ;;  %v4952_v61 = vld [vmem:[%s7567_s2 + $0xac] ss:$16 sps:$4 sm:$0xff]  }
  0x3a   :  { %7802 = vst [vmem:[#allocation38_spill] sm:$0xff] %v4952_v61 }
  0x3b   :  { %648 = vmatpush1.bf16.msra.mxu0 %v4845_v58  ;;  %v7791_v58 = vmov 0.0|0.0  }
  0x3c   :  { %649 = vmatprep.subr.bf16.mxu0 %v4859_v60  ;;  %691 = vmatpush1.bf16.msra.mxu1 %v4874_v63  ;;  %v7792_v60 = vmov 0   ;;  %v4902_v63 = vld [vmem:[%s7567_s2 + $0xec] ss:$16 sps:$4 sm:$0xff]  }
  0x3d   :  { %692 = vmatprep.subr.bf16.mxu1 %v4883_v1  ;;  %7794 = vst [vmem:[#allocation30_spill] sm:$0xff] %v4902_v63  ;;  %v4914_v1 = vld [vmem:[%s7567_s2 + $0xe8] ss:$16 sps:$4 sm:$0xff]  }
  0x3e   :  { %7796 = vst [vmem:[#allocation32_spill] sm:$0xff] %v4914_v1 }
  0x3f   :  { %650 = vmatpush1.bf16.msra.mxu0 %v4869_v62  ;;  %v4897_v62 = vld [vmem:[%s7567_s2 + $0xe4] ss:$16 sps:$4 sm:$0xff]  }
  0x40   :  { %693 = vmatpush1.bf16.msra.mxu1 %v4888_v40  ;;  %7793 = vst [vmem:[#allocation29_spill] sm:$0xff] %v4897_v62  ;;  %881 = vmatprep.subr.bf16.mxu0 %v4897_v62  ;;  %v4909_v40 = vld [vmem:[%s7567_s2 + $0xe0] ss:$16 sps:$4 sm:$0xff]   ;;  %v4928_v62 = vld [vmem:[%s7567_s2 + $0xcc] ss:$16 sps:$4 sm:$0xff]  }
  0x41   :  { %7795 = vst [vmem:[#allocation31_spill] sm:$0xff] %v4909_v40  ;;  %924 = vmatprep.subr.bf16.mxu1 %v4902_v63  ;;  %7798 = vst [vmem:[#allocation34_spill] sm:$0xff] %v4928_v62  ;;  %v4933_v63 = vld [vmem:[%s7567_s2 + $0xc0] ss:$16 sps:$4 sm:$0xff]  }
  0x42   :  { %668 = vmatmul.mubr.bf16.vlgmr.msra.gmra.mxu0 %v7791_v58  ;;  %7799 = vst [vmem:[#allocation35_spill] sm:$0xff] %v4933_v63 }
  0x43   :  { %913 = vmatprep.mubr.bf16.mxu0 %v7792_v60  ;;  %711 = vmatmul.mubr.bf16.vlgmr.msra.gmra.mxu1 %v7791_v58  ;;  %v4923_v58 = vld [vmem:[%s7567_s2 + $0xc4] ss:$16 sps:$4 sm:$0xff]  }
  0x44   :  { %956 = vmatprep.mubr.bf16.mxu1 %v7792_v60  ;;  %882 = vmatpush1.bf16.msra.mxu0 %v4909_v40  ;;  %7797 = vst [vmem:[#allocation33_spill] sm:$0xff] %v4923_v58  ;;  %v4938_v40 = vld [vmem:[%s7567_s2 + $0xc8] ss:$16 sps:$4 sm:$0xff]  }
  0x45   :  { %925 = vmatpush1.bf16.msra.mxu1 %v4914_v1  ;;  %7800 = vst [vmem:[#allocation36_spill] sm:$0xff] %v4938_v40  ;;  %883 = vmatprep.subr.bf16.mxu0 %v4923_v58  ;;  %v4947_v1 = vld [vmem:[%s7567_s2 + $0xa4] ss:$16 sps:$4 sm:$0xff]   ;;  %v4957_v58 = vld [vmem:[%s7567_s2 + $0xa0] ss:$16 sps:$4 sm:$0xff]  }
  0x46   :  { %926 = vmatprep.subr.bf16.mxu1 %v4928_v62  ;;  %7801 = vst [vmem:[#allocation37_spill] sm:$0xff] %v4947_v1  ;;  %7803 = vst [vmem:[#allocation39_spill] sm:$0xff] %v4957_v58  ;;  %v4976_v62 = vld [vmem:[%s7567_s2 + $0x8c] ss:$16 sps:$4 sm:$0xff]  }
  0x47   :  { %7806 = vst [vmem:[#allocation42_spill] sm:$0xff] %v4976_v62 }
  0x48   :  { %884 = vmatpush1.bf16.msra.mxu0 %v4933_v63  ;;  %v4962_v63 = vld [vmem:[%s7567_s2 + $0xa8] ss:$16 sps:$4 sm:$0xff]  }
  0x49   :  { %927 = vmatpush1.bf16.msra.mxu1 %v4938_v40  ;;  %7804 = vst [vmem:[#allocation40_spill] sm:$0xff] %v4962_v63  ;;  %885 = vmatprep.subr.bf16.mxu0 %v4947_v1  ;;  %v4971_v40 = vld [vmem:[%s7567_s2 + $0x84] ss:$16 sps:$4 sm:$0xff]   ;;  %v4981_v1 = vld [vmem:[%s7567_s2 + $0x80] ss:$16 sps:$4 sm:$0xff]  }
  0x4a   :  { %928 = vmatprep.subr.bf16.mxu1 %v4952_v61  ;;  %7805 = vst [vmem:[#allocation41_spill] sm:$0xff] %v4971_v40  ;;  %7807 = vst [vmem:[#allocation43_spill] sm:$0xff] %v4981_v1  ;;  %v5000_v61 = vld [vmem:[%s7567_s2 + $0x6c] ss:$16 sps:$4 sm:$0xff]  }
  0x4b   :  { %7810 = vst [vmem:[#allocation46_spill] sm:$0xff] %v5000_v61 }
  0x4c   :  { %886 = vmatpush1.bf16.msra.mxu0 %v4957_v58  ;;  %v4986_v58 = vld [vmem:[%s7567_s2 + $0x88] ss:$16 sps:$4 sm:$0xff]  }
  0x4d   :  { %929 = vmatpush1.bf16.msra.mxu1 %v4962_v63  ;;  %7808 = vst [vmem:[#allocation44_spill] sm:$0xff] %v4986_v58  ;;  %887 = vmatprep.subr.bf16.mxu0 %v4971_v40  ;;  %v4995_v63 = vld [vmem:[%s7567_s2 + $0x64] ss:$16 sps:$4 sm:$0xff]   ;;  %v5005_v40 = vld [vmem:[%s7567_s2 + $0x60] ss:$16 sps:$4 sm:$0xff]  }
  0x4e   :  { %930 = vmatprep.subr.bf16.mxu1 %v4976_v62  ;;  %7809 = vst [vmem:[#allocation45_spill] sm:$0xff] %v4995_v63  ;;  %7811 = vst [vmem:[#allocation47_spill] sm:$0xff] %v5005_v40  ;;  %v5024_v62 = vld [vmem:[%s7567_s2 + $0x4c] ss:$16 sps:$4 sm:$0xff]  }
  0x4f   :  { %7814 = vst [vmem:[#allocation50_spill] sm:$0xff] %v5024_v62 }
  0x50   :  { %888 = vmatpush1.bf16.msra.mxu0 %v4981_v1  ;;  %v5010_v1 = vld [vmem:[%s7567_s2 + $0x68] ss:$16 sps:$4 sm:$0xff]  }
  0x51   :  { %931 = vmatpush1.bf16.msra.mxu1 %v4986_v58  ;;  %7812 = vst [vmem:[#allocation48_spill] sm:$0xff] %v5010_v1  ;;  %889 = vmatprep.subr.bf16.mxu0 %v4995_v63  ;;  %v5019_v58 = vld [vmem:[%s7567_s2 + $0x44] ss:$16 sps:$4 sm:$0xff]   ;;  %v5029_v63 = vld [vmem:[%s7567_s2 + $0x40] ss:$16 sps:$4 sm:$0xff]  }
  0x52   :  { %932 = vmatprep.subr.bf16.mxu1 %v5000_v61  ;;  %7813 = vst [vmem:[#allocation49_spill] sm:$0xff] %v5019_v58  ;;  %7815 = vst [vmem:[#allocation51_spill] sm:$0xff] %v5029_v63  ;;  %v5048_v61 = vld [vmem:[%s7567_s2 + $0x2c] ss:$16 sps:$4 sm:$0xff]  }
  0x53   :  { %7818 = vst [vmem:[#allocation54_spill] sm:$0xff] %v5048_v61 }
  0x54   :  { %890 = vmatpush1.bf16.msra.mxu0 %v5005_v40  ;;  %v5034_v40 = vld [vmem:[%s7567_s2 + $0x48] ss:$16 sps:$4 sm:$0xff]  }
  0x55   :  { %933 = vmatpush1.bf16.msra.mxu1 %v5010_v1  ;;  %7816 = vst [vmem:[#allocation52_spill] sm:$0xff] %v5034_v40  ;;  %891 = vmatprep.subr.bf16.mxu0 %v5019_v58  ;;  %v5043_v1 = vld [vmem:[%s7567_s2 + $0x24] ss:$16 sps:$4 sm:$0xff]   ;;  %v5053_v58 = vld [vmem:[%s7567_s2 + $0x20] ss:$16 sps:$4 sm:$0xff]  }
  0x56   :  { %934 = vmatprep.subr.bf16.mxu1 %v5024_v62  ;;  %7817 = vst [vmem:[#allocation53_spill] sm:$0xff] %v5043_v1  ;;  %7819 = vst [vmem:[#allocation55_spill] sm:$0xff] %v5053_v58  ;;  %v5072_v62 = vld [vmem:[%s7567_s2 + $0xc] ss:$16 sps:$4 sm:$0xff]  }
  0x57   :  { %7822 = vst [vmem:[#allocation58_spill] sm:$0xff] %v5072_v62 }
  0x58   :  { %892 = vmatpush1.bf16.msra.mxu0 %v5029_v63  ;;  %v5058_v63 = vld [vmem:[%s7567_s2 + $0x28] ss:$16 sps:$4 sm:$0xff]  }
  0x59   :  { %935 = vmatpush1.bf16.msra.mxu1 %v5034_v40  ;;  %7820 = vst [vmem:[#allocation56_spill] sm:$0xff] %v5058_v63  ;;  %893 = vmatprep.subr.bf16.mxu0 %v5043_v1  ;;  %v5067_v40 = vld [vmem:[%s7567_s2 + $0x4] ss:$16 sps:$4 sm:$0xff]   ;;  %v5077_v1 = vld [vmem:[%s7567_s2] ss:$16 sps:$4 sm:$0xff]  }
  0x5a   :  { %936 = vmatprep.subr.bf16.mxu1 %v5048_v61  ;;  %7821 = vst [vmem:[#allocation57_spill] sm:$0xff] %v5067_v40  ;;  %7823 = vst [vmem:[#allocation59_spill] sm:$0xff] %v5077_v1 }
  0x5c   :  { %894 = vmatpush1.bf16.msra.mxu0 %v5053_v58  ;;  %v5082_v58 = vld [vmem:[%s7567_s2 + $0x8] ss:$16 sps:$4 sm:$0xff]  }
  0x5d   :  { %937 = vmatpush1.bf16.msra.mxu1 %v5058_v63  ;;  %7824 = vst [vmem:[#allocation60_spill] sm:$0xff] %v5082_v58  ;;  %895 = vmatprep.subr.bf16.mxu0 %v5067_v40  ;;  %v170_v63 = vld [vmem:[%s7568_s0] sm:$0xff] }
  0x5e   :  { %938 = vmatprep.subr.bf16.mxu1 %v5072_v62  ;;  %v174_v61 = vunpack.c.l.bf16 %v170_v63  ;;  %v172_v62 = vld [vmem:[%s7568_s0 + $0x10] sm:$0xff] }
  0x5f   :  { %v179_v55 = vunpack.c.h.bf16 %v172_v62 }
  0x60   :  { %896 = vmatpush1.bf16.msra.mxu0 %v5077_v1  ;;  %v175_v1 = vunpack.c.h.bf16 %v170_v63 }
  0x61   :  { %939 = vmatpush1.bf16.msra.mxu1 %v5082_v58  ;;  %1024 = vmatprep.subr.bf16.mxu0 %v4505_v0  ;;  %v176_v58 = vunpack.c.l.bf16 %v171_v56  ;;  %v178_v0 = vunpack.c.l.bf16 %v172_v62 }
  0x62   :  { %1067 = vmatprep.subr.bf16.mxu1 %v4518_v3 }
  0xe2   :  { %v377_v40 = vpop.f32.mrf.mxu0  ;;  %v420_v3 = vpop.f32.mrf.mxu1 }
  0xe3   :  { %v429_v59 = vadd.f32 %v377_v40, %v174_v61  ;;  %v431_v51 = vadd.f32 %v420_v3, %v176_v58  ;;  %v180_v61 = vunpack.c.l.bf16 %v173_v49  ;;  %v181_v58 = vunpack.c.h.bf16 %v173_v49 }
  0xe4   :  { %v379_v54 = vpop.f32.mrf.mxu0  ;;  %v422_v47 = vpop.f32.mrf.mxu1 }
  0xe5   :  { %v437_v57 = vmul.f32 0.5, %v429_v59  ;;  %v430_v52 = vadd.f32 %v379_v54, %v175_v1  ;;  %v177_v54 = vunpack.c.h.bf16 %v171_v56 }
  0xe6   :  { %v381_v53 = vpop.f32.mrf.mxu0  ;;  %v424_v1 = vpop.f32.mrf.mxu1 }
  0xe7   :  { %3851 = vtanh.f32 %v437_v57  ;;  %v445_v50 = vmul.f32 0.5, %v430_v52  ;;  %v433_v48 = vadd.f32 %v381_v53, %v178_v0  ;;  %v435_v62 = vadd.f32 %v424_v1, %v180_v61 }
  0xe8   :  { %v383_v63 = vpop.f32.mrf.mxu0  ;;  %v426_v3 = vpop.f32.mrf.mxu1  ;;  %v432_v46 = vadd.f32 %v422_v47, %v177_v54 }
  0xe9   :  { %3853 = vtanh.f32 %v445_v50  ;;  %v438_v45 = vmul.f32 0.5, %v433_v48  ;;  %v434_v40 = vadd.f32 %v383_v63, %v179_v55  ;;  %v436_v57 = vadd.f32 %v426_v3, %v181_v58 }
  0xea   :  { %3855 = vtanh.f32 %v431_v51  ;;  %v455_v0 = vmul.f32 0.5, %v432_v46 }
  0xeb   :  { %3857 = vtanh.f32 %v438_v45  ;;  %v446_v59 = vmul.f32 0.5, %v434_v40  ;;  %v456_v50 = vmul.f32 0.5, %v436_v57 }
  0xed   :  { %3859 = vtanh.f32 %v446_v59 }
  0xee   :  { %3861 = vtanh.f32 %v435_v62 }
  0xef   :  { %3863 = vtanh.f32 %v455_v0 }
  0xf0   :  { %3865 = vtanh.f32 %v456_v50 }
  0xf4   :  { %v3852_v52 = vpop.eup %3851 }
  0xf5   :  { %v441_v53 = vmul.f32 0.5, %v3852_v52 }
  0xf6   :  { %v3854_v44 = vpop.eup %3853 }
  0xf7   :  { %v3856_v48 = vpop.eup %3855  ;;  %v443_v55 = vadd.f32 0.5, %v441_v53  ;;  %v449_v63 = vmul.f32 0.5, %v3854_v44 }
  0xf8   :  { %v3858_v51 = vpop.eup %3857 }
  0xf9   :  { %v451_v45 = vadd.f32 0.5, %v449_v63  ;;  %v442_v40 = vmul.f32 0.5, %v3858_v51  ;;  %v465_v49 = vmul.f32 %v3856_v48, %v443_v55 }
  0xfa   :  { %v3860_v56 = vpop.eup %3859 }
  0xfb   :  { %v463_v61 = vmul.f32 0.0, %v451_v45  ;;  %v444_v59 = vadd.f32 0.5, %v442_v40  ;;  %v450_v47 = vmul.f32 0.5, %v3860_v56  ;;  %v3862_v62 = vpop.eup %3861 }
  0xfc   :  { %v3864_v44 = vpop.eup %3863 }
  0xfd   :  { %v5102_v1 = vadd.f32 %v465_v49, %v463_v61  ;;  %v452_v54 = vadd.f32 0.5, %v450_v47  ;;  %v466_v58 = vmul.f32 %v3862_v62, %v444_v59  ;;  %v3866_v57 = vpop.eup %3865  ;;  %v459_v52 = vmul.f32 0.5, %v3864_v44 }
  0xfe   :  { %v460_v53 = vmul.f32 0.5, %v3866_v57 }
  0xff   :  { %v464_v46 = vmul.f32 0.0, %v452_v54  ;;  %3867 = vtanh.f32 %v5102_v1  ;;  %v461_v50 = vadd.f32 0.5, %v459_v52 }
 0x100   :  { %v462_v48 = vadd.f32 0.5, %v460_v53 }
 0x101   :  { %v5105_v3 = vadd.f32 %v466_v58, %v464_v46 }
 0x103   :  { %3869 = vtanh.f32 %v5105_v3 }
 0x10c   :  { %v3868_v0 = vpop.eup %3867 }
 0x10d   :  { %v471_v63 = vmul.f32 %v3868_v0, %v461_v50 }
 0x110   :  { %v3870_v55 = vpop.eup %3869 }
 0x111   :  { %v472_v51 = vmul.f32 %v3870_v55, %v462_v48 }
 0x113   :  { %v473_v45 = vpack.c.bf16 %v472_v51, %v471_v63 }
 0x115   :  { %914 = vmatmul.mubr.bf16.vlgmr.msra.gmra.mxu0 %v473_v45  ;;  %957 = vmatmul.mubr.bf16.vlgmr.msra.gmra.mxu1 %v473_v45 }
 0x116   :  { %1025 = vmatpush1.bf16.msra.mxu0 %v4512_v2  ;;  %1068 = vmatpush1.bf16.msra.mxu1 %v4523_v4  ;;  %v7825_v2 = vld [vmem:[#allocation7_spill] sm:$0xff]  ;;  %v7826_v4 = vld [vmem:[#allocation9_spill] sm:$0xff] }
 0x117   :  { %1026 = vmatprep.subr.bf16.mxu0 %v4529_v5  ;;  %1069 = vmatprep.subr.bf16.mxu1 %v4540_v7  ;;  %v7827_v5 = vld [vmem:[#allocation8_spill] sm:$0xff]  ;;  %v7829_v7 = vld [vmem:[#allocation11_spill] sm:$0xff] }
 0x118   :  { %1056 = vmatprep.mubr.bf16.mxu0 %v7792_v60  ;;  %1099 = vmatprep.mubr.bf16.mxu1 %v7792_v60 }
 0x11a   :  { %1027 = vmatpush1.bf16.msra.mxu0 %v4534_v6  ;;  %1070 = vmatpush1.bf16.msra.mxu1 %v4547_v8  ;;  %v7828_v6 = vld [vmem:[#allocation10_spill] sm:$0xff]  ;;  %v7830_v8 = vld [vmem:[#allocation13_spill] sm:$0xff] }
 0x11b   :  { %1028 = vmatprep.subr.bf16.mxu0 %v4553_v9  ;;  %1071 = vmatprep.subr.bf16.mxu1 %v4564_v11  ;;  %v7831_v9 = vld [vmem:[#allocation12_spill] sm:$0xff]  ;;  %v7833_v11 = vld [vmem:[#allocation14_spill] sm:$0xff] }
 0x11e   :  { %1029 = vmatpush1.bf16.msra.mxu0 %v4559_v10  ;;  %1072 = vmatpush1.bf16.msra.mxu1 %v4576_v13  ;;  %v7832_v10 = vld [vmem:[#allocation16_spill] sm:$0xff]  ;;  %v7835_v13 = vld [vmem:[#allocation15_spill] sm:$0xff] }
 0x11f   :  { %1030 = vmatprep.subr.bf16.mxu0 %v4570_v12  ;;  %1073 = vmatprep.subr.bf16.mxu1 %v4582_v14  ;;  %v7834_v12 = vld [vmem:[#allocation18_spill] sm:$0xff]  ;;  %v7836_v14 = vld [vmem:[#allocation20_spill] sm:$0xff] }
 0x122   :  { %1031 = vmatpush1.bf16.msra.mxu0 %v4588_v15  ;;  %1074 = vmatpush1.bf16.msra.mxu1 %v4600_v17  ;;  %v7837_v15 = vld [vmem:[#allocation17_spill] sm:$0xff]  ;;  %v7839_v17 = vld [vmem:[#allocation19_spill] sm:$0xff] }
 0x123   :  { %1032 = vmatprep.subr.bf16.mxu0 %v4594_v16  ;;  %1075 = vmatprep.subr.bf16.mxu1 %v4606_v18  ;;  %v7838_v16 = vld [vmem:[#allocation22_spill] sm:$0xff]  ;;  %v7840_v18 = vld [vmem:[#allocation24_spill] sm:$0xff] }
 0x126   :  { %1033 = vmatpush1.bf16.msra.mxu0 %v4612_v19  ;;  %1076 = vmatpush1.bf16.msra.mxu1 %v4624_v21  ;;  %v7841_v19 = vld [vmem:[#allocation21_spill] sm:$0xff]  ;;  %v7843_v21 = vld [vmem:[#allocation23_spill] sm:$0xff] }
 0x127   :  { %1034 = vmatprep.subr.bf16.mxu0 %v4618_v20  ;;  %1077 = vmatprep.subr.bf16.mxu1 %v4630_v22  ;;  %v7842_v20 = vld [vmem:[#allocation26_spill] sm:$0xff]  ;;  %v7844_v22 = vld [vmem:[#allocation27_spill] sm:$0xff] }
 0x12a   :  { %1035 = vmatpush1.bf16.msra.mxu0 %v4636_v23  ;;  %1078 = vmatpush1.bf16.msra.mxu1 %v4648_v25  ;;  %v7845_v23 = vld [vmem:[#allocation25_spill] sm:$0xff] }
 0x12b   :  { %1036 = vmatprep.subr.bf16.mxu0 %v4642_v24  ;;  %1079 = vmatprep.subr.bf16.mxu1 %v4654_v26  ;;  %v7846_v24 = vld [vmem:[#allocation28_spill] sm:$0xff]  ;;  %v7847_v25 = vld [vmem:[#allocation29_spill] sm:$0xff]  ;;  %v7848_v26 = vld [vmem:[#allocation30_spill] sm:$0xff] }
 0x12e   :  { %1037 = vmatpush1.bf16.msra.mxu0 %v4660_v27  ;;  %1080 = vmatpush1.bf16.msra.mxu1 %v4672_v29  ;;  %v669_v27 = vpop.f32.mrf.mxu0  ;;  %v142_v29 = vlaneseq }
 0x12f   :  { %1038 = vmatprep.subr.bf16.mxu0 %v4666_v28  ;;  %1081 = vmatprep.subr.bf16.mxu1 %v4678_v30  ;;  %v712_v28 = vpop.f32.mrf.mxu1 }
 0x130   :  { %v671_v30 = vpop.f32.mrf.mxu0 }
 0x132   :  { %1039 = vmatpush1.bf16.msra.mxu0 %v4684_v31  ;;  %1082 = vmatpush1.bf16.msra.mxu1 %v4696_v33  ;;  %v714_v31 = vpop.f32.mrf.mxu1  ;;  %v673_v33 = vpop.f32.mrf.mxu0 }
 0x133   :  { %1156 = vmatprep.subr.bf16.mxu0 %v4690_v32  ;;  %1199 = vmatprep.subr.bf16.mxu1 %v4702_v34  ;;  %v143_v32 = vshrl.u32 %v142_v29, 7 }
 0x134   :  { %v716_v34 = vpop.f32.mrf.mxu1 }
 0x135   :  { %1057 = vmatmul.mubr.bf16.vlgmr.msra.gmra.mxu0 %v473_v45  ;;  %1100 = vmatmul.mubr.bf16.vlgmr.msra.gmra.mxu1 %v473_v45 }
 0x136   :  { %1157 = vmatpush1.bf16.msra.mxu0 %v4708_v35  ;;  %1200 = vmatpush1.bf16.msra.mxu1 %v4725_v38  ;;  %v144_v35 = vsub.s32 0, %v143_v32  ;;  %v675_v38 = vpop.f32.mrf.mxu0 }
 0x137   :  { %1158 = vmatprep.subr.bf16.mxu0 %v4714_v36  ;;  %1201 = vmatprep.subr.bf16.mxu1 %v4730_v39  ;;  %v140_v36 = vld [vmem:[%s7569_s4] sm:$0xf]  ;;  %v718_v39 = vpop.f32.mrf.mxu1 }
 0x138   :  { %1188 = vmatprep.mubr.bf16.mxu0 %v7792_v60  ;;  %1231 = vmatprep.mubr.bf16.mxu1 %v7792_v60 }
 0x13a   :  { %1159 = vmatpush1.bf16.msra.mxu0 %v4720_v37  ;;  %1202 = vmatpush1.bf16.msra.mxu1 %v4743_v42  ;;  %v148_v37 = vsub.s32 1, %v143_v32  ;;  %v152_v42 = vsub.s32 2, %v143_v32 }
 0x13b   :  { %1160 = vmatprep.subr.bf16.mxu0 %v4737_v41  ;;  %1203 = vmatprep.subr.bf16.mxu1 %v4754_v43  ;;  %v5179_v41 = vrot.slane %v140_v36, %v144_v35 }
 0x13c   :  { %v5181_v61 = vrot.slane %v140_v36, %v148_v37  ;;  %v5184_v54 = vrot.slane %v140_v36, %v152_v42 }
 0x13e   :  { %1161 = vmatpush1.bf16.msra.mxu0 %v7825_v2  ;;  %1204 = vmatpush1.bf16.msra.mxu1 %v7826_v4  ;;  %v156_v2 = vsub.s32 3, %v143_v32 }
 0x13f   :  { %1162 = vmatprep.subr.bf16.mxu0 %v7827_v5  ;;  %1205 = vmatprep.subr.bf16.mxu1 %v7828_v6 }
 0x142   :  { %1163 = vmatpush1.bf16.msra.mxu0 %v7829_v7  ;;  %1206 = vmatpush1.bf16.msra.mxu1 %v7830_v8  ;;  %v5191_v8 = vrot.slane %v140_v36, %v156_v2 }
 0x143   :  { %1164 = vmatprep.subr.bf16.mxu0 %v7831_v9  ;;  %1207 = vmatprep.subr.bf16.mxu1 %v7832_v10 }
 0x146   :  { %1165 = vmatpush1.bf16.msra.mxu0 %v7833_v11  ;;  %1208 = vmatpush1.bf16.msra.mxu1 %v7834_v12 }
 0x147   :  { %1166 = vmatprep.subr.bf16.mxu0 %v7835_v13  ;;  %1209 = vmatprep.subr.bf16.mxu1 %v7836_v14 }
 0x14a   :  { %1167 = vmatpush1.bf16.msra.mxu0 %v7837_v15  ;;  %1210 = vmatpush1.bf16.msra.mxu1 %v7838_v16 }
 0x14b   :  { %1168 = vmatprep.subr.bf16.mxu0 %v7839_v17  ;;  %1211 = vmatprep.subr.bf16.mxu1 %v7840_v18 }
 0x14e   :  { %1169 = vmatpush1.bf16.msra.mxu0 %v7841_v19  ;;  %1212 = vmatpush1.bf16.msra.mxu1 %v7842_v20 }
 0x14f   :  { %1170 = vmatprep.subr.bf16.mxu0 %v7843_v21  ;;  %1213 = vmatprep.subr.bf16.mxu1 %v7844_v22 }
 0x152   :  { %1171 = vmatpush1.bf16.msra.mxu0 %v7845_v23  ;;  %1214 = vmatpush1.bf16.msra.mxu1 %v7846_v24 }
 0x153   :  { %1242 = vmatprep.subr.bf16.mxu0 %v7847_v25  ;;  %1285 = vmatprep.subr.bf16.mxu1 %v7848_v26  ;;  %v3674_v25 = vld [vmem:[%s7568_s0 + $0x20] sm:$0xff] }
 0x154   :  { %v1016_v32 = vunpack.c.l.bf16 %v3674_v25  ;;  %v1017_v37 = vunpack.c.h.bf16 %v3674_v25 }
 0x1d5   :  { %v915_v43 = vpop.f32.mrf.mxu0  ;;  %v958_v40 = vpop.f32.mrf.mxu1 }
 0x1d6   :  { %v916_v56 = vadd.f32 %v915_v43, %v669_v27  ;;  %v959_v62 = vadd.f32 %v958_v40, %v712_v28  ;;  %v3675_v40 = vld [vmem:[%s7568_s0 + $0x28] sm:$0xff] }
 0x1d7   :  { %v917_v49 = vpop.f32.mrf.mxu0  ;;  %v960_v59 = vpop.f32.mrf.mxu1 }
 0x1d8   :  { %v967_v47 = vadd.f32 %v916_v56, %v5179_v41  ;;  %v918_v46 = vadd.f32 %v917_v49, %v671_v30  ;;  %v969_v50 = vadd.f32 %v959_v62, %v5184_v54  ;;  %v961_v9 = vadd.f32 %v960_v59, %v714_v31 }
 0x1d9   :  { %v919_v58 = vpop.f32.mrf.mxu0  ;;  %v962_v53 = vpop.f32.mrf.mxu1 }
 0x1da   :  { %v975_v44 = vmul.f32 0.5, %v967_v47  ;;  %v968_v57 = vadd.f32 %v918_v46, %v5181_v61  ;;  %v920_v52 = vadd.f32 %v919_v58, %v673_v33  ;;  %v963_v51 = vadd.f32 %v962_v53, %v716_v34  ;;  %v3676_v34 = vld [vmem:[%s7568_s0 + $0x30] sm:$0xff] }
 0x1db   :  { %v921_v0 = vpop.f32.mrf.mxu0  ;;  %v964_v6 = vpop.f32.mrf.mxu1  ;;  %v970_v11 = vadd.f32 %v961_v9, %v5191_v8  ;;  %v1020_v56 = vunpack.c.l.bf16 %v3676_v34  ;;  %v1021_v62 = vunpack.c.h.bf16 %v3676_v34  ;;  %v1018_v46 = vunpack.c.l.bf16 %v3675_v40  ;;  %v7851_v34 = vld [vmem:[#allocation33_spill] sm:$0xff] }
 0x1dc   :  { %3871 = vtanh.f32 %v975_v44  ;;  %v983_v48 = vmul.f32 0.5, %v968_v57  ;;  %v922_v55 = vadd.f32 %v921_v0, %v675_v38  ;;  %v971_v63 = vadd.f32 %v920_v52, %v5179_v41  ;;  %v3677_v57 = vld [vmem:[%s7568_s0 + $0x38] sm:$0xff] }
 0x1dd   :  { %v973_v7 = vadd.f32 %v963_v51, %v5184_v54  ;;  %v965_v10 = vadd.f32 %v964_v6, %v718_v39  ;;  %v993_v16 = vmul.f32 0.5, %v970_v11  ;;  %v1023_v9 = vunpack.c.h.bf16 %v3677_v57 }
 0x1de   :  { %3873 = vtanh.f32 %v983_v48  ;;  %v972_v45 = vadd.f32 %v922_v55, %v5181_v61  ;;  %v976_v4 = vmul.f32 0.5, %v971_v63  ;;  %v1022_v55 = vunpack.c.l.bf16 %v3677_v57  ;;  %v7857_v57 = vld [vmem:[#allocation39_spill] sm:$0xff] }
 0x1df   :  { %3875 = vtanh.f32 %v969_v50  ;;  %v974_v12 = vadd.f32 %v965_v10, %v5191_v8 }
 0x1e0   :  { %v984_v5 = vmul.f32 0.5, %v972_v45  ;;  %3877 = vtanh.f32 %v976_v4 }
 0x1e1   :  { %v994_v19 = vmul.f32 0.5, %v974_v12 }
 0x1e2   :  { %3879 = vtanh.f32 %v984_v5 }
 0x1e3   :  { %3881 = vtanh.f32 %v973_v7 }
 0x1e4   :  { %3883 = vtanh.f32 %v993_v16 }
 0x1e5   :  { %3885 = vtanh.f32 %v994_v19 }
 0x1e9   :  { %v3872_v13 = vpop.eup %3871 }
 0x1ea   :  { %v979_v14 = vmul.f32 0.5, %v3872_v13 }
 0x1eb   :  { %v3874_v15 = vpop.eup %3873 }
 0x1ec   :  { %v981_v17 = vadd.f32 0.5, %v979_v14  ;;  %v987_v18 = vmul.f32 0.5, %v3874_v15  ;;  %v3876_v20 = vpop.eup %3875  ;;  %v1019_v14 = vunpack.c.h.bf16 %v3675_v40 }
 0x1ed   :  { %v3878_v21 = vpop.eup %3877 }
 0x1ee   :  { %v989_v22 = vadd.f32 0.5, %v987_v18  ;;  %v980_v24 = vmul.f32 0.5, %v3878_v21  ;;  %v1003_v27 = vmul.f32 %v3876_v20, %v981_v17 }
 0x1ef   :  { %v3880_v23 = vpop.eup %3879 }
 0x1f0   :  { %v1001_v26 = vmul.f32 0.0, %v989_v22  ;;  %v988_v28 = vmul.f32 0.5, %v3880_v23  ;;  %v982_v29 = vadd.f32 0.5, %v980_v24  ;;  %v3882_v33 = vpop.eup %3881 }
 0x1f1   :  { %v3884_v50 = vpop.eup %3883 }
 0x1f2   :  { %v5198_v30 = vadd.f32 %v1003_v27, %v1001_v26  ;;  %v990_v31 = vadd.f32 0.5, %v988_v28  ;;  %v1004_v36 = vmul.f32 %v3882_v33, %v982_v29  ;;  %v3886_v51 = vpop.eup %3885  ;;  %v997_v5 = vmul.f32 0.5, %v3884_v50  ;;  %v7849_v28 = vld [vmem:[#allocation31_spill] sm:$0xff]  ;;  %v7850_v29 = vld [vmem:[#allocation32_spill] sm:$0xff]  ;;  %v7860_v50 = vld [vmem:[#allocation42_spill] sm:$0xff] }
 0x1f3   :  { %v998_v6 = vmul.f32 0.5, %v3886_v51 }
 0x1f4   :  { %v1002_v35 = vmul.f32 0.0, %v990_v31  ;;  %3887 = vtanh.f32 %v5198_v30  ;;  %v999_v12 = vadd.f32 0.5, %v997_v5  ;;  %v7868_v5 = vld [vmem:[#allocation50_spill] sm:$0xff] }
 0x1f5   :  { %v1058_v38 = vpop.f32.mrf.mxu0  ;;  %v1101_v39 = vpop.f32.mrf.mxu1  ;;  %v1000_v13 = vadd.f32 0.5, %v998_v6 }
 0x1f6   :  { %v5204_v42 = vadd.f32 %v1004_v36, %v1002_v35  ;;  %v1110_v43 = vadd.f32 %v1058_v38, %v1016_v32  ;;  %v1112_v45 = vadd.f32 %v1101_v39, %v1018_v46  ;;  %v7852_v35 = vld [vmem:[#allocation34_spill] sm:$0xff] }
 0x1f7   :  { %v1060_v49 = vpop.f32.mrf.mxu0  ;;  %v1103_v58 = vpop.f32.mrf.mxu1 }
 0x1f8   :  { %3889 = vtanh.f32 %v5204_v42  ;;  %v1118_v59 = vmul.f32 0.5, %v1110_v43  ;;  %v1111_v47 = vadd.f32 %v1060_v49, %v1017_v37  ;;  %v1113_v21 = vadd.f32 %v1103_v58, %v1019_v14  ;;  %v7854_v49 = vld [vmem:[#allocation36_spill] sm:$0xff] }
 0x1f9   :  { %v1062_v44 = vpop.f32.mrf.mxu0  ;;  %v1105_v2 = vpop.f32.mrf.mxu1 }
 0x1fa   :  { %3891 = vtanh.f32 %v1118_v59  ;;  %v1126_v52 = vmul.f32 0.5, %v1111_v47  ;;  %v1114_v53 = vadd.f32 %v1062_v44, %v1020_v56  ;;  %v1116_v7 = vadd.f32 %v1105_v2, %v1022_v55  ;;  %v7853_v56 = vld [vmem:[#allocation35_spill] sm:$0xff]  ;;  %v7855_v47 = vld [vmem:[#allocation37_spill] sm:$0xff]  ;;  %v7862_v55 = vld [vmem:[#allocation44_spill] sm:$0xff] }
 0x1fb   :  { %v1064_v0 = vpop.f32.mrf.mxu0  ;;  %v1107_v11 = vpop.f32.mrf.mxu1  ;;  %v1136_v32 = vmul.f32 0.5, %v1113_v21  ;;  %v7866_v2 = vld [vmem:[#allocation48_spill] sm:$0xff]  ;;  %v7875_v21 = vld [vmem:[#allocation57_spill] sm:$0xff] }
 0x1fc   :  { %3893 = vtanh.f32 %v1126_v52  ;;  %v1119_v48 = vmul.f32 0.5, %v1114_v53  ;;  %v1115_v63 = vadd.f32 %v1064_v0, %v1021_v62  ;;  %v1117_v16 = vadd.f32 %v1107_v11, %v1023_v9  ;;  %v7856_v62 = vld [vmem:[#allocation38_spill] sm:$0xff]  ;;  %v7858_v52 = vld [vmem:[#allocation40_spill] sm:$0xff]  ;;  %v7859_v0 = vld [vmem:[#allocation41_spill] sm:$0xff] }
 0x1fd   :  { %v7869_v9 = vld [vmem:[#allocation51_spill] sm:$0xff] }
 0x1fe   :  { %3895 = vtanh.f32 %v1119_v48  ;;  %v1127_v4 = vmul.f32 0.5, %v1115_v63  ;;  %v1137_v25 = vmul.f32 0.5, %v1117_v16  ;;  %v7861_v48 = vld [vmem:[#allocation43_spill] sm:$0xff]  ;;  %v7864_v63 = vld [vmem:[#allocation46_spill] sm:$0xff] }
 0x200   :  { %3897 = vtanh.f32 %v1127_v4  ;;  %v7867_v4 = vld [vmem:[#allocation49_spill] sm:$0xff] }
 0x201   :  { %3899 = vtanh.f32 %v1112_v45  ;;  %v3888_v10 = vpop.eup %3887  ;;  %v7865_v45 = vld [vmem:[#allocation47_spill] sm:$0xff] }
 0x202   :  { %3901 = vtanh.f32 %v1116_v7  ;;  %v1009_v17 = vmul.f32 %v3888_v10, %v999_v12  ;;  %v7870_v10 = vld [vmem:[#allocation52_spill] sm:$0xff]  ;;  %v7871_v12 = vld [vmem:[#allocation53_spill] sm:$0xff] }
 0x203   :  { %3903 = vtanh.f32 %v1137_v25  ;;  %v7878_v25 = vld [vmem:[#allocation60_spill] sm:$0xff] }
 0x204   :  { %3905 = vtanh.f32 %v1136_v32  ;;  %v5284_v32 = vld [vmem:[%s7565_s1 + $0xc4] ss:$16 sps:$4 sm:$0xff]  }
 0x205   :  { %v3890_v15 = vpop.eup %3889 }
 0x206   :  { %v1010_v18 = vmul.f32 %v3890_v15, %v1000_v13  ;;  %v7872_v13 = vld [vmem:[#allocation54_spill] sm:$0xff] }
 0x207   :  { %v3892_v19 = vpop.eup %3891 }
 0x208   :  { %v1122_v20 = vmul.f32 0.5, %v3892_v19  ;;  %v1155_v22 = vpack.c.bf16 %v1010_v18, %v1009_v17  ;;  %v7873_v17 = vld [vmem:[#allocation55_spill] sm:$0xff]  ;;  %v7874_v18 = vld [vmem:[#allocation56_spill] sm:$0xff] }
 0x209   :  { %v3894_v23 = vpop.eup %3893 }
 0x20a   :  { %v1130_v24 = vmul.f32 0.5, %v3894_v23  ;;  %1189 = vmatmul.mubr.bf16.vlgmr.msra.gmra.mxu0 %v1155_v22  ;;  %1232 = vmatmul.mubr.bf16.vlgmr.msra.gmra.mxu1 %v1155_v22  ;;  %v1124_v27 = vadd.f32 0.5, %v1122_v20  ;;  %v7876_v22 = vld [vmem:[#allocation58_spill] sm:$0xff] }
 0x20b   :  { %v3896_v26 = vpop.eup %3895  ;;  %1243 = vmatpush1.bf16.msra.mxu0 %v7849_v28  ;;  %1286 = vmatpush1.bf16.msra.mxu1 %v7850_v29  ;;  %v5264_v28 = vld [vmem:[%s7565_s1 + $0xec] ss:$16 sps:$4 sm:$0xff]   ;;  %v5272_v29 = vld [vmem:[%s7565_s1 + $0xe0] ss:$16 sps:$4 sm:$0xff]  }
 0x20c   :  { %v1132_v31 = vadd.f32 0.5, %v1130_v24  ;;  %v1123_v33 = vmul.f32 0.5, %v3896_v26  ;;  %1244 = vmatprep.subr.bf16.mxu0 %v7851_v34  ;;  %1287 = vmatprep.subr.bf16.mxu1 %v7852_v35  ;;  %v7877_v24 = vld [vmem:[#allocation59_spill] sm:$0xff] }
 0x20d   :  { %v3898_v36 = vpop.eup %3897  ;;  %1274 = vmatprep.mubr.bf16.mxu0 %v7792_v60  ;;  %1317 = vmatprep.mubr.bf16.mxu1 %v7792_v60  ;;  %v5298_v34 = vld [vmem:[%s7565_s1 + $0xc0] ss:$16 sps:$4 sm:$0xff]   ;;  %v5304_v35 = vld [vmem:[%s7565_s1 + $0xc8] ss:$16 sps:$4 sm:$0xff]  }
 0x20e   :  { %v3900_v37 = vpop.eup %3899  ;;  %v1144_v38 = vmul.f32 %v1132_v31, %v5102_v1  ;;  %v1125_v39 = vadd.f32 0.5, %v1123_v33  ;;  %v1131_v43 = vmul.f32 0.5, %v3898_v36  ;;  %v5278_v31 = vld [vmem:[%s7565_s1 + $0xe8] ss:$16 sps:$4 sm:$0xff]   ;;  %v5290_v33 = vld [vmem:[%s7565_s1 + $0xcc] ss:$16 sps:$4 sm:$0xff]  }
 0x20f   :  { %v1146_v40 = vmul.f32 %v3900_v37, %v1124_v27  ;;  %1245 = vmatpush1.bf16.msra.mxu0 %v7853_v56  ;;  %1288 = vmatpush1.bf16.msra.mxu1 %v7854_v49  ;;  %v3902_v46 = vpop.eup %3901  ;;  %v5258_v27 = vld [vmem:[%s7565_s1 + $0xe4] ss:$16 sps:$4 sm:$0xff]   ;;  %v5316_v37 = vld [vmem:[%s7565_s1 + $0xac] ss:$16 sps:$4 sm:$0xff]   ;;  %v5346_v56 = vld [vmem:[%s7565_s1 + $0x80] ss:$16 sps:$4 sm:$0xff]  }
 0x210   :  { %v1133_v59 = vadd.f32 0.5, %v1131_v43  ;;  %1246 = vmatprep.subr.bf16.mxu0 %v7855_v47  ;;  %1289 = vmatprep.subr.bf16.mxu1 %v7856_v62  ;;  %v1147_v1 = vmul.f32 %v3902_v46, %v1125_v39  ;;  %v3904_v51 = vpop.eup %3903  ;;  %v5310_v36 = vld [vmem:[%s7565_s1 + $0xa4] ss:$16 sps:$4 sm:$0xff]   ;;  %v5328_v39 = vld [vmem:[%s7565_s1 + $0xa8] ss:$16 sps:$4 sm:$0xff]  }
 0x211   :  { %v5224_v58 = vadd.f32 %v1146_v40, %v1144_v38  ;;  %v3906_v6 = vpop.eup %3905  ;;  %v1141_v7 = vmul.f32 0.5, %v3904_v51  ;;  %v5322_v38 = vld [vmem:[%s7565_s1 + $0xa0] ss:$16 sps:$4 sm:$0xff]   ;;  %v5334_v43 = vld [vmem:[%s7565_s1 + $0x84] ss:$16 sps:$4 sm:$0xff]  }
 0x212   :  { %v1145_v44 = vmul.f32 %v1133_v59, %v5105_v3  ;;  %v7863_v3 = vld [vmem:[#allocation45_spill] sm:$0xff]  ;;  %v1140_v11 = vmul.f32 0.5, %v3906_v6  ;;  %v5340_v40 = vld [vmem:[%s7565_s1 + $0x8c] ss:$16 sps:$4 sm:$0xff]  }
 0x213   :  { %1247 = vmatpush1.bf16.msra.mxu0 %v7857_v57  ;;  %1290 = vmatpush1.bf16.msra.mxu1 %v7858_v52  ;;  %3907 = vtanh.f32 %v5224_v58  ;;  %v1143_v15 = vadd.f32 0.5, %v1141_v7  ;;  %v5352_v49 = vld [vmem:[%s7565_s1 + $0x88] ss:$16 sps:$4 sm:$0xff]   ;;  %v5358_v59 = vld [vmem:[%s7565_s1 + $0x64] ss:$16 sps:$4 sm:$0xff]  }
 0x214   :  { %v5229_v53 = vadd.f32 %v1147_v1, %v1145_v44  ;;  %1248 = vmatprep.subr.bf16.mxu0 %v7859_v0  ;;  %1291 = vmatprep.subr.bf16.mxu1 %v7860_v50  ;;  %v1142_v19 = vadd.f32 0.5, %v1140_v11  ;;  %v5364_v47 = vld [vmem:[%s7565_s1 + $0x6c] ss:$16 sps:$4 sm:$0xff]   ;;  %v5370_v62 = vld [vmem:[%s7565_s1 + $0x60] ss:$16 sps:$4 sm:$0xff]  }
 0x215   :  { %v5376_v46 = vld [vmem:[%s7565_s1 + $0x68] ss:$16 sps:$4 sm:$0xff]   ;;  %v5382_v44 = vld [vmem:[%s7565_s1 + $0x44] ss:$16 sps:$4 sm:$0xff]   ;;  %v5388_v1 = vld [vmem:[%s7565_s1 + $0x4c] ss:$16 sps:$4 sm:$0xff]  }
 0x216   :  { %3909 = vtanh.f32 %v5229_v53  ;;  %v5394_v57 = vld [vmem:[%s7565_s1 + $0x40] ss:$16 sps:$4 sm:$0xff]   ;;  %v5400_v52 = vld [vmem:[%s7565_s1 + $0x48] ss:$16 sps:$4 sm:$0xff]   ;;  %v5406_v0 = vld [vmem:[%s7565_s1 + $0x24] ss:$16 sps:$4 sm:$0xff]  }
 0x217   :  { %1249 = vmatpush1.bf16.msra.mxu0 %v7861_v48  ;;  %1292 = vmatpush1.bf16.msra.mxu1 %v7862_v55  ;;  %v5412_v50 = vld [vmem:[%s7565_s1 + $0x2c] ss:$16 sps:$4 sm:$0xff]   ;;  %v5418_v48 = vld [vmem:[%s7565_s1 + $0x20] ss:$16 sps:$4 sm:$0xff]   ;;  %v5424_v55 = vld [vmem:[%s7565_s1 + $0x28] ss:$16 sps:$4 sm:$0xff]  }
 0x218   :  { %1250 = vmatprep.subr.bf16.mxu0 %v7863_v3  ;;  %1293 = vmatprep.subr.bf16.mxu1 %v7864_v63  ;;  %v5430_v3 = vld [vmem:[%s7565_s1 + $0x4] ss:$16 sps:$4 sm:$0xff]   ;;  %v5436_v63 = vld [vmem:[%s7565_s1 + $0xc] ss:$16 sps:$4 sm:$0xff]   ;;  %v5442_v51 = vld [vmem:[%s7565_s1] ss:$16 sps:$4 sm:$0xff]  }
 0x219   :  { %7879 = vst [vmem:[#allocation7_spill] sm:$0xff] %v5442_v51  ;;  %v5474_v6 = vld [vmem:[%s7566_s3 + $0xe8] ss:$16 sps:$4 sm:$0xff]   ;;  %v5480_v7 = vld [vmem:[%s7566_s3 + $0xc4] ss:$16 sps:$4 sm:$0xff]  }
 0x21a   :  { %7884 = vst [vmem:[#allocation13_spill] sm:$0xff] %v5474_v6  ;;  %7885 = vst [vmem:[#allocation12_spill] sm:$0xff] %v5480_v7  ;;  %v5500_v11 = vld [vmem:[%s7566_s3 + $0xc8] ss:$16 sps:$4 sm:$0xff]  }
 0x21b   :  { %1251 = vmatpush1.bf16.msra.mxu0 %v7865_v45  ;;  %1294 = vmatpush1.bf16.msra.mxu1 %v7866_v2  ;;  %v5448_v45 = vld [vmem:[%s7565_s1 + $0x8] ss:$16 sps:$4 sm:$0xff]   ;;  %v5454_v2 = vld [vmem:[%s7566_s3 + $0xe4] ss:$16 sps:$4 sm:$0xff]   ;;  %7888 = vst [vmem:[#allocation18_spill] sm:$0xff] %v5500_v11 }
 0x21c   :  { %1252 = vmatprep.subr.bf16.mxu0 %v7867_v4  ;;  %1295 = vmatprep.subr.bf16.mxu1 %v7868_v5  ;;  %7880 = vst [vmem:[#allocation9_spill] sm:$0xff] %v5448_v45  ;;  %7881 = vst [vmem:[#allocation8_spill] sm:$0xff] %v5454_v2  ;;  %v5460_v4 = vld [vmem:[%s7566_s3 + $0xec] ss:$16 sps:$4 sm:$0xff]   ;;  %v5468_v5 = vld [vmem:[%s7566_s3 + $0xe0] ss:$16 sps:$4 sm:$0xff]  }
 0x21d   :  { %7882 = vst [vmem:[#allocation10_spill] sm:$0xff] %v5460_v4  ;;  %7883 = vst [vmem:[#allocation11_spill] sm:$0xff] %v5468_v5 }
 0x21f   :  { %1253 = vmatpush1.bf16.msra.mxu0 %v7869_v9  ;;  %1296 = vmatpush1.bf16.msra.mxu1 %v7870_v10  ;;  %v5486_v9 = vld [vmem:[%s7566_s3 + $0xcc] ss:$16 sps:$4 sm:$0xff]   ;;  %v5494_v10 = vld [vmem:[%s7566_s3 + $0xc0] ss:$16 sps:$4 sm:$0xff]  }
 0x220   :  { %1254 = vmatprep.subr.bf16.mxu0 %v7871_v12  ;;  %1297 = vmatprep.subr.bf16.mxu1 %v7872_v13  ;;  %v3908_v14 = vpop.eup %3907  ;;  %7886 = vst [vmem:[#allocation16_spill] sm:$0xff] %v5486_v9  ;;  %7887 = vst [vmem:[#allocation14_spill] sm:$0xff] %v5494_v10  ;;  %v5506_v12 = vld [vmem:[%s7566_s3 + $0xa4] ss:$16 sps:$4 sm:$0xff]   ;;  %v5512_v13 = vld [vmem:[%s7566_s3 + $0xac] ss:$16 sps:$4 sm:$0xff]  }
 0x221   :  { %v1152_v23 = vmul.f32 %v3908_v14, %v1142_v19  ;;  %7889 = vst [vmem:[#allocation15_spill] sm:$0xff] %v5506_v12  ;;  %7890 = vst [vmem:[#allocation20_spill] sm:$0xff] %v5512_v13  ;;  %v5518_v14 = vld [vmem:[%s7566_s3 + $0xa0] ss:$16 sps:$4 sm:$0xff]   ;;  %v5548_v19 = vld [vmem:[%s7566_s3 + $0x88] ss:$16 sps:$4 sm:$0xff]  }
 0x222   :  { %7891 = vst [vmem:[#allocation17_spill] sm:$0xff] %v5518_v14  ;;  %7896 = vst [vmem:[#allocation26_spill] sm:$0xff] %v5548_v19 }
 0x223   :  { %v3910_v16 = vpop.eup %3909  ;;  %1255 = vmatpush1.bf16.msra.mxu0 %v7873_v17  ;;  %1298 = vmatpush1.bf16.msra.mxu1 %v7874_v18  ;;  %v5536_v17 = vld [vmem:[%s7566_s3 + $0x8c] ss:$16 sps:$4 sm:$0xff]   ;;  %v5542_v18 = vld [vmem:[%s7566_s3 + $0x80] ss:$16 sps:$4 sm:$0xff]  }
 0x224   :  { %v1153_v20 = vmul.f32 %v3910_v16, %v1143_v15  ;;  %1256 = vmatprep.subr.bf16.mxu0 %v7875_v21  ;;  %1299 = vmatprep.subr.bf16.mxu1 %v7876_v22  ;;  %v5524_v15 = vld [vmem:[%s7566_s3 + $0xa8] ss:$16 sps:$4 sm:$0xff]   ;;  %v5530_v16 = vld [vmem:[%s7566_s3 + $0x84] ss:$16 sps:$4 sm:$0xff]   ;;  %7894 = vst [vmem:[#allocation24_spill] sm:$0xff] %v5536_v17  ;;  %7895 = vst [vmem:[#allocation21_spill] sm:$0xff] %v5542_v18 }
 0x225   :  { %7892 = vst [vmem:[#allocation22_spill] sm:$0xff] %v5524_v15  ;;  %7893 = vst [vmem:[#allocation19_spill] sm:$0xff] %v5530_v16  ;;  %v5560_v21 = vld [vmem:[%s7566_s3 + $0x6c] ss:$16 sps:$4 sm:$0xff]   ;;  %v5566_v22 = vld [vmem:[%s7566_s3 + $0x60] ss:$16 sps:$4 sm:$0xff]  }
 0x226   :  { %v5253_v26 = vpack.c.bf16 %v1153_v20, %v1152_v23  ;;  %v5554_v20 = vld [vmem:[%s7566_s3 + $0x64] ss:$16 sps:$4 sm:$0xff]   ;;  %7898 = vst [vmem:[#allocation27_spill] sm:$0xff] %v5560_v21  ;;  %7899 = vst [vmem:[#allocation25_spill] sm:$0xff] %v5566_v22  ;;  %v5572_v23 = vld [vmem:[%s7566_s3 + $0x68] ss:$16 sps:$4 sm:$0xff]  }
 0x227   :  { %1257 = vmatpush1.bf16.msra.mxu0 %v7877_v24  ;;  %1300 = vmatpush1.bf16.msra.mxu1 %v7878_v25  ;;  %7897 = vst [vmem:[#allocation23_spill] sm:$0xff] %v5554_v20  ;;  %7900 = vst [vmem:[#allocation28_spill] sm:$0xff] %v5572_v23  ;;  %v5578_v24 = vld [vmem:[%s7566_s3 + $0x44] ss:$16 sps:$4 sm:$0xff]   ;;  %v5584_v25 = vld [vmem:[%s7566_s3 + $0x4c] ss:$16 sps:$4 sm:$0xff]  }
 0x228   :  { %1385 = vmatprep.subr.bf16.mxu0 %v5258_v27  ;;  %1428 = vmatprep.subr.bf16.mxu1 %v5264_v28  ;;  %7901 = vst [vmem:[#allocation29_spill] sm:$0xff] %v5578_v24  ;;  %7902 = vst [vmem:[#allocation30_spill] sm:$0xff] %v5584_v25 }
 0x22a   :  { %1275 = vmatmul.mubr.bf16.vlgmr.msra.gmra.mxu0 %v5253_v26  ;;  %1318 = vmatmul.mubr.bf16.vlgmr.msra.gmra.mxu1 %v5253_v26 }
 0x22b   :  { %1386 = vmatpush1.bf16.msra.mxu0 %v5272_v29  ;;  %1429 = vmatpush1.bf16.msra.mxu1 %v5278_v31 }
 0x22c   :  { %1387 = vmatprep.subr.bf16.mxu0 %v5284_v32  ;;  %1430 = vmatprep.subr.bf16.mxu1 %v5290_v33 }
 0x22d   :  { %1417 = vmatprep.mubr.bf16.mxu0 %v7792_v60  ;;  %1460 = vmatprep.mubr.bf16.mxu1 %v7792_v60 }
 0x22f   :  { %1388 = vmatpush1.bf16.msra.mxu0 %v5298_v34  ;;  %1431 = vmatpush1.bf16.msra.mxu1 %v5304_v35 }
 0x230   :  { %1389 = vmatprep.subr.bf16.mxu0 %v5310_v36  ;;  %1432 = vmatprep.subr.bf16.mxu1 %v5316_v37 }
 0x233   :  { %1390 = vmatpush1.bf16.msra.mxu0 %v5322_v38  ;;  %1433 = vmatpush1.bf16.msra.mxu1 %v5328_v39 }
 0x234   :  { %1391 = vmatprep.subr.bf16.mxu0 %v5334_v43  ;;  %1434 = vmatprep.subr.bf16.mxu1 %v5340_v40 }
 0x237   :  { %1392 = vmatpush1.bf16.msra.mxu0 %v5346_v56  ;;  %1435 = vmatpush1.bf16.msra.mxu1 %v5352_v49 }
 0x238   :  { %1393 = vmatprep.subr.bf16.mxu0 %v5358_v59  ;;  %1436 = vmatprep.subr.bf16.mxu1 %v5364_v47 }
 0x23b   :  { %1394 = vmatpush1.bf16.msra.mxu0 %v5370_v62  ;;  %1437 = vmatpush1.bf16.msra.mxu1 %v5376_v46 }
 0x23c   :  { %1395 = vmatprep.subr.bf16.mxu0 %v5382_v44  ;;  %1438 = vmatprep.subr.bf16.mxu1 %v5388_v1 }
 0x23f   :  { %1396 = vmatpush1.bf16.msra.mxu0 %v5394_v57  ;;  %1439 = vmatpush1.bf16.msra.mxu1 %v5400_v52 }
 0x240   :  { %1397 = vmatprep.subr.bf16.mxu0 %v5406_v0  ;;  %1440 = vmatprep.subr.bf16.mxu1 %v5412_v50 }
 0x243   :  { %1398 = vmatpush1.bf16.msra.mxu0 %v5418_v48  ;;  %1441 = vmatpush1.bf16.msra.mxu1 %v5424_v55 }
 0x244   :  { %1399 = vmatprep.subr.bf16.mxu0 %v5430_v3  ;;  %1442 = vmatprep.subr.bf16.mxu1 %v5436_v63 }
 0x247   :  { %1400 = vmatpush1.bf16.msra.mxu0 %v5442_v51  ;;  %1443 = vmatpush1.bf16.msra.mxu1 %v5448_v45 }
 0x248   :  { %1517 = vmatprep.subr.bf16.mxu0 %v5454_v2  ;;  %1560 = vmatprep.subr.bf16.mxu1 %v5460_v4 }
 0x24a   :  { %1418 = vmatmul.mubr.bf16.vlgmr.msra.gmra.mxu0 %v5253_v26  ;;  %1461 = vmatmul.mubr.bf16.vlgmr.msra.gmra.mxu1 %v5253_v26  ;;  %v5590_v26 = vld [vmem:[%s7566_s3 + $0x40] ss:$16 sps:$4 sm:$0xff]  }
 0x24b   :  { %1518 = vmatpush1.bf16.msra.mxu0 %v5468_v5  ;;  %1561 = vmatpush1.bf16.msra.mxu1 %v5474_v6  ;;  %7903 = vst [vmem:[#allocation31_spill] sm:$0xff] %v5590_v26 }
 0x24c   :  { %1519 = vmatprep.subr.bf16.mxu0 %v5480_v7  ;;  %1562 = vmatprep.subr.bf16.mxu1 %v5486_v9 }
 0x24d   :  { %1549 = vmatprep.mubr.bf16.mxu0 %v7792_v60  ;;  %1592 = vmatprep.mubr.bf16.mxu1 %v7792_v60 }
 0x24f   :  { %1520 = vmatpush1.bf16.msra.mxu0 %v5494_v10  ;;  %1563 = vmatpush1.bf16.msra.mxu1 %v5500_v11 }
 0x250   :  { %1521 = vmatprep.subr.bf16.mxu0 %v5506_v12  ;;  %1564 = vmatprep.subr.bf16.mxu1 %v5512_v13 }
 0x253   :  { %1522 = vmatpush1.bf16.msra.mxu0 %v5518_v14  ;;  %1565 = vmatpush1.bf16.msra.mxu1 %v5524_v15 }
 0x254   :  { %1523 = vmatprep.subr.bf16.mxu0 %v5530_v16  ;;  %1566 = vmatprep.subr.bf16.mxu1 %v5536_v17 }
 0x257   :  { %1524 = vmatpush1.bf16.msra.mxu0 %v5542_v18  ;;  %1567 = vmatpush1.bf16.msra.mxu1 %v5548_v19 }
 0x258   :  { %1525 = vmatprep.subr.bf16.mxu0 %v5554_v20  ;;  %1568 = vmatprep.subr.bf16.mxu1 %v5560_v21 }
 0x25b   :  { %1526 = vmatpush1.bf16.msra.mxu0 %v5566_v22  ;;  %1569 = vmatpush1.bf16.msra.mxu1 %v5572_v23  ;;  %v5596_v23 = vld [vmem:[%s7566_s3 + $0x48] ss:$16 sps:$4 sm:$0xff]  }
 0x25c   :  { %1527 = vmatprep.subr.bf16.mxu0 %v5578_v24  ;;  %1570 = vmatprep.subr.bf16.mxu1 %v5584_v25  ;;  %7904 = vst [vmem:[#allocation32_spill] sm:$0xff] %v5596_v23  ;;  %v5602_v24 = vld [vmem:[%s7566_s3 + $0x24] ss:$16 sps:$4 sm:$0xff]   ;;  %v5608_v25 = vld [vmem:[%s7566_s3 + $0x2c] ss:$16 sps:$4 sm:$0xff]  }
 0x25d   :  { %7905 = vst [vmem:[#allocation33_spill] sm:$0xff] %v5602_v24  ;;  %7906 = vst [vmem:[#allocation34_spill] sm:$0xff] %v5608_v25 }
 0x25f   :  { %1528 = vmatpush1.bf16.msra.mxu0 %v5590_v26  ;;  %1571 = vmatpush1.bf16.msra.mxu1 %v5596_v23  ;;  %v5614_v26 = vld [vmem:[%s7566_s3 + $0x20] ss:$16 sps:$4 sm:$0xff]   ;;  %v5620_v23 = vld [vmem:[%s7566_s3 + $0x28] ss:$16 sps:$4 sm:$0xff]  }
 0x260   :  { %1529 = vmatprep.subr.bf16.mxu0 %v5602_v24  ;;  %1572 = vmatprep.subr.bf16.mxu1 %v5608_v25  ;;  %7907 = vst [vmem:[#allocation35_spill] sm:$0xff] %v5614_v26  ;;  %7908 = vst [vmem:[#allocation36_spill] sm:$0xff] %v5620_v23  ;;  %v5626_v24 = vld [vmem:[%s7566_s3 + $0x4] ss:$16 sps:$4 sm:$0xff]   ;;  %v5632_v25 = vld [vmem:[%s7566_s3 + $0xc] ss:$16 sps:$4 sm:$0xff]  }
 0x261   :  { %7909 = vst [vmem:[#allocation37_spill] sm:$0xff] %v5626_v24  ;;  %7910 = vst [vmem:[#allocation38_spill] sm:$0xff] %v5632_v25 }
 0x263   :  { %1530 = vmatpush1.bf16.msra.mxu0 %v5614_v26  ;;  %1573 = vmatpush1.bf16.msra.mxu1 %v5620_v23  ;;  %v5638_v26 = vld [vmem:[%s7566_s3] ss:$16 sps:$4 sm:$0xff]   ;;  %v5644_v23 = vld [vmem:[%s7566_s3 + $0x8] ss:$16 sps:$4 sm:$0xff]  }
 0x264   :  { %1531 = vmatprep.subr.bf16.mxu0 %v5626_v24  ;;  %1574 = vmatprep.subr.bf16.mxu1 %v5632_v25  ;;  %7911 = vst [vmem:[#allocation39_spill] sm:$0xff] %v5638_v26  ;;  %7912 = vst [vmem:[#allocation40_spill] sm:$0xff] %v5644_v23  ;;  %v5650_v24 = vld [vmem:[%s7567_s2 + $0xe4] ss:$16 sps:$4 sm:$0xff]   ;;  %v5656_v25 = vld [vmem:[%s7567_s2 + $0xec] ss:$16 sps:$4 sm:$0xff]  }
 0x265   :  { %7913 = vst [vmem:[#allocation41_spill] sm:$0xff] %v5650_v24  ;;  %7914 = vst [vmem:[#allocation42_spill] sm:$0xff] %v5656_v25 }
 0x267   :  { %1532 = vmatpush1.bf16.msra.mxu0 %v5638_v26  ;;  %1575 = vmatpush1.bf16.msra.mxu1 %v5644_v23 }
 0x268   :  { %1603 = vmatprep.subr.bf16.mxu0 %v5650_v24  ;;  %1646 = vmatprep.subr.bf16.mxu1 %v5656_v25 }
 0x2ca   :  { %v1190_v26 = vpop.f32.mrf.mxu0  ;;  %v1233_v22 = vpop.f32.mrf.mxu1 }
 0x2cc   :  { %v1192_v21 = vpop.f32.mrf.mxu0  ;;  %v1235_v20 = vpop.f32.mrf.mxu1 }
 0x2ce   :  { %v1194_v19 = vpop.f32.mrf.mxu0  ;;  %v1237_v23 = vpop.f32.mrf.mxu1 }
 0x2d0   :  { %v1196_v18 = vpop.f32.mrf.mxu0  ;;  %v1239_v17 = vpop.f32.mrf.mxu1 }
 0x2ea   :  { %v1276_v16 = vpop.f32.mrf.mxu0  ;;  %v1319_v15 = vpop.f32.mrf.mxu1 }
 0x2eb   :  { %v1277_v14 = vadd.f32 %v1276_v16, %v1190_v26  ;;  %v1320_v11 = vadd.f32 %v1319_v15, %v1233_v22 }
 0x2ec   :  { %v1278_v13 = vpop.f32.mrf.mxu0  ;;  %v1321_v24 = vpop.f32.mrf.mxu1 }
 0x2ed   :  { %v1328_v12 = vadd.f32 %v1277_v14, %v5179_v41  ;;  %v1279_v10 = vadd.f32 %v1278_v13, %v1192_v21  ;;  %v1330_v2 = vadd.f32 %v1320_v11, %v5184_v54 }
 0x2ee   :  { %v1280_v9 = vpop.f32.mrf.mxu0  ;;  %v1323_v5 = vpop.f32.mrf.mxu1 }
 0x2ef   :  { %v1336_v7 = vmul.f32 0.5, %v1328_v12  ;;  %v1329_v25 = vadd.f32 %v1279_v10, %v5181_v61  ;;  %v1281_v6 = vadd.f32 %v1280_v9, %v1194_v19  ;;  %v1324_v26 = vadd.f32 %v1323_v5, %v1237_v23 }
 0x2f0   :  { %v1282_v4 = vpop.f32.mrf.mxu0  ;;  %v1325_v12 = vpop.f32.mrf.mxu1  ;;  %v1322_v10 = vadd.f32 %v1321_v24, %v1235_v20 }
 0x2f1   :  { %3911 = vtanh.f32 %v1336_v7  ;;  %v1344_v45 = vmul.f32 0.5, %v1329_v25  ;;  %v1283_v51 = vadd.f32 %v1282_v4, %v1196_v18  ;;  %v1332_v16 = vadd.f32 %v1281_v6, %v5179_v41 }
 0x2f2   :  { %v1334_v9 = vadd.f32 %v1324_v26, %v5184_v54  ;;  %v1326_v7 = vadd.f32 %v1325_v12, %v1239_v17  ;;  %v1331_v11 = vadd.f32 %v1322_v10, %v5191_v8  ;;  %v3678_v17 = vld [vmem:[%s7568_s0 + $0x40] sm:$0xff]  ;;  %v3680_v10 = vld [vmem:[%s7568_s0 + $0x50] sm:$0xff] }
 0x2f3   :  { %3913 = vtanh.f32 %v1344_v45  ;;  %v1333_v14 = vadd.f32 %v1283_v51, %v5181_v61  ;;  %v1337_v15 = vmul.f32 0.5, %v1332_v16  ;;  %v1377_v12 = vunpack.c.l.bf16 %v3678_v17 }
 0x2f4   :  { %3915 = vtanh.f32 %v1330_v2  ;;  %v1335_v4 = vadd.f32 %v1326_v7, %v5191_v8  ;;  %v1354_v18 = vmul.f32 0.5, %v1331_v11 }
 0x2f5   :  { %v1345_v13 = vmul.f32 0.5, %v1333_v14  ;;  %3917 = vtanh.f32 %v1337_v15 }
 0x2f6   :  { %v1355_v2 = vmul.f32 0.5, %v1335_v4  ;;  %v1378_v4 = vunpack.c.h.bf16 %v3678_v17 }
 0x2f7   :  { %3919 = vtanh.f32 %v1345_v13 }
 0x2f8   :  { %3921 = vtanh.f32 %v1334_v9 }
 0x2f9   :  { %3923 = vtanh.f32 %v1354_v18 }
 0x2fa   :  { %3925 = vtanh.f32 %v1355_v2 }
 0x2fe   :  { %v3912_v6 = vpop.eup %3911 }
 0x2ff   :  { %v1340_v45 = vmul.f32 0.5, %v3912_v6 }
 0x300   :  { %v3914_v5 = vpop.eup %3913 }
 0x301   :  { %v1342_v51 = vadd.f32 0.5, %v1340_v45  ;;  %v1348_v19 = vmul.f32 0.5, %v3914_v5  ;;  %v3916_v21 = vpop.eup %3915 }
 0x302   :  { %v3918_v22 = vpop.eup %3917 }
 0x303   :  { %v1350_v23 = vadd.f32 0.5, %v1348_v19  ;;  %v1341_v16 = vmul.f32 0.5, %v3918_v22  ;;  %v1364_v24 = vmul.f32 %v3916_v21, %v1342_v51  ;;  %v1381_v51 = vunpack.c.l.bf16 %v3680_v10 }
 0x304   :  { %v3920_v25 = vpop.eup %3919  ;;  %v1382_v22 = vunpack.c.h.bf16 %v3680_v10 }
 0x305   :  { %v1362_v20 = vmul.f32 %v1350_v23, %v5198_v30  ;;  %v1349_v26 = vmul.f32 0.5, %v3920_v25  ;;  %v1343_v14 = vadd.f32 0.5, %v1341_v16  ;;  %v3922_v9 = vpop.eup %3921  ;;  %v3679_v30 = vld [vmem:[%s7568_s0 + $0x48] sm:$0xff]  ;;  %v3681_v16 = vld [vmem:[%s7568_s0 + $0x58] sm:$0xff] }
 0x306   :  { %v1379_v19 = vunpack.c.l.bf16 %v3679_v30 }
 0x307   :  { %v5671_v15 = vadd.f32 %v1364_v24, %v1362_v20  ;;  %v1351_v13 = vadd.f32 0.5, %v1349_v26  ;;  %v1365_v11 = vmul.f32 %v3922_v9, %v1343_v14  ;;  %v3924_v14 = vpop.eup %3923 }
 0x309   :  { %v1363_v7 = vmul.f32 %v1351_v13, %v5204_v42  ;;  %3927 = vtanh.f32 %v5671_v15 }
 0x30a   :  { %v1419_v6 = vpop.f32.mrf.mxu0  ;;  %v1462_v45 = vpop.f32.mrf.mxu1 }
 0x30b   :  { %v5681_v5 = vadd.f32 %v1365_v11, %v1363_v7  ;;  %v1471_v18 = vadd.f32 %v1419_v6, %v1377_v12  ;;  %v1473_v24 = vadd.f32 %v1462_v45, %v1379_v19  ;;  %v1383_v12 = vunpack.c.l.bf16 %v3681_v16  ;;  %v3926_v7 = vpop.eup %3925 }
 0x30c   :  { %v1421_v2 = vpop.f32.mrf.mxu0  ;;  %v1464_v23 = vpop.f32.mrf.mxu1  ;;  %v1358_v6 = vmul.f32 0.5, %v3924_v14 }
 0x30d   :  { %7915 = vst [vmem:[#allocation43_spill] sm:$0xff] %v5681_v5  ;;  %3929 = vtanh.f32 %v5681_v5  ;;  %v1479_v21 = vmul.f32 0.5, %v1471_v18  ;;  %v1472_v42 = vadd.f32 %v1421_v2, %v1378_v4  ;;  %v1380_v4 = vunpack.c.h.bf16 %v3679_v30 }
 0x30e   :  { %v1423_v25 = vpop.f32.mrf.mxu0  ;;  %v1466_v11 = vpop.f32.mrf.mxu1  ;;  %v1359_v18 = vmul.f32 0.5, %v3926_v7  ;;  %v1360_v45 = vadd.f32 0.5, %v1358_v6  ;;  %v5702_v6 = vld [vmem:[%s7567_s2 + $0xc4] ss:$16 sps:$4 sm:$0xff]  }
 0x30f   :  { %3931 = vtanh.f32 %v1479_v21  ;;  %v1487_v17 = vmul.f32 0.5, %v1472_v42  ;;  %v1475_v20 = vadd.f32 %v1423_v25, %v1381_v51  ;;  %v1477_v2 = vadd.f32 %v1466_v11, %v1383_v12 }
 0x310   :  { %v1425_v26 = vpop.f32.mrf.mxu0  ;;  %v1384_v21 = vunpack.c.h.bf16 %v3681_v16  ;;  %v1468_v42 = vpop.f32.mrf.mxu1  ;;  %v1361_v19 = vadd.f32 0.5, %v1359_v18  ;;  %v1474_v25 = vadd.f32 %v1464_v23, %v1380_v4  ;;  %v5690_v23 = vld [vmem:[%s7567_s2 + $0xe0] ss:$16 sps:$4 sm:$0xff]   ;;  %v5708_v18 = vld [vmem:[%s7567_s2 + $0xcc] ss:$16 sps:$4 sm:$0xff]  }
 0x311   :  { %3933 = vtanh.f32 %v1487_v17  ;;  %v1480_v13 = vmul.f32 0.5, %v1475_v20  ;;  %v1476_v9 = vadd.f32 %v1425_v26, %v1382_v22 }
 0x312   :  { %v1478_v20 = vadd.f32 %v1468_v42, %v1384_v21 }
 0x313   :  { %3935 = vtanh.f32 %v1480_v13  ;;  %v1488_v10 = vmul.f32 0.5, %v1476_v9  ;;  %v1497_v9 = vmul.f32 0.5, %v1474_v25  ;;  %v5723_v25 = vld [vmem:[%s7567_s2 + $0xc8] ss:$16 sps:$4 sm:$0xff]  }
 0x314   :  { %3937 = vtanh.f32 %v1473_v24  ;;  %v1498_v14 = vmul.f32 0.5, %v1478_v20  ;;  %v5731_v20 = vld [vmem:[%s7567_s2 + $0xa4] ss:$16 sps:$4 sm:$0xff]  }
 0x315   :  { %3939 = vtanh.f32 %v1488_v10 }
 0x316   :  { %v3928_v51 = vpop.eup %3927  ;;  %3941 = vtanh.f32 %v1477_v2 }
 0x317   :  { %v1370_v22 = vmul.f32 %v3928_v51, %v1360_v45  ;;  %3943 = vtanh.f32 %v1497_v9 }
 0x318   :  { %3945 = vtanh.f32 %v1498_v14 }
 0x31a   :  { %v3930_v17 = vpop.eup %3929 }
 0x31b   :  { %v1371_v26 = vmul.f32 %v3930_v17, %v1361_v19  ;;  %v5717_v19 = vld [vmem:[%s7567_s2 + $0xc0] ss:$16 sps:$4 sm:$0xff]  }
 0x31c   :  { %v3932_v5 = vpop.eup %3931 }
 0x31d   :  { %v1483_v13 = vmul.f32 0.5, %v3932_v5  ;;  %v1516_v24 = vpack.c.bf16 %v1371_v26, %v1370_v22  ;;  %v5696_v5 = vld [vmem:[%s7567_s2 + $0xe8] ss:$16 sps:$4 sm:$0xff]   ;;  %v5737_v22 = vld [vmem:[%s7567_s2 + $0xac] ss:$16 sps:$4 sm:$0xff]  }
 0x31e   :  { %v3934_v30 = vpop.eup %3933 }
 0x31f   :  { %v1485_v7 = vadd.f32 0.5, %v1483_v13  ;;  %v1491_v12 = vmul.f32 0.5, %v3934_v30  ;;  %1550 = vmatmul.mubr.bf16.vlgmr.msra.gmra.mxu0 %v1516_v24  ;;  %1593 = vmatmul.mubr.bf16.vlgmr.msra.gmra.mxu1 %v1516_v24  ;;  %v5744_v24 = vld [vmem:[%s7567_s2 + $0xa0] ss:$16 sps:$4 sm:$0xff]   ;;  %v5750_v30 = vld [vmem:[%s7567_s2 + $0xa8] ss:$16 sps:$4 sm:$0xff]  }
 0x320   :  { %v3936_v16 = vpop.eup %3935  ;;  %1604 = vmatpush1.bf16.msra.mxu0 %v5690_v23  ;;  %1647 = vmatpush1.bf16.msra.mxu1 %v5696_v5 }
 0x321   :  { %v3938_v11 = vpop.eup %3937  ;;  %v1493_v10 = vadd.f32 0.5, %v1491_v12  ;;  %v1484_v4 = vmul.f32 0.5, %v3936_v16  ;;  %1605 = vmatprep.subr.bf16.mxu0 %v5702_v6  ;;  %1648 = vmatprep.subr.bf16.mxu1 %v5708_v18  ;;  %v5772_v12 = vld [vmem:[%s7567_s2 + $0x80] ss:$16 sps:$4 sm:$0xff]   ;;  %v5778_v16 = vld [vmem:[%s7567_s2 + $0x88] ss:$16 sps:$4 sm:$0xff]  }
 0x322   :  { %v3940_v2 = vpop.eup %3939  ;;  %1635 = vmatprep.mubr.bf16.mxu0 %v7792_v60  ;;  %1678 = vmatprep.mubr.bf16.mxu1 %v7792_v60  ;;  %v1507_v42 = vmul.f32 %v3938_v11, %v1485_v7  ;;  %v5765_v7 = vld [vmem:[%s7567_s2 + $0x8c] ss:$16 sps:$4 sm:$0xff]   ;;  %v5784_v11 = vld [vmem:[%s7567_s2 + $0x64] ss:$16 sps:$4 sm:$0xff]  }
 0x323   :  { %v1505_v21 = vmul.f32 %v1493_v10, %v5224_v58  ;;  %v1486_v51 = vadd.f32 0.5, %v1484_v4  ;;  %v1492_v45 = vmul.f32 0.5, %v3940_v2  ;;  %v3942_v26 = vpop.eup %3941  ;;  %v5790_v10 = vld [vmem:[%s7567_s2 + $0x6c] ss:$16 sps:$4 sm:$0xff]  }
 0x324   :  { %1606 = vmatpush1.bf16.msra.mxu0 %v5717_v19  ;;  %1649 = vmatpush1.bf16.msra.mxu1 %v5723_v25  ;;  %v3944_v4 = vpop.eup %3943 }
 0x325   :  { %v5726_v17 = vadd.f32 %v1507_v42, %v1505_v21  ;;  %v1494_v58 = vadd.f32 0.5, %v1492_v45  ;;  %1607 = vmatprep.subr.bf16.mxu0 %v5731_v20  ;;  %1650 = vmatprep.subr.bf16.mxu1 %v5737_v22  ;;  %v1508_v9 = vmul.f32 %v3942_v26, %v1486_v51  ;;  %v3946_v2 = vpop.eup %3945  ;;  %v5796_v21 = vld [vmem:[%s7567_s2 + $0x60] ss:$16 sps:$4 sm:$0xff]   ;;  %v5802_v42 = vld [vmem:[%s7567_s2 + $0x68] ss:$16 sps:$4 sm:$0xff]  }
 0x326   :  { %7916 = vst [vmem:[#allocation44_spill] sm:$0xff] %v5796_v21  ;;  %7917 = vst [vmem:[#allocation45_spill] sm:$0xff] %v5802_v42  ;;  %v5808_v51 = vld [vmem:[%s7567_s2 + $0x44] ss:$16 sps:$4 sm:$0xff]   ;;  %v5814_v45 = vld [vmem:[%s7567_s2 + $0x4c] ss:$16 sps:$4 sm:$0xff]  }
 0x327   :  { %v1506_v13 = vmul.f32 %v1494_v58, %v5229_v53  ;;  %3947 = vtanh.f32 %v5726_v17  ;;  %v5759_v53 = vld [vmem:[%s7567_s2 + $0x84] ss:$16 sps:$4 sm:$0xff]   ;;  %7918 = vst [vmem:[#allocation46_spill] sm:$0xff] %v5808_v51  ;;  %7919 = vst [vmem:[#allocation47_spill] sm:$0xff] %v5814_v45  ;;  %v1501_v58 = vmul.f32 0.5, %v3944_v4  ;;  %v1502_v26 = vmul.f32 0.5, %v3946_v2 }
 0x328   :  { %1608 = vmatpush1.bf16.msra.mxu0 %v5744_v24  ;;  %1651 = vmatpush1.bf16.msra.mxu1 %v5750_v30  ;;  %v5838_v4 = vld [vmem:[%s7567_s2 + $0x2c] ss:$16 sps:$4 sm:$0xff]  }
 0x329   :  { %v5754_v14 = vadd.f32 %v1508_v9, %v1506_v13  ;;  %1609 = vmatprep.subr.bf16.mxu0 %v5759_v53  ;;  %1652 = vmatprep.subr.bf16.mxu1 %v5765_v7  ;;  %v5820_v13 = vld [vmem:[%s7567_s2 + $0x40] ss:$16 sps:$4 sm:$0xff]   ;;  %v5826_v9 = vld [vmem:[%s7567_s2 + $0x48] ss:$16 sps:$4 sm:$0xff]   ;;  %7923 = vst [vmem:[#allocation51_spill] sm:$0xff] %v5838_v4 }
 0x32a   :  { %7920 = vst [vmem:[#allocation48_spill] sm:$0xff] %v5820_v13  ;;  %7921 = vst [vmem:[#allocation49_spill] sm:$0xff] %v5826_v9 }
 0x32b   :  { %3949 = vtanh.f32 %v5754_v14 }
 0x32c   :  { %1610 = vmatpush1.bf16.msra.mxu0 %v5772_v12  ;;  %1653 = vmatpush1.bf16.msra.mxu1 %v5778_v16 }
 0x32d   :  { %1611 = vmatprep.subr.bf16.mxu0 %v5784_v11  ;;  %1654 = vmatprep.subr.bf16.mxu1 %v5790_v10 }
 0x330   :  { %1612 = vmatpush1.bf16.msra.mxu0 %v5796_v21  ;;  %1655 = vmatpush1.bf16.msra.mxu1 %v5802_v42 }
 0x331   :  { %1613 = vmatprep.subr.bf16.mxu0 %v5808_v51  ;;  %1656 = vmatprep.subr.bf16.mxu1 %v5814_v45  ;;  %v5832_v45 = vld [vmem:[%s7567_s2 + $0x24] ss:$16 sps:$4 sm:$0xff]   ;;  %v1504_v51 = vadd.f32 0.5, %v1502_v26  ;;  %v5862_v26 = vld [vmem:[%s7567_s2 + $0xc] ss:$16 sps:$4 sm:$0xff]  }
 0x332   :  { %7922 = vst [vmem:[#allocation50_spill] sm:$0xff] %v5832_v45 }
 0x334   :  { %1614 = vmatpush1.bf16.msra.mxu0 %v5820_v13  ;;  %1657 = vmatpush1.bf16.msra.mxu1 %v5826_v9  ;;  %v3948_v2 = vpop.eup %3947  ;;  %v1503_v13 = vadd.f32 0.5, %v1501_v58  ;;  %v5844_v9 = vld [vmem:[%s7567_s2 + $0x20] ss:$16 sps:$4 sm:$0xff]   ;;  %v5856_v58 = vld [vmem:[%s7567_s2 + $0x4] ss:$16 sps:$4 sm:$0xff]  }
 0x335   :  { %1615 = vmatprep.subr.bf16.mxu0 %v5832_v45  ;;  %1658 = vmatprep.subr.bf16.mxu1 %v5838_v4  ;;  %7924 = vst [vmem:[#allocation52_spill] sm:$0xff] %v5844_v9  ;;  %v5850_v45 = vld [vmem:[%s7567_s2 + $0x28] ss:$16 sps:$4 sm:$0xff]  }
 0x336   :  { %v1513_v21 = vmul.f32 %v3948_v2, %v1503_v13  ;;  %v5868_v13 = vld [vmem:[%s7567_s2] ss:$16 sps:$4 sm:$0xff]  }
 0x337   :  { %v7959_v2 = vld [vmem:[#allocation41_spill] sm:$0xff] }
 0x338   :  { %v3950_v42 = vpop.eup %3949  ;;  %1616 = vmatpush1.bf16.msra.mxu0 %v5844_v9  ;;  %1659 = vmatpush1.bf16.msra.mxu1 %v5850_v45 }
 0x339   :  { %v1514_v4 = vmul.f32 %v3950_v42, %v1504_v51  ;;  %1617 = vmatprep.subr.bf16.mxu0 %v5856_v58  ;;  %1660 = vmatprep.subr.bf16.mxu1 %v5862_v26  ;;  %v5874_v42 = vld [vmem:[%s7567_s2 + $0x8] ss:$16 sps:$4 sm:$0xff]  }
 0x33a   :  { %v7956_v51 = vld [vmem:[#allocation38_spill] sm:$0xff] }
 0x33b   :  { %v1515_v9 = vpack.c.bf16 %v1514_v4, %v1513_v21  ;;  %v7955_v21 = vld [vmem:[#allocation37_spill] sm:$0xff]  ;;  %v7958_v4 = vld [vmem:[#allocation40_spill] sm:$0xff] }
 0x33c   :  { %1618 = vmatpush1.bf16.msra.mxu0 %v5868_v13  ;;  %1661 = vmatpush1.bf16.msra.mxu1 %v5874_v42 }
 0x33d   :  { %1746 = vmatprep.subr.bf16.mxu0 %v5258_v27  ;;  %1789 = vmatprep.subr.bf16.mxu1 %v5264_v28  ;;  %v7925_v27 = vld [vmem:[#allocation7_spill] sm:$0xff]  ;;  %v7926_v28 = vld [vmem:[#allocation9_spill] sm:$0xff] }
 0x33f   :  { %1636 = vmatmul.mubr.bf16.vlgmr.msra.gmra.mxu0 %v1515_v9  ;;  %1679 = vmatmul.mubr.bf16.vlgmr.msra.gmra.mxu1 %v1515_v9 }
 0x340   :  { %1747 = vmatpush1.bf16.msra.mxu0 %v5272_v29  ;;  %1790 = vmatpush1.bf16.msra.mxu1 %v5278_v31  ;;  %v7927_v29 = vld [vmem:[#allocation8_spill] sm:$0xff]  ;;  %v7928_v31 = vld [vmem:[#allocation10_spill] sm:$0xff] }
 0x341   :  { %1748 = vmatprep.subr.bf16.mxu0 %v5284_v32  ;;  %1791 = vmatprep.subr.bf16.mxu1 %v5290_v33  ;;  %v7929_v32 = vld [vmem:[#allocation11_spill] sm:$0xff]  ;;  %v7930_v33 = vld [vmem:[#allocation13_spill] sm:$0xff] }
 0x342   :  { %1778 = vmatprep.mubr.bf16.mxu0 %v7792_v60  ;;  %1821 = vmatprep.mubr.bf16.mxu1 %v7792_v60 }
 0x344   :  { %1749 = vmatpush1.bf16.msra.mxu0 %v5298_v34  ;;  %1792 = vmatpush1.bf16.msra.mxu1 %v5304_v35  ;;  %v7931_v34 = vld [vmem:[#allocation12_spill] sm:$0xff] }
 0x345   :  { %1750 = vmatprep.subr.bf16.mxu0 %v5310_v36  ;;  %1793 = vmatprep.subr.bf16.mxu1 %v5316_v37  ;;  %v7932_v35 = vld [vmem:[#allocation16_spill] sm:$0xff]  ;;  %v7933_v36 = vld [vmem:[#allocation14_spill] sm:$0xff] }
 0x346   :  { %v7934_v37 = vld [vmem:[#allocation18_spill] sm:$0xff] }
 0x348   :  { %1751 = vmatpush1.bf16.msra.mxu0 %v5322_v38  ;;  %1794 = vmatpush1.bf16.msra.mxu1 %v5328_v39  ;;  %v7935_v38 = vld [vmem:[#allocation15_spill] sm:$0xff]  ;;  %v7936_v39 = vld [vmem:[#allocation20_spill] sm:$0xff] }
 0x349   :  { %1752 = vmatprep.subr.bf16.mxu0 %v5334_v43  ;;  %1795 = vmatprep.subr.bf16.mxu1 %v5340_v40  ;;  %v7937_v43 = vld [vmem:[#allocation17_spill] sm:$0xff]  ;;  %v7938_v40 = vld [vmem:[#allocation22_spill] sm:$0xff] }
 0x34c   :  { %1753 = vmatpush1.bf16.msra.mxu0 %v5346_v56  ;;  %1796 = vmatpush1.bf16.msra.mxu1 %v5352_v49  ;;  %v7939_v56 = vld [vmem:[#allocation19_spill] sm:$0xff]  ;;  %v7940_v49 = vld [vmem:[#allocation24_spill] sm:$0xff] }
 0x34d   :  { %1754 = vmatprep.subr.bf16.mxu0 %v5358_v59  ;;  %1797 = vmatprep.subr.bf16.mxu1 %v5364_v47  ;;  %v7941_v59 = vld [vmem:[#allocation21_spill] sm:$0xff]  ;;  %v7942_v47 = vld [vmem:[#allocation26_spill] sm:$0xff] }
 0x350   :  { %1755 = vmatpush1.bf16.msra.mxu0 %v5370_v62  ;;  %1798 = vmatpush1.bf16.msra.mxu1 %v5376_v46  ;;  %v7943_v62 = vld [vmem:[#allocation23_spill] sm:$0xff] }
 0x351   :  { %1756 = vmatprep.subr.bf16.mxu0 %v5382_v44  ;;  %1799 = vmatprep.subr.bf16.mxu1 %v5388_v1  ;;  %v7944_v46 = vld [vmem:[#allocation27_spill] sm:$0xff]  ;;  %v7945_v44 = vld [vmem:[#allocation25_spill] sm:$0xff]  ;;  %v7946_v1 = vld [vmem:[#allocation28_spill] sm:$0xff] }
 0x354   :  { %1757 = vmatpush1.bf16.msra.mxu0 %v5394_v57  ;;  %1800 = vmatpush1.bf16.msra.mxu1 %v5400_v52  ;;  %v7947_v57 = vld [vmem:[#allocation29_spill] sm:$0xff]  ;;  %v7948_v52 = vld [vmem:[#allocation30_spill] sm:$0xff] }
 0x355   :  { %1758 = vmatprep.subr.bf16.mxu0 %v5406_v0  ;;  %1801 = vmatprep.subr.bf16.mxu1 %v5412_v50  ;;  %v7949_v0 = vld [vmem:[#allocation31_spill] sm:$0xff]  ;;  %v7950_v50 = vld [vmem:[#allocation32_spill] sm:$0xff] }
 0x358   :  { %1759 = vmatpush1.bf16.msra.mxu0 %v5418_v48  ;;  %1802 = vmatpush1.bf16.msra.mxu1 %v5424_v55  ;;  %v7951_v48 = vld [vmem:[#allocation33_spill] sm:$0xff]  ;;  %v7952_v55 = vld [vmem:[#allocation34_spill] sm:$0xff] }
 0x359   :  { %1760 = vmatprep.subr.bf16.mxu0 %v5430_v3  ;;  %1803 = vmatprep.subr.bf16.mxu1 %v5436_v63  ;;  %v7953_v3 = vld [vmem:[#allocation35_spill] sm:$0xff]  ;;  %v7954_v63 = vld [vmem:[#allocation36_spill] sm:$0xff] }
 0x35c   :  { %1761 = vmatpush1.bf16.msra.mxu0 %v7925_v27  ;;  %1804 = vmatpush1.bf16.msra.mxu1 %v7926_v28  ;;  %v7960_v27 = vld [vmem:[#allocation42_spill] sm:$0xff] }
 0x35d   :  { %1878 = vmatprep.subr.bf16.mxu0 %v7927_v29  ;;  %1921 = vmatprep.subr.bf16.mxu1 %v7928_v31 }
 0x35f   :  { %1779 = vmatmul.mubr.bf16.vlgmr.msra.gmra.mxu0 %v1515_v9  ;;  %1822 = vmatmul.mubr.bf16.vlgmr.msra.gmra.mxu1 %v1515_v9  ;;  %v7957_v9 = vld [vmem:[#allocation39_spill] sm:$0xff] }
 0x360   :  { %1879 = vmatpush1.bf16.msra.mxu0 %v7929_v32  ;;  %1922 = vmatpush1.bf16.msra.mxu1 %v7930_v33 }
 0x361   :  { %1880 = vmatprep.subr.bf16.mxu0 %v7931_v34  ;;  %1923 = vmatprep.subr.bf16.mxu1 %v7932_v35 }
 0x362   :  { %1910 = vmatprep.mubr.bf16.mxu0 %v7792_v60  ;;  %1953 = vmatprep.mubr.bf16.mxu1 %v7792_v60 }
 0x364   :  { %1881 = vmatpush1.bf16.msra.mxu0 %v7933_v36  ;;  %1924 = vmatpush1.bf16.msra.mxu1 %v7934_v37 }
 0x365   :  { %1882 = vmatprep.subr.bf16.mxu0 %v7935_v38  ;;  %1925 = vmatprep.subr.bf16.mxu1 %v7936_v39 }
 0x368   :  { %1883 = vmatpush1.bf16.msra.mxu0 %v7937_v43  ;;  %1926 = vmatpush1.bf16.msra.mxu1 %v7938_v40 }
 0x369   :  { %1884 = vmatprep.subr.bf16.mxu0 %v7939_v56  ;;  %1927 = vmatprep.subr.bf16.mxu1 %v7940_v49 }
 0x36c   :  { %1885 = vmatpush1.bf16.msra.mxu0 %v7941_v59  ;;  %1928 = vmatpush1.bf16.msra.mxu1 %v7942_v47 }
 0x36d   :  { %1886 = vmatprep.subr.bf16.mxu0 %v7943_v62  ;;  %1929 = vmatprep.subr.bf16.mxu1 %v7944_v46 }
 0x370   :  { %1887 = vmatpush1.bf16.msra.mxu0 %v7945_v44  ;;  %1930 = vmatpush1.bf16.msra.mxu1 %v7946_v1 }
 0x371   :  { %1888 = vmatprep.subr.bf16.mxu0 %v7947_v57  ;;  %1931 = vmatprep.subr.bf16.mxu1 %v7948_v52 }
 0x374   :  { %1889 = vmatpush1.bf16.msra.mxu0 %v7949_v0  ;;  %1932 = vmatpush1.bf16.msra.mxu1 %v7950_v50 }
 0x375   :  { %1890 = vmatprep.subr.bf16.mxu0 %v7951_v48  ;;  %1933 = vmatprep.subr.bf16.mxu1 %v7952_v55 }
 0x378   :  { %1891 = vmatpush1.bf16.msra.mxu0 %v7953_v3  ;;  %1934 = vmatpush1.bf16.msra.mxu1 %v7954_v63 }
 0x379   :  { %1892 = vmatprep.subr.bf16.mxu0 %v7955_v21  ;;  %1935 = vmatprep.subr.bf16.mxu1 %v7956_v51 }
 0x37c   :  { %1893 = vmatpush1.bf16.msra.mxu0 %v7957_v9  ;;  %1936 = vmatpush1.bf16.msra.mxu1 %v7958_v4 }
 0x37d   :  { %1964 = vmatprep.subr.bf16.mxu0 %v7959_v2  ;;  %2007 = vmatprep.subr.bf16.mxu1 %v7960_v27 }
 0x3df   :  { %v1551_v28 = vpop.f32.mrf.mxu0  ;;  %v1594_v29 = vpop.f32.mrf.mxu1 }
 0x3e1   :  { %v1553_v31 = vpop.f32.mrf.mxu0  ;;  %v1596_v32 = vpop.f32.mrf.mxu1 }
 0x3e3   :  { %v1555_v33 = vpop.f32.mrf.mxu0  ;;  %v1598_v34 = vpop.f32.mrf.mxu1 }
 0x3e5   :  { %v1557_v35 = vpop.f32.mrf.mxu0  ;;  %v1600_v36 = vpop.f32.mrf.mxu1 }
 0x3ff   :  { %v1637_v37 = vpop.f32.mrf.mxu0  ;;  %v1680_v38 = vpop.f32.mrf.mxu1 }
 0x400   :  { %v1638_v39 = vadd.f32 %v1637_v37, %v1551_v28  ;;  %v1681_v49 = vadd.f32 %v1680_v38, %v1594_v29 }
 0x401   :  { %v1639_v43 = vpop.f32.mrf.mxu0  ;;  %v1682_v40 = vpop.f32.mrf.mxu1 }
 0x402   :  { %v1689_v56 = vadd.f32 %v1638_v39, %v5179_v41  ;;  %v1640_v59 = vadd.f32 %v1639_v43, %v1553_v31  ;;  %v1691_v52 = vadd.f32 %v1681_v49, %v5184_v54  ;;  %v1683_v4 = vadd.f32 %v1682_v40, %v1596_v32  ;;  %v3682_v32 = vld [vmem:[%s7568_s0 + $0x60] sm:$0xff] }
 0x403   :  { %v1641_v47 = vpop.f32.mrf.mxu0  ;;  %v1684_v1 = vpop.f32.mrf.mxu1 }
 0x404   :  { %v1697_v62 = vmul.f32 0.5, %v1689_v56  ;;  %v1690_v46 = vadd.f32 %v1640_v59, %v5181_v61  ;;  %v1642_v44 = vadd.f32 %v1641_v47, %v1555_v33  ;;  %v1685_v55 = vadd.f32 %v1684_v1, %v1598_v34 }
 0x405   :  { %v1643_v57 = vpop.f32.mrf.mxu0  ;;  %v1686_v51 = vpop.f32.mrf.mxu1  ;;  %v1692_v27 = vadd.f32 %v1683_v4, %v5191_v8  ;;  %v1738_v1 = vunpack.c.l.bf16 %v3682_v32 }
 0x406   :  { %3951 = vtanh.f32 %v1697_v62  ;;  %v1705_v0 = vmul.f32 0.5, %v1690_v46  ;;  %v1644_v50 = vadd.f32 %v1643_v57, %v1557_v35  ;;  %v1693_v48 = vadd.f32 %v1642_v44, %v5179_v41 }
 0x407   :  { %v1695_v9 = vadd.f32 %v1685_v55, %v5184_v54  ;;  %v1687_v2 = vadd.f32 %v1686_v51, %v1600_v36  ;;  %v1715_v34 = vmul.f32 0.5, %v1692_v27  ;;  %v1739_v55 = vunpack.c.h.bf16 %v3682_v32 }
 0x408   :  { %3953 = vtanh.f32 %v1705_v0  ;;  %v1694_v3 = vadd.f32 %v1644_v50, %v5181_v61  ;;  %v1698_v63 = vmul.f32 0.5, %v1693_v48  ;;  %v7961_v0 = vld [vmem:[#allocation43_spill] sm:$0xff] }
 0x409   :  { %3955 = vtanh.f32 %v1691_v52  ;;  %v1696_v28 = vadd.f32 %v1687_v2, %v5191_v8  ;;  %v3684_v52 = vld [vmem:[%s7568_s0 + $0x70] sm:$0xff] }
 0x40a   :  { %v1706_v21 = vmul.f32 0.5, %v1694_v3  ;;  %3957 = vtanh.f32 %v1698_v63 }
 0x40b   :  { %v1716_v38 = vmul.f32 0.5, %v1696_v28 }
 0x40c   :  { %3959 = vtanh.f32 %v1706_v21 }
 0x40d   :  { %3961 = vtanh.f32 %v1695_v9  ;;  %v1742_v9 = vunpack.c.l.bf16 %v3684_v52 }
 0x40e   :  { %3963 = vtanh.f32 %v1715_v34  ;;  %v3685_v34 = vld [vmem:[%s7568_s0 + $0x78] sm:$0xff] }
 0x40f   :  { %3965 = vtanh.f32 %v1716_v38 }
 0x413   :  { %v3952_v29 = vpop.eup %3951 }
 0x414   :  { %v1701_v31 = vmul.f32 0.5, %v3952_v29  ;;  %v1743_v29 = vunpack.c.h.bf16 %v3684_v52 }
 0x415   :  { %v3954_v33 = vpop.eup %3953 }
 0x416   :  { %v1703_v35 = vadd.f32 0.5, %v1701_v31  ;;  %v1709_v37 = vmul.f32 0.5, %v3954_v33  ;;  %v3956_v39 = vpop.eup %3955 }
 0x417   :  { %v3958_v43 = vpop.eup %3957 }
 0x418   :  { %v1711_v56 = vadd.f32 0.5, %v1709_v37  ;;  %v1702_v59 = vmul.f32 0.5, %v3958_v43  ;;  %v1725_v40 = vmul.f32 %v3956_v39, %v1703_v35 }
 0x419   :  { %v3960_v49 = vpop.eup %3959 }
 0x41a   :  { %v1723_v36 = vmul.f32 %v1711_v56, %v5671_v15  ;;  %v1710_v47 = vmul.f32 0.5, %v3960_v49  ;;  %v1704_v62 = vadd.f32 0.5, %v1702_v59  ;;  %v3962_v57 = vpop.eup %3961  ;;  %v3683_v15 = vld [vmem:[%s7568_s0 + $0x68] sm:$0xff]  ;;  %v1744_v49 = vunpack.c.l.bf16 %v3685_v34 }
 0x41b   :  { %v1740_v4 = vunpack.c.l.bf16 %v3683_v15  ;;  %v3964_v43 = vpop.eup %3963 }
 0x41c   :  { %v5959_v46 = vadd.f32 %v1725_v40, %v1723_v36  ;;  %v1712_v44 = vadd.f32 0.5, %v1710_v47  ;;  %v1726_v48 = vmul.f32 %v3962_v57, %v1704_v62  ;;  %v3966_v32 = vpop.eup %3965  ;;  %v1741_v47 = vunpack.c.h.bf16 %v3683_v15 }
 0x41d   :  { %v1719_v62 = vmul.f32 0.5, %v3964_v43  ;;  %v1745_v57 = vunpack.c.h.bf16 %v3685_v34 }
 0x41e   :  { %v1724_v50 = vmul.f32 %v1712_v44, %v7961_v0  ;;  %3967 = vtanh.f32 %v5959_v46  ;;  %v1720_v44 = vmul.f32 0.5, %v3966_v32 }
 0x41f   :  { %v1780_v3 = vpop.f32.mrf.mxu0  ;;  %v1823_v63 = vpop.f32.mrf.mxu1 }
 0x420   :  { %v5969_v21 = vadd.f32 %v1726_v48, %v1724_v50  ;;  %v1832_v51 = vadd.f32 %v1780_v3, %v1738_v1  ;;  %v1834_v38 = vadd.f32 %v1823_v63, %v1740_v4  ;;  %v1721_v50 = vadd.f32 0.5, %v1719_v62  ;;  %v7970_v62 = vld [vmem:[#allocation52_spill] sm:$0xff] }
 0x421   :  { %v1782_v2 = vpop.f32.mrf.mxu0  ;;  %v1825_v31 = vpop.f32.mrf.mxu1  ;;  %v1722_v48 = vadd.f32 0.5, %v1720_v44 }
 0x422   :  { %3969 = vtanh.f32 %v5969_v21  ;;  %v1840_v27 = vmul.f32 0.5, %v1832_v51  ;;  %v1833_v28 = vadd.f32 %v1782_v2, %v1739_v55  ;;  %v1835_v55 = vadd.f32 %v1825_v31, %v1741_v47 }
 0x423   :  { %v1784_v33 = vpop.f32.mrf.mxu0  ;;  %v1827_v36 = vpop.f32.mrf.mxu1 }
 0x424   :  { %3971 = vtanh.f32 %v1840_v27  ;;  %v1848_v35 = vmul.f32 0.5, %v1833_v28  ;;  %v1836_v37 = vadd.f32 %v1784_v33, %v1742_v9  ;;  %v1838_v1 = vadd.f32 %v1827_v36, %v1744_v49 }
 0x425   :  { %v1786_v39 = vpop.f32.mrf.mxu0  ;;  %v1829_v52 = vpop.f32.mrf.mxu1  ;;  %v1858_v27 = vmul.f32 0.5, %v1835_v55  ;;  %v6078_v55 = vld [vmem:[%s7565_s1 + $0xac] ss:$16 sps:$4 sm:$0xff]  }
 0x426   :  { %3973 = vtanh.f32 %v1848_v35  ;;  %v1841_v56 = vmul.f32 0.5, %v1836_v37  ;;  %v1837_v59 = vadd.f32 %v1786_v39, %v1743_v29  ;;  %v1839_v63 = vadd.f32 %v1829_v52, %v1745_v57  ;;  %v6020_v52 = vld [vmem:[%s7565_s1 + $0xe4] ss:$16 sps:$4 sm:$0xff]  }
 0x428   :  { %3975 = vtanh.f32 %v1841_v56  ;;  %v1849_v40 = vmul.f32 0.5, %v1837_v59  ;;  %v1859_v29 = vmul.f32 0.5, %v1839_v63  ;;  %v6090_v63 = vld [vmem:[%s7565_s1 + $0xa8] ss:$16 sps:$4 sm:$0xff]  }
 0x429   :  { %3977 = vtanh.f32 %v1834_v38 }
 0x42a   :  { %3979 = vtanh.f32 %v1849_v40 }
 0x42b   :  { %v3968_v0 = vpop.eup %3967  ;;  %3981 = vtanh.f32 %v1838_v1 }
 0x42c   :  { %v1731_v51 = vmul.f32 %v3968_v0, %v1721_v50  ;;  %3983 = vtanh.f32 %v1858_v27  ;;  %v6060_v0 = vld [vmem:[%s7565_s1 + $0xc0] ss:$16 sps:$4 sm:$0xff]   ;;  %v6066_v50 = vld [vmem:[%s7565_s1 + $0xc8] ss:$16 sps:$4 sm:$0xff]   ;;  %v6120_v27 = vld [vmem:[%s7565_s1 + $0x64] ss:$16 sps:$4 sm:$0xff]  }
 0x42d   :  { %3985 = vtanh.f32 %v1859_v29  ;;  %v6138_v29 = vld [vmem:[%s7565_s1 + $0x68] ss:$16 sps:$4 sm:$0xff]  }
 0x42f   :  { %v3970_v3 = vpop.eup %3969 }
 0x430   :  { %v1732_v9 = vmul.f32 %v3970_v3, %v1722_v48  ;;  %v6072_v48 = vld [vmem:[%s7565_s1 + $0xa4] ss:$16 sps:$4 sm:$0xff]   ;;  %v6084_v3 = vld [vmem:[%s7565_s1 + $0xa0] ss:$16 sps:$4 sm:$0xff]  }
 0x431   :  { %v3972_v4 = vpop.eup %3971 }
 0x432   :  { %v1844_v2 = vmul.f32 0.5, %v3972_v4  ;;  %v1877_v28 = vpack.c.bf16 %v1732_v9, %v1731_v51  ;;  %v6096_v51 = vld [vmem:[%s7565_s1 + $0x84] ss:$16 sps:$4 sm:$0xff]   ;;  %v6102_v9 = vld [vmem:[%s7565_s1 + $0x8c] ss:$16 sps:$4 sm:$0xff]  }
 0x433   :  { %v3974_v15 = vpop.eup %3973  ;;  %v6108_v4 = vld [vmem:[%s7565_s1 + $0x80] ss:$16 sps:$4 sm:$0xff]  }
 0x434   :  { %v1846_v33 = vadd.f32 0.5, %v1844_v2  ;;  %v1852_v35 = vmul.f32 0.5, %v3974_v15  ;;  %1911 = vmatmul.mubr.bf16.vlgmr.msra.gmra.mxu0 %v1877_v28  ;;  %1954 = vmatmul.mubr.bf16.vlgmr.msra.gmra.mxu1 %v1877_v28  ;;  %v6114_v2 = vld [vmem:[%s7565_s1 + $0x88] ss:$16 sps:$4 sm:$0xff]   ;;  %v6126_v28 = vld [vmem:[%s7565_s1 + $0x6c] ss:$16 sps:$4 sm:$0xff]  }
 0x435   :  { %v3976_v34 = vpop.eup %3975  ;;  %1965 = vmatpush1.bf16.msra.mxu0 %v5690_v23  ;;  %2008 = vmatpush1.bf16.msra.mxu1 %v5696_v5  ;;  %v6132_v15 = vld [vmem:[%s7565_s1 + $0x60] ss:$16 sps:$4 sm:$0xff]  }
 0x436   :  { %v3978_v31 = vpop.eup %3977  ;;  %v1854_v37 = vadd.f32 0.5, %v1852_v35  ;;  %v1845_v38 = vmul.f32 0.5, %v3976_v34  ;;  %1966 = vmatprep.subr.bf16.mxu0 %v5702_v6  ;;  %2009 = vmatprep.subr.bf16.mxu1 %v5708_v18  ;;  %v6150_v35 = vld [vmem:[%s7565_s1 + $0x4c] ss:$16 sps:$4 sm:$0xff]   ;;  %v6156_v34 = vld [vmem:[%s7565_s1 + $0x40] ss:$16 sps:$4 sm:$0xff]  }
 0x437   :  { %v3980_v39 = vpop.eup %3979  ;;  %1996 = vmatprep.mubr.bf16.mxu0 %v7792_v60  ;;  %2039 = vmatprep.mubr.bf16.mxu1 %v7792_v60  ;;  %v1868_v56 = vmul.f32 %v3978_v31, %v1846_v33  ;;  %v6144_v33 = vld [vmem:[%s7565_s1 + $0x44] ss:$16 sps:$4 sm:$0xff]   ;;  %v6162_v31 = vld [vmem:[%s7565_s1 + $0x48] ss:$16 sps:$4 sm:$0xff]  }
 0x438   :  { %v1866_v43 = vmul.f32 %v1854_v37, %v5726_v17  ;;  %v1847_v23 = vadd.f32 0.5, %v1845_v38  ;;  %v1853_v49 = vmul.f32 0.5, %v3980_v39  ;;  %v3982_v18 = vpop.eup %3981  ;;  %v6168_v37 = vld [vmem:[%s7565_s1 + $0x24] ss:$16 sps:$4 sm:$0xff]   ;;  %v6174_v38 = vld [vmem:[%s7565_s1 + $0x2c] ss:$16 sps:$4 sm:$0xff]  }
 0x439   :  { %1967 = vmatpush1.bf16.msra.mxu0 %v5717_v19  ;;  %2010 = vmatpush1.bf16.msra.mxu1 %v5723_v25  ;;  %v3984_v25 = vpop.eup %3983  ;;  %v6180_v39 = vld [vmem:[%s7565_s1 + $0x20] ss:$16 sps:$4 sm:$0xff]  }
 0x43a   :  { %v5984_v5 = vadd.f32 %v1868_v56, %v1866_v43  ;;  %v1855_v6 = vadd.f32 0.5, %v1853_v49  ;;  %1968 = vmatprep.subr.bf16.mxu0 %v5731_v20  ;;  %2011 = vmatprep.subr.bf16.mxu1 %v5737_v22  ;;  %v1869_v32 = vmul.f32 %v3982_v18, %v1847_v23  ;;  %v3986_v17 = vpop.eup %3985  ;;  %v7962_v20 = vld [vmem:[#allocation44_spill] sm:$0xff]  ;;  %v7963_v22 = vld [vmem:[#allocation45_spill] sm:$0xff] }
 0x43b   :  { %v6186_v43 = vld [vmem:[%s7565_s1 + $0x28] ss:$16 sps:$4 sm:$0xff]   ;;  %v6192_v56 = vld [vmem:[%s7565_s1 + $0x4] ss:$16 sps:$4 sm:$0xff]   ;;  %v6198_v23 = vld [vmem:[%s7565_s1 + $0xc] ss:$16 sps:$4 sm:$0xff]  }
 0x43c   :  { %v1867_v59 = vmul.f32 %v1855_v6, %v5754_v14  ;;  %3987 = vtanh.f32 %v5984_v5  ;;  %v1862_v14 = vmul.f32 0.5, %v3984_v25  ;;  %v6204_v49 = vld [vmem:[%s7565_s1] ss:$16 sps:$4 sm:$0xff]   ;;  %v6210_v6 = vld [vmem:[%s7565_s1 + $0x8] ss:$16 sps:$4 sm:$0xff]  }
 0x43d   :  { %1969 = vmatpush1.bf16.msra.mxu0 %v5744_v24  ;;  %2012 = vmatpush1.bf16.msra.mxu1 %v5750_v30  ;;  %v7964_v24 = vld [vmem:[#allocation46_spill] sm:$0xff]  ;;  %v7965_v30 = vld [vmem:[#allocation47_spill] sm:$0xff]  ;;  %7971 = vst [vmem:[#allocation53_spill] sm:$0xff] %v6204_v49  ;;  %7972 = vst [vmem:[#allocation54_spill] sm:$0xff] %v6210_v6 }
 0x43e   :  { %v5992_v19 = vadd.f32 %v1869_v32, %v1867_v59  ;;  %1970 = vmatprep.subr.bf16.mxu0 %v5759_v53  ;;  %2013 = vmatprep.subr.bf16.mxu1 %v5765_v7  ;;  %v1863_v53 = vmul.f32 0.5, %v3986_v17  ;;  %v7966_v7 = vld [vmem:[#allocation48_spill] sm:$0xff]  ;;  %v1864_v36 = vadd.f32 0.5, %v1862_v14  ;;  %v6216_v18 = vld [vmem:[%s7566_s3 + $0xe4] ss:$16 sps:$4 sm:$0xff]  }
 0x43f   :  { %7973 = vst [vmem:[#allocation55_spill] sm:$0xff] %v6216_v18  ;;  %v6222_v59 = vld [vmem:[%s7566_s3 + $0xec] ss:$16 sps:$4 sm:$0xff]   ;;  %v6230_v32 = vld [vmem:[%s7566_s3 + $0xe0] ss:$16 sps:$4 sm:$0xff]  }
 0x440   :  { %3989 = vtanh.f32 %v5992_v19  ;;  %v1865_v40 = vadd.f32 0.5, %v1863_v53  ;;  %7974 = vst [vmem:[#allocation56_spill] sm:$0xff] %v6222_v59  ;;  %7975 = vst [vmem:[#allocation57_spill] sm:$0xff] %v6230_v32  ;;  %v6236_v25 = vld [vmem:[%s7566_s3 + $0xe8] ss:$16 sps:$4 sm:$0xff]  }
 0x441   :  { %1971 = vmatpush1.bf16.msra.mxu0 %v5772_v12  ;;  %2014 = vmatpush1.bf16.msra.mxu1 %v5778_v16  ;;  %v7967_v12 = vld [vmem:[#allocation49_spill] sm:$0xff]  ;;  %v7968_v16 = vld [vmem:[#allocation50_spill] sm:$0xff]  ;;  %7976 = vst [vmem:[#allocation58_spill] sm:$0xff] %v6236_v25 }
 0x442   :  { %1972 = vmatprep.subr.bf16.mxu0 %v5784_v11  ;;  %2015 = vmatprep.subr.bf16.mxu1 %v5790_v10  ;;  %v7969_v11 = vld [vmem:[#allocation51_spill] sm:$0xff]  ;;  %v6274_v14 = vld [vmem:[%s7566_s3 + $0xac] ss:$16 sps:$4 sm:$0xff]  }
 0x443   :  { %v6242_v17 = vld [vmem:[%s7566_s3 + $0xc4] ss:$16 sps:$4 sm:$0xff]   ;;  %7982 = vst [vmem:[#allocation10_spill] sm:$0xff] %v6274_v14  ;;  %v6280_v53 = vld [vmem:[%s7566_s3 + $0xa0] ss:$16 sps:$4 sm:$0xff]  }
 0x444   :  { %7977 = vst [vmem:[#allocation59_spill] sm:$0xff] %v6242_v17  ;;  %7983 = vst [vmem:[#allocation11_spill] sm:$0xff] %v6280_v53 }
 0x445   :  { %1973 = vmatpush1.bf16.msra.mxu0 %v7962_v20  ;;  %2016 = vmatpush1.bf16.msra.mxu1 %v7963_v22  ;;  %v6248_v20 = vld [vmem:[%s7566_s3 + $0xcc] ss:$16 sps:$4 sm:$0xff]   ;;  %v6256_v22 = vld [vmem:[%s7566_s3 + $0xc0] ss:$16 sps:$4 sm:$0xff]  }
 0x446   :  { %1974 = vmatprep.subr.bf16.mxu0 %v7964_v24  ;;  %2017 = vmatprep.subr.bf16.mxu1 %v7965_v30  ;;  %7978 = vst [vmem:[#allocation60_spill] sm:$0xff] %v6248_v20  ;;  %7979 = vst [vmem:[#allocation7_spill] sm:$0xff] %v6256_v22  ;;  %v6262_v24 = vld [vmem:[%s7566_s3 + $0xc8] ss:$16 sps:$4 sm:$0xff]   ;;  %v6268_v30 = vld [vmem:[%s7566_s3 + $0xa4] ss:$16 sps:$4 sm:$0xff]  }
 0x447   :  { %7980 = vst [vmem:[#allocation9_spill] sm:$0xff] %v6262_v24  ;;  %7981 = vst [vmem:[#allocation8_spill] sm:$0xff] %v6268_v30 }
 0x449   :  { %1975 = vmatpush1.bf16.msra.mxu0 %v7966_v7  ;;  %2018 = vmatpush1.bf16.msra.mxu1 %v7967_v12  ;;  %v3988_v10 = vpop.eup %3987  ;;  %v6286_v7 = vld [vmem:[%s7566_s3 + $0xa8] ss:$16 sps:$4 sm:$0xff]   ;;  %v6292_v12 = vld [vmem:[%s7566_s3 + $0x84] ss:$16 sps:$4 sm:$0xff]  }
 0x44a   :  { %1976 = vmatprep.subr.bf16.mxu0 %v7968_v16  ;;  %2019 = vmatprep.subr.bf16.mxu1 %v7969_v11  ;;  %v1874_v44 = vmul.f32 %v3988_v10, %v1864_v36  ;;  %7984 = vst [vmem:[#allocation13_spill] sm:$0xff] %v6286_v7  ;;  %7985 = vst [vmem:[#allocation12_spill] sm:$0xff] %v6292_v12  ;;  %v6298_v16 = vld [vmem:[%s7566_s3 + $0x8c] ss:$16 sps:$4 sm:$0xff]   ;;  %v6304_v11 = vld [vmem:[%s7566_s3 + $0x80] ss:$16 sps:$4 sm:$0xff]  }
 0x44b   :  { %7986 = vst [vmem:[#allocation16_spill] sm:$0xff] %v6298_v16  ;;  %7987 = vst [vmem:[#allocation14_spill] sm:$0xff] %v6304_v11  ;;  %v6310_v10 = vld [vmem:[%s7566_s3 + $0x88] ss:$16 sps:$4 sm:$0xff]   ;;  %v6316_v36 = vld [vmem:[%s7566_s3 + $0x64] ss:$16 sps:$4 sm:$0xff]  }
 0x44c   :  { %7988 = vst [vmem:[#allocation18_spill] sm:$0xff] %v6310_v10  ;;  %7989 = vst [vmem:[#allocation15_spill] sm:$0xff] %v6316_v36 }
 0x44d   :  { %v3990_v47 = vpop.eup %3989  ;;  %1977 = vmatpush1.bf16.msra.mxu0 %v7970_v62  ;;  %2020 = vmatpush1.bf16.msra.mxu1 %v5850_v45  ;;  %v6026_v45 = vld [vmem:[%s7565_s1 + $0xec] ss:$16 sps:$4 sm:$0xff]   ;;  %v6334_v62 = vld [vmem:[%s7566_s3 + $0x68] ss:$16 sps:$4 sm:$0xff]  }
 0x44e   :  { %v1875_v1 = vmul.f32 %v3990_v47, %v1865_v40  ;;  %1978 = vmatprep.subr.bf16.mxu0 %v5856_v58  ;;  %2021 = vmatprep.subr.bf16.mxu1 %v5862_v26  ;;  %v6034_v58 = vld [vmem:[%s7565_s1 + $0xe0] ss:$16 sps:$4 sm:$0xff]   ;;  %v6040_v26 = vld [vmem:[%s7565_s1 + $0xe8] ss:$16 sps:$4 sm:$0xff]   ;;  %v6322_v40 = vld [vmem:[%s7566_s3 + $0x6c] ss:$16 sps:$4 sm:$0xff]  }
 0x44f   :  { %7990 = vst [vmem:[#allocation20_spill] sm:$0xff] %v6322_v40  ;;  %v6328_v47 = vld [vmem:[%s7566_s3 + $0x60] ss:$16 sps:$4 sm:$0xff]   ;;  %7992 = vst [vmem:[#allocation22_spill] sm:$0xff] %v6334_v62 }
 0x450   :  { %v6013_v57 = vpack.c.bf16 %v1875_v1, %v1874_v44  ;;  %7991 = vst [vmem:[#allocation17_spill] sm:$0xff] %v6328_v47  ;;  %v6340_v44 = vld [vmem:[%s7566_s3 + $0x44] ss:$16 sps:$4 sm:$0xff]   ;;  %v6346_v1 = vld [vmem:[%s7566_s3 + $0x4c] ss:$16 sps:$4 sm:$0xff]  }
 0x451   :  { %1979 = vmatpush1.bf16.msra.mxu0 %v5868_v13  ;;  %2022 = vmatpush1.bf16.msra.mxu1 %v5874_v42  ;;  %v6046_v13 = vld [vmem:[%s7565_s1 + $0xc4] ss:$16 sps:$4 sm:$0xff]   ;;  %v6052_v42 = vld [vmem:[%s7565_s1 + $0xcc] ss:$16 sps:$4 sm:$0xff]   ;;  %7993 = vst [vmem:[#allocation19_spill] sm:$0xff] %v6340_v44  ;;  %7994 = vst [vmem:[#allocation24_spill] sm:$0xff] %v6346_v1 }
 0x452   :  { %2107 = vmatprep.subr.bf16.mxu0 %v6020_v52  ;;  %2150 = vmatprep.subr.bf16.mxu1 %v6026_v45 }
 0x454   :  { %1997 = vmatmul.mubr.bf16.vlgmr.msra.gmra.mxu0 %v6013_v57  ;;  %2040 = vmatmul.mubr.bf16.vlgmr.msra.gmra.mxu1 %v6013_v57 }
 0x455   :  { %2108 = vmatpush1.bf16.msra.mxu0 %v6034_v58  ;;  %2151 = vmatpush1.bf16.msra.mxu1 %v6040_v26 }
 0x456   :  { %2109 = vmatprep.subr.bf16.mxu0 %v6046_v13  ;;  %2152 = vmatprep.subr.bf16.mxu1 %v6052_v42 }
 0x457   :  { %2139 = vmatprep.mubr.bf16.mxu0 %v7792_v60  ;;  %2182 = vmatprep.mubr.bf16.mxu1 %v7792_v60 }
 0x459   :  { %2110 = vmatpush1.bf16.msra.mxu0 %v6060_v0  ;;  %2153 = vmatpush1.bf16.msra.mxu1 %v6066_v50 }
 0x45a   :  { %2111 = vmatprep.subr.bf16.mxu0 %v6072_v48  ;;  %2154 = vmatprep.subr.bf16.mxu1 %v6078_v55 }
 0x45d   :  { %2112 = vmatpush1.bf16.msra.mxu0 %v6084_v3  ;;  %2155 = vmatpush1.bf16.msra.mxu1 %v6090_v63 }
 0x45e   :  { %2113 = vmatprep.subr.bf16.mxu0 %v6096_v51  ;;  %2156 = vmatprep.subr.bf16.mxu1 %v6102_v9 }
 0x461   :  { %2114 = vmatpush1.bf16.msra.mxu0 %v6108_v4  ;;  %2157 = vmatpush1.bf16.msra.mxu1 %v6114_v2 }
 0x462   :  { %2115 = vmatprep.subr.bf16.mxu0 %v6120_v27  ;;  %2158 = vmatprep.subr.bf16.mxu1 %v6126_v28 }
 0x465   :  { %2116 = vmatpush1.bf16.msra.mxu0 %v6132_v15  ;;  %2159 = vmatpush1.bf16.msra.mxu1 %v6138_v29 }
 0x466   :  { %2117 = vmatprep.subr.bf16.mxu0 %v6144_v33  ;;  %2160 = vmatprep.subr.bf16.mxu1 %v6150_v35 }
 0x469   :  { %2118 = vmatpush1.bf16.msra.mxu0 %v6156_v34  ;;  %2161 = vmatpush1.bf16.msra.mxu1 %v6162_v31 }
 0x46a   :  { %2119 = vmatprep.subr.bf16.mxu0 %v6168_v37  ;;  %2162 = vmatprep.subr.bf16.mxu1 %v6174_v38 }
 0x46d   :  { %2120 = vmatpush1.bf16.msra.mxu0 %v6180_v39  ;;  %2163 = vmatpush1.bf16.msra.mxu1 %v6186_v43 }
 0x46e   :  { %2121 = vmatprep.subr.bf16.mxu0 %v6192_v56  ;;  %2164 = vmatprep.subr.bf16.mxu1 %v6198_v23 }
 0x471   :  { %2122 = vmatpush1.bf16.msra.mxu0 %v6204_v49  ;;  %2165 = vmatpush1.bf16.msra.mxu1 %v6210_v6 }
 0x472   :  { %2239 = vmatprep.subr.bf16.mxu0 %v6216_v18  ;;  %2282 = vmatprep.subr.bf16.mxu1 %v6222_v59 }
 0x474   :  { %2140 = vmatmul.mubr.bf16.vlgmr.msra.gmra.mxu0 %v6013_v57  ;;  %2183 = vmatmul.mubr.bf16.vlgmr.msra.gmra.mxu1 %v6013_v57  ;;  %v6352_v57 = vld [vmem:[%s7566_s3 + $0x40] ss:$16 sps:$4 sm:$0xff]  }
 0x475   :  { %2240 = vmatpush1.bf16.msra.mxu0 %v6230_v32  ;;  %2283 = vmatpush1.bf16.msra.mxu1 %v6236_v25  ;;  %7995 = vst [vmem:[#allocation21_spill] sm:$0xff] %v6352_v57 }
 0x476   :  { %2241 = vmatprep.subr.bf16.mxu0 %v6242_v17  ;;  %2284 = vmatprep.subr.bf16.mxu1 %v6248_v20 }
 0x477   :  { %2271 = vmatprep.mubr.bf16.mxu0 %v7792_v60  ;;  %2314 = vmatprep.mubr.bf16.mxu1 %v7792_v60 }
 0x479   :  { %2242 = vmatpush1.bf16.msra.mxu0 %v6256_v22  ;;  %2285 = vmatpush1.bf16.msra.mxu1 %v6262_v24 }
 0x47a   :  { %2243 = vmatprep.subr.bf16.mxu0 %v6268_v30  ;;  %2286 = vmatprep.subr.bf16.mxu1 %v6274_v14 }
 0x47d   :  { %2244 = vmatpush1.bf16.msra.mxu0 %v6280_v53  ;;  %2287 = vmatpush1.bf16.msra.mxu1 %v6286_v7 }
 0x47e   :  { %2245 = vmatprep.subr.bf16.mxu0 %v6292_v12  ;;  %2288 = vmatprep.subr.bf16.mxu1 %v6298_v16 }
 0x481   :  { %2246 = vmatpush1.bf16.msra.mxu0 %v6304_v11  ;;  %2289 = vmatpush1.bf16.msra.mxu1 %v6310_v10 }
 0x482   :  { %2247 = vmatprep.subr.bf16.mxu0 %v6316_v36  ;;  %2290 = vmatprep.subr.bf16.mxu1 %v6322_v40 }
 0x485   :  { %2248 = vmatpush1.bf16.msra.mxu0 %v6328_v47  ;;  %2291 = vmatpush1.bf16.msra.mxu1 %v6334_v62  ;;  %v6358_v62 = vld [vmem:[%s7566_s3 + $0x48] ss:$16 sps:$4 sm:$0xff]  }
 0x486   :  { %2249 = vmatprep.subr.bf16.mxu0 %v6340_v44  ;;  %2292 = vmatprep.subr.bf16.mxu1 %v6346_v1  ;;  %7996 = vst [vmem:[#allocation26_spill] sm:$0xff] %v6358_v62  ;;  %v6364_v44 = vld [vmem:[%s7566_s3 + $0x24] ss:$16 sps:$4 sm:$0xff]   ;;  %v6370_v1 = vld [vmem:[%s7566_s3 + $0x2c] ss:$16 sps:$4 sm:$0xff]  }
 0x487   :  { %7997 = vst [vmem:[#allocation23_spill] sm:$0xff] %v6364_v44  ;;  %7998 = vst [vmem:[#allocation27_spill] sm:$0xff] %v6370_v1 }
 0x489   :  { %2250 = vmatpush1.bf16.msra.mxu0 %v6352_v57  ;;  %2293 = vmatpush1.bf16.msra.mxu1 %v6358_v62  ;;  %v6376_v57 = vld [vmem:[%s7566_s3 + $0x20] ss:$16 sps:$4 sm:$0xff]   ;;  %v6382_v62 = vld [vmem:[%s7566_s3 + $0x28] ss:$16 sps:$4 sm:$0xff]  }
 0x48a   :  { %2251 = vmatprep.subr.bf16.mxu0 %v6364_v44  ;;  %2294 = vmatprep.subr.bf16.mxu1 %v6370_v1  ;;  %7999 = vst [vmem:[#allocation25_spill] sm:$0xff] %v6376_v57  ;;  %8000 = vst [vmem:[#allocation28_spill] sm:$0xff] %v6382_v62  ;;  %v6388_v44 = vld [vmem:[%s7566_s3 + $0x4] ss:$16 sps:$4 sm:$0xff]   ;;  %v6394_v1 = vld [vmem:[%s7566_s3 + $0xc] ss:$16 sps:$4 sm:$0xff]  }
 0x48b   :  { %8001 = vst [vmem:[#allocation29_spill] sm:$0xff] %v6388_v44  ;;  %8002 = vst [vmem:[#allocation30_spill] sm:$0xff] %v6394_v1 }
 0x48d   :  { %2252 = vmatpush1.bf16.msra.mxu0 %v6376_v57  ;;  %2295 = vmatpush1.bf16.msra.mxu1 %v6382_v62  ;;  %v6400_v57 = vld [vmem:[%s7566_s3] ss:$16 sps:$4 sm:$0xff]   ;;  %v6406_v62 = vld [vmem:[%s7566_s3 + $0x8] ss:$16 sps:$4 sm:$0xff]  }
 0x48e   :  { %2253 = vmatprep.subr.bf16.mxu0 %v6388_v44  ;;  %2296 = vmatprep.subr.bf16.mxu1 %v6394_v1  ;;  %8003 = vst [vmem:[#allocation31_spill] sm:$0xff] %v6400_v57  ;;  %8004 = vst [vmem:[#allocation32_spill] sm:$0xff] %v6406_v62  ;;  %v6412_v44 = vld [vmem:[%s7567_s2 + $0xe4] ss:$16 sps:$4 sm:$0xff]   ;;  %v6418_v1 = vld [vmem:[%s7567_s2 + $0xec] ss:$16 sps:$4 sm:$0xff]  }
 0x48f   :  { %8005 = vst [vmem:[#allocation33_spill] sm:$0xff] %v6412_v44  ;;  %8006 = vst [vmem:[#allocation34_spill] sm:$0xff] %v6418_v1 }
 0x491   :  { %2254 = vmatpush1.bf16.msra.mxu0 %v6400_v57  ;;  %2297 = vmatpush1.bf16.msra.mxu1 %v6406_v62 }
 0x492   :  { %2325 = vmatprep.subr.bf16.mxu0 %v6412_v44  ;;  %2368 = vmatprep.subr.bf16.mxu1 %v6418_v1 }
 0x4f4   :  { %v1912_v57 = vpop.f32.mrf.mxu0  ;;  %v1955_v47 = vpop.f32.mrf.mxu1 }
 0x4f6   :  { %v1914_v40 = vpop.f32.mrf.mxu0  ;;  %v1957_v36 = vpop.f32.mrf.mxu1 }
 0x4f8   :  { %v1916_v10 = vpop.f32.mrf.mxu0  ;;  %v1959_v62 = vpop.f32.mrf.mxu1 }
 0x4fa   :  { %v1918_v11 = vpop.f32.mrf.mxu0  ;;  %v1961_v16 = vpop.f32.mrf.mxu1 }
 0x514   :  { %v1998_v12 = vpop.f32.mrf.mxu0  ;;  %v2041_v7 = vpop.f32.mrf.mxu1 }
 0x515   :  { %v1999_v53 = vadd.f32 %v1998_v12, %v1912_v57  ;;  %v2042_v24 = vadd.f32 %v2041_v7, %v1955_v47 }
 0x516   :  { %v2000_v14 = vpop.f32.mrf.mxu0  ;;  %v2043_v44 = vpop.f32.mrf.mxu1 }
 0x517   :  { %v2050_v30 = vadd.f32 %v1999_v53, %v5179_v41  ;;  %v2001_v22 = vadd.f32 %v2000_v14, %v1914_v40  ;;  %v2052_v18 = vadd.f32 %v2042_v24, %v5184_v54 }
 0x518   :  { %v2002_v20 = vpop.f32.mrf.mxu0  ;;  %v2045_v32 = vpop.f32.mrf.mxu1 }
 0x519   :  { %v2058_v17 = vmul.f32 0.5, %v2050_v30  ;;  %v2051_v1 = vadd.f32 %v2001_v22, %v5181_v61  ;;  %v2003_v25 = vadd.f32 %v2002_v20, %v1916_v10  ;;  %v2046_v57 = vadd.f32 %v2045_v32, %v1959_v62 }
 0x51a   :  { %v2004_v59 = vpop.f32.mrf.mxu0  ;;  %v2047_v30 = vpop.f32.mrf.mxu1  ;;  %v2044_v22 = vadd.f32 %v2043_v44, %v1957_v36 }
 0x51b   :  { %3991 = vtanh.f32 %v2058_v17  ;;  %v2066_v6 = vmul.f32 0.5, %v2051_v1  ;;  %v2005_v49 = vadd.f32 %v2004_v59, %v1918_v11  ;;  %v2054_v12 = vadd.f32 %v2003_v25, %v5179_v41 }
 0x51c   :  { %v2056_v20 = vadd.f32 %v2046_v57, %v5184_v54  ;;  %v2048_v17 = vadd.f32 %v2047_v30, %v1961_v16  ;;  %v2053_v24 = vadd.f32 %v2044_v22, %v5191_v8  ;;  %v3686_v16 = vld [vmem:[%s7568_s0 + $0x80] sm:$0xff]  ;;  %v3688_v22 = vld [vmem:[%s7568_s0 + $0x90] sm:$0xff] }
 0x51d   :  { %3993 = vtanh.f32 %v2066_v6  ;;  %v2055_v53 = vadd.f32 %v2005_v49, %v5181_v61  ;;  %v2059_v7 = vmul.f32 0.5, %v2054_v12  ;;  %v2099_v30 = vunpack.c.l.bf16 %v3686_v16 }
 0x51e   :  { %3995 = vtanh.f32 %v2052_v18  ;;  %v2057_v59 = vadd.f32 %v2048_v17, %v5191_v8  ;;  %v2076_v11 = vmul.f32 0.5, %v2053_v24 }
 0x51f   :  { %v2067_v14 = vmul.f32 0.5, %v2055_v53  ;;  %3997 = vtanh.f32 %v2059_v7 }
 0x520   :  { %v2077_v18 = vmul.f32 0.5, %v2057_v59  ;;  %v2100_v59 = vunpack.c.h.bf16 %v3686_v16 }
 0x521   :  { %3999 = vtanh.f32 %v2067_v14 }
 0x522   :  { %4001 = vtanh.f32 %v2056_v20 }
 0x523   :  { %4003 = vtanh.f32 %v2076_v11 }
 0x524   :  { %4005 = vtanh.f32 %v2077_v18 }
 0x528   :  { %v3992_v25 = vpop.eup %3991 }
 0x529   :  { %v2062_v6 = vmul.f32 0.5, %v3992_v25 }
 0x52a   :  { %v3994_v32 = vpop.eup %3993 }
 0x52b   :  { %v2064_v49 = vadd.f32 0.5, %v2062_v6  ;;  %v2070_v10 = vmul.f32 0.5, %v3994_v32  ;;  %v3996_v40 = vpop.eup %3995 }
 0x52c   :  { %v3998_v47 = vpop.eup %3997 }
 0x52d   :  { %v2072_v62 = vadd.f32 0.5, %v2070_v10  ;;  %v2063_v12 = vmul.f32 0.5, %v3998_v47  ;;  %v2086_v44 = vmul.f32 %v3996_v40, %v2064_v49  ;;  %v2103_v49 = vunpack.c.l.bf16 %v3688_v22 }
 0x52e   :  { %v4000_v1 = vpop.eup %3999  ;;  %v2104_v47 = vunpack.c.h.bf16 %v3688_v22 }
 0x52f   :  { %v2084_v36 = vmul.f32 %v2072_v62, %v5959_v46  ;;  %v2071_v57 = vmul.f32 0.5, %v4000_v1  ;;  %v2065_v53 = vadd.f32 0.5, %v2063_v12  ;;  %v4002_v20 = vpop.eup %4001  ;;  %v3687_v46 = vld [vmem:[%s7568_s0 + $0x88] sm:$0xff]  ;;  %v3689_v12 = vld [vmem:[%s7568_s0 + $0x98] sm:$0xff] }
 0x530   :  { %v2101_v10 = vunpack.c.l.bf16 %v3687_v46 }
 0x531   :  { %v6433_v7 = vadd.f32 %v2086_v44, %v2084_v36  ;;  %v2073_v14 = vadd.f32 0.5, %v2071_v57  ;;  %v2087_v24 = vmul.f32 %v4002_v20, %v2065_v53  ;;  %v4004_v53 = vpop.eup %4003 }
 0x533   :  { %v2085_v17 = vmul.f32 %v2073_v14, %v5969_v21  ;;  %4007 = vtanh.f32 %v6433_v7 }
 0x534   :  { %v2141_v25 = vpop.f32.mrf.mxu0  ;;  %v2184_v6 = vpop.f32.mrf.mxu1 }
 0x535   :  { %v6443_v32 = vadd.f32 %v2087_v24, %v2085_v17  ;;  %v2193_v11 = vadd.f32 %v2141_v25, %v2099_v30  ;;  %v2195_v44 = vadd.f32 %v2184_v6, %v2101_v10  ;;  %v2105_v30 = vunpack.c.l.bf16 %v3689_v12  ;;  %v4006_v17 = vpop.eup %4005 }
 0x536   :  { %v2143_v18 = vpop.f32.mrf.mxu0  ;;  %v2186_v62 = vpop.f32.mrf.mxu1  ;;  %v2080_v25 = vmul.f32 0.5, %v4004_v53 }
 0x537   :  { %8007 = vst [vmem:[#allocation35_spill] sm:$0xff] %v6443_v32  ;;  %4009 = vtanh.f32 %v6443_v32  ;;  %v2201_v40 = vmul.f32 0.5, %v2193_v11  ;;  %v2194_v21 = vadd.f32 %v2143_v18, %v2100_v59  ;;  %v2102_v59 = vunpack.c.h.bf16 %v3687_v46 }
 0x538   :  { %v2145_v1 = vpop.f32.mrf.mxu0  ;;  %v2188_v24 = vpop.f32.mrf.mxu1  ;;  %v2081_v11 = vmul.f32 0.5, %v4006_v17  ;;  %v2082_v6 = vadd.f32 0.5, %v2080_v25  ;;  %v6464_v25 = vld [vmem:[%s7567_s2 + $0xc4] ss:$16 sps:$4 sm:$0xff]  }
 0x539   :  { %4011 = vtanh.f32 %v2201_v40  ;;  %v2209_v16 = vmul.f32 0.5, %v2194_v21  ;;  %v2197_v36 = vadd.f32 %v2145_v1, %v2103_v49  ;;  %v2199_v18 = vadd.f32 %v2188_v24, %v2105_v30 }
 0x53a   :  { %v2147_v57 = vpop.f32.mrf.mxu0  ;;  %v2106_v40 = vunpack.c.h.bf16 %v3689_v12  ;;  %v2190_v21 = vpop.f32.mrf.mxu1  ;;  %v2083_v10 = vadd.f32 0.5, %v2081_v11  ;;  %v2196_v1 = vadd.f32 %v2186_v62, %v2102_v59  ;;  %v6452_v62 = vld [vmem:[%s7567_s2 + $0xe0] ss:$16 sps:$4 sm:$0xff]   ;;  %v6470_v11 = vld [vmem:[%s7567_s2 + $0xcc] ss:$16 sps:$4 sm:$0xff]  }
 0x53b   :  { %4013 = vtanh.f32 %v2209_v16  ;;  %v2202_v14 = vmul.f32 0.5, %v2197_v36  ;;  %v2198_v20 = vadd.f32 %v2147_v57, %v2104_v47 }
 0x53c   :  { %v2200_v36 = vadd.f32 %v2190_v21, %v2106_v40 }
 0x53d   :  { %4015 = vtanh.f32 %v2202_v14  ;;  %v2210_v22 = vmul.f32 0.5, %v2198_v20  ;;  %v2219_v20 = vmul.f32 0.5, %v2196_v1  ;;  %v6485_v1 = vld [vmem:[%s7567_s2 + $0xc8] ss:$16 sps:$4 sm:$0xff]  }
 0x53e   :  { %4017 = vtanh.f32 %v2195_v44  ;;  %v2220_v53 = vmul.f32 0.5, %v2200_v36  ;;  %v6493_v36 = vld [vmem:[%s7567_s2 + $0xa4] ss:$16 sps:$4 sm:$0xff]  }
 0x53f   :  { %4019 = vtanh.f32 %v2210_v22 }
 0x540   :  { %v4008_v49 = vpop.eup %4007  ;;  %4021 = vtanh.f32 %v2199_v18 }
 0x541   :  { %v2092_v47 = vmul.f32 %v4008_v49, %v2082_v6  ;;  %4023 = vtanh.f32 %v2219_v20 }
 0x542   :  { %4025 = vtanh.f32 %v2220_v53 }
 0x544   :  { %v4010_v16 = vpop.eup %4009 }
 0x545   :  { %v2093_v57 = vmul.f32 %v4010_v16, %v2083_v10  ;;  %v6479_v10 = vld [vmem:[%s7567_s2 + $0xc0] ss:$16 sps:$4 sm:$0xff]  }
 0x546   :  { %v4012_v32 = vpop.eup %4011 }
 0x547   :  { %v2205_v14 = vmul.f32 0.5, %v4012_v32  ;;  %v2238_v44 = vpack.c.bf16 %v2093_v57, %v2092_v47  ;;  %v6458_v32 = vld [vmem:[%s7567_s2 + $0xe8] ss:$16 sps:$4 sm:$0xff]   ;;  %v6499_v47 = vld [vmem:[%s7567_s2 + $0xac] ss:$16 sps:$4 sm:$0xff]  }
 0x548   :  { %v4014_v46 = vpop.eup %4013 }
 0x549   :  { %v2207_v17 = vadd.f32 0.5, %v2205_v14  ;;  %v2213_v30 = vmul.f32 0.5, %v4014_v46  ;;  %2272 = vmatmul.mubr.bf16.vlgmr.msra.gmra.mxu0 %v2238_v44  ;;  %2315 = vmatmul.mubr.bf16.vlgmr.msra.gmra.mxu1 %v2238_v44  ;;  %v6506_v44 = vld [vmem:[%s7567_s2 + $0xa0] ss:$16 sps:$4 sm:$0xff]   ;;  %v6512_v46 = vld [vmem:[%s7567_s2 + $0xa8] ss:$16 sps:$4 sm:$0xff]  }
 0x54a   :  { %v4016_v12 = vpop.eup %4015  ;;  %2326 = vmatpush1.bf16.msra.mxu0 %v6452_v62  ;;  %2369 = vmatpush1.bf16.msra.mxu1 %v6458_v32 }
 0x54b   :  { %v4018_v24 = vpop.eup %4017  ;;  %v2215_v22 = vadd.f32 0.5, %v2213_v30  ;;  %v2206_v59 = vmul.f32 0.5, %v4016_v12  ;;  %2327 = vmatprep.subr.bf16.mxu0 %v6464_v25  ;;  %2370 = vmatprep.subr.bf16.mxu1 %v6470_v11  ;;  %v6534_v30 = vld [vmem:[%s7567_s2 + $0x80] ss:$16 sps:$4 sm:$0xff]   ;;  %v6540_v12 = vld [vmem:[%s7567_s2 + $0x88] ss:$16 sps:$4 sm:$0xff]  }
 0x54c   :  { %v4020_v18 = vpop.eup %4019  ;;  %2357 = vmatprep.mubr.bf16.mxu0 %v7792_v60  ;;  %2400 = vmatprep.mubr.bf16.mxu1 %v7792_v60  ;;  %v2229_v21 = vmul.f32 %v4018_v24, %v2207_v17  ;;  %v6527_v17 = vld [vmem:[%s7567_s2 + $0x8c] ss:$16 sps:$4 sm:$0xff]   ;;  %v6546_v24 = vld [vmem:[%s7567_s2 + $0x64] ss:$16 sps:$4 sm:$0xff]  }
 0x54d   :  { %v2227_v40 = vmul.f32 %v2215_v22, %v5984_v5  ;;  %v2208_v49 = vadd.f32 0.5, %v2206_v59  ;;  %v2214_v6 = vmul.f32 0.5, %v4020_v18  ;;  %v4022_v57 = vpop.eup %4021  ;;  %v6552_v22 = vld [vmem:[%s7567_s2 + $0x6c] ss:$16 sps:$4 sm:$0xff]  }
 0x54e   :  { %2328 = vmatpush1.bf16.msra.mxu0 %v6479_v10  ;;  %2371 = vmatpush1.bf16.msra.mxu1 %v6485_v1  ;;  %v4024_v59 = vpop.eup %4023 }
 0x54f   :  { %v6488_v16 = vadd.f32 %v2229_v21, %v2227_v40  ;;  %v2216_v5 = vadd.f32 0.5, %v2214_v6  ;;  %2329 = vmatprep.subr.bf16.mxu0 %v6493_v36  ;;  %2372 = vmatprep.subr.bf16.mxu1 %v6499_v47  ;;  %v2230_v20 = vmul.f32 %v4022_v57, %v2208_v49  ;;  %v4026_v18 = vpop.eup %4025  ;;  %v6558_v40 = vld [vmem:[%s7567_s2 + $0x60] ss:$16 sps:$4 sm:$0xff]   ;;  %v6564_v21 = vld [vmem:[%s7567_s2 + $0x68] ss:$16 sps:$4 sm:$0xff]  }
 0x550   :  { %8008 = vst [vmem:[#allocation36_spill] sm:$0xff] %v6558_v40  ;;  %8009 = vst [vmem:[#allocation37_spill] sm:$0xff] %v6564_v21  ;;  %v6570_v49 = vld [vmem:[%s7567_s2 + $0x44] ss:$16 sps:$4 sm:$0xff]   ;;  %v6576_v6 = vld [vmem:[%s7567_s2 + $0x4c] ss:$16 sps:$4 sm:$0xff]  }
 0x551   :  { %v2228_v14 = vmul.f32 %v2216_v5, %v5992_v19  ;;  %4027 = vtanh.f32 %v6488_v16  ;;  %v6521_v19 = vld [vmem:[%s7567_s2 + $0x84] ss:$16 sps:$4 sm:$0xff]   ;;  %8010 = vst [vmem:[#allocation38_spill] sm:$0xff] %v6570_v49  ;;  %8011 = vst [vmem:[#allocation39_spill] sm:$0xff] %v6576_v6  ;;  %v2223_v5 = vmul.f32 0.5, %v4024_v59  ;;  %v2224_v57 = vmul.f32 0.5, %v4026_v18 }
 0x552   :  { %2330 = vmatpush1.bf16.msra.mxu0 %v6506_v44  ;;  %2373 = vmatpush1.bf16.msra.mxu1 %v6512_v46  ;;  %v6600_v59 = vld [vmem:[%s7567_s2 + $0x2c] ss:$16 sps:$4 sm:$0xff]  }
 0x553   :  { %v6516_v53 = vadd.f32 %v2230_v20, %v2228_v14  ;;  %2331 = vmatprep.subr.bf16.mxu0 %v6521_v19  ;;  %2374 = vmatprep.subr.bf16.mxu1 %v6527_v17  ;;  %v6582_v14 = vld [vmem:[%s7567_s2 + $0x40] ss:$16 sps:$4 sm:$0xff]   ;;  %v6588_v20 = vld [vmem:[%s7567_s2 + $0x48] ss:$16 sps:$4 sm:$0xff]   ;;  %8015 = vst [vmem:[#allocation43_spill] sm:$0xff] %v6600_v59 }
 0x554   :  { %8012 = vst [vmem:[#allocation40_spill] sm:$0xff] %v6582_v14  ;;  %8013 = vst [vmem:[#allocation41_spill] sm:$0xff] %v6588_v20 }
 0x555   :  { %4029 = vtanh.f32 %v6516_v53 }
 0x556   :  { %2332 = vmatpush1.bf16.msra.mxu0 %v6534_v30  ;;  %2375 = vmatpush1.bf16.msra.mxu1 %v6540_v12 }
 0x557   :  { %2333 = vmatprep.subr.bf16.mxu0 %v6546_v24  ;;  %2376 = vmatprep.subr.bf16.mxu1 %v6552_v22 }
 0x55a   :  { %2334 = vmatpush1.bf16.msra.mxu0 %v6558_v40  ;;  %2377 = vmatpush1.bf16.msra.mxu1 %v6564_v21 }
 0x55b   :  { %2335 = vmatprep.subr.bf16.mxu0 %v6570_v49  ;;  %2378 = vmatprep.subr.bf16.mxu1 %v6576_v6  ;;  %v6594_v6 = vld [vmem:[%s7567_s2 + $0x24] ss:$16 sps:$4 sm:$0xff]   ;;  %v2226_v49 = vadd.f32 0.5, %v2224_v57  ;;  %v6624_v57 = vld [vmem:[%s7567_s2 + $0xc] ss:$16 sps:$4 sm:$0xff]  }
 0x55c   :  { %8014 = vst [vmem:[#allocation42_spill] sm:$0xff] %v6594_v6 }
 0x55e   :  { %2336 = vmatpush1.bf16.msra.mxu0 %v6582_v14  ;;  %2379 = vmatpush1.bf16.msra.mxu1 %v6588_v20  ;;  %v4028_v18 = vpop.eup %4027  ;;  %v2225_v14 = vadd.f32 0.5, %v2223_v5  ;;  %v6606_v20 = vld [vmem:[%s7567_s2 + $0x20] ss:$16 sps:$4 sm:$0xff]   ;;  %v6618_v5 = vld [vmem:[%s7567_s2 + $0x4] ss:$16 sps:$4 sm:$0xff]  }
 0x55f   :  { %2337 = vmatprep.subr.bf16.mxu0 %v6594_v6  ;;  %2380 = vmatprep.subr.bf16.mxu1 %v6600_v59  ;;  %8016 = vst [vmem:[#allocation44_spill] sm:$0xff] %v6606_v20  ;;  %v6612_v6 = vld [vmem:[%s7567_s2 + $0x28] ss:$16 sps:$4 sm:$0xff]  }
 0x560   :  { %v2235_v40 = vmul.f32 %v4028_v18, %v2225_v14  ;;  %v6630_v14 = vld [vmem:[%s7567_s2] ss:$16 sps:$4 sm:$0xff]  }
 0x561   :  { %v8051_v18 = vld [vmem:[#allocation33_spill] sm:$0xff] }
 0x562   :  { %v4030_v21 = vpop.eup %4029  ;;  %2338 = vmatpush1.bf16.msra.mxu0 %v6606_v20  ;;  %2381 = vmatpush1.bf16.msra.mxu1 %v6612_v6 }
 0x563   :  { %v2236_v59 = vmul.f32 %v4030_v21, %v2226_v49  ;;  %2339 = vmatprep.subr.bf16.mxu0 %v6618_v5  ;;  %2382 = vmatprep.subr.bf16.mxu1 %v6624_v57  ;;  %v6636_v21 = vld [vmem:[%s7567_s2 + $0x8] ss:$16 sps:$4 sm:$0xff]  }
 0x564   :  { %v8048_v49 = vld [vmem:[#allocation30_spill] sm:$0xff] }
 0x565   :  { %v2237_v20 = vpack.c.bf16 %v2236_v59, %v2235_v40  ;;  %v8047_v40 = vld [vmem:[#allocation29_spill] sm:$0xff]  ;;  %v8050_v59 = vld [vmem:[#allocation32_spill] sm:$0xff] }
 0x566   :  { %2340 = vmatpush1.bf16.msra.mxu0 %v6630_v14  ;;  %2383 = vmatpush1.bf16.msra.mxu1 %v6636_v21 }
 0x567   :  { %2468 = vmatprep.subr.bf16.mxu0 %v6020_v52  ;;  %2511 = vmatprep.subr.bf16.mxu1 %v6026_v45  ;;  %v8017_v52 = vld [vmem:[#allocation53_spill] sm:$0xff]  ;;  %v8018_v45 = vld [vmem:[#allocation54_spill] sm:$0xff] }
 0x569   :  { %2358 = vmatmul.mubr.bf16.vlgmr.msra.gmra.mxu0 %v2237_v20  ;;  %2401 = vmatmul.mubr.bf16.vlgmr.msra.gmra.mxu1 %v2237_v20 }
 0x56a   :  { %2469 = vmatpush1.bf16.msra.mxu0 %v6034_v58  ;;  %2512 = vmatpush1.bf16.msra.mxu1 %v6040_v26  ;;  %v8019_v58 = vld [vmem:[#allocation55_spill] sm:$0xff]  ;;  %v8020_v26 = vld [vmem:[#allocation56_spill] sm:$0xff] }
 0x56b   :  { %2470 = vmatprep.subr.bf16.mxu0 %v6046_v13  ;;  %2513 = vmatprep.subr.bf16.mxu1 %v6052_v42  ;;  %v8021_v13 = vld [vmem:[#allocation57_spill] sm:$0xff]  ;;  %v8022_v42 = vld [vmem:[#allocation58_spill] sm:$0xff] }
 0x56c   :  { %2500 = vmatprep.mubr.bf16.mxu0 %v7792_v60  ;;  %2543 = vmatprep.mubr.bf16.mxu1 %v7792_v60 }
 0x56e   :  { %2471 = vmatpush1.bf16.msra.mxu0 %v6060_v0  ;;  %2514 = vmatpush1.bf16.msra.mxu1 %v6066_v50  ;;  %v8023_v0 = vld [vmem:[#allocation59_spill] sm:$0xff]  ;;  %v8024_v50 = vld [vmem:[#allocation60_spill] sm:$0xff] }
 0x56f   :  { %2472 = vmatprep.subr.bf16.mxu0 %v6072_v48  ;;  %2515 = vmatprep.subr.bf16.mxu1 %v6078_v55  ;;  %v8025_v48 = vld [vmem:[#allocation7_spill] sm:$0xff]  ;;  %v8026_v55 = vld [vmem:[#allocation9_spill] sm:$0xff] }
 0x572   :  { %2473 = vmatpush1.bf16.msra.mxu0 %v6084_v3  ;;  %2516 = vmatpush1.bf16.msra.mxu1 %v6090_v63  ;;  %v8027_v3 = vld [vmem:[#allocation8_spill] sm:$0xff]  ;;  %v8028_v63 = vld [vmem:[#allocation10_spill] sm:$0xff] }
 0x573   :  { %2474 = vmatprep.subr.bf16.mxu0 %v6096_v51  ;;  %2517 = vmatprep.subr.bf16.mxu1 %v6102_v9  ;;  %v8029_v51 = vld [vmem:[#allocation11_spill] sm:$0xff]  ;;  %v8030_v9 = vld [vmem:[#allocation13_spill] sm:$0xff] }
 0x576   :  { %2475 = vmatpush1.bf16.msra.mxu0 %v6108_v4  ;;  %2518 = vmatpush1.bf16.msra.mxu1 %v6114_v2  ;;  %v8031_v4 = vld [vmem:[#allocation12_spill] sm:$0xff] }
 0x577   :  { %2476 = vmatprep.subr.bf16.mxu0 %v6120_v27  ;;  %2519 = vmatprep.subr.bf16.mxu1 %v6126_v28  ;;  %v8032_v2 = vld [vmem:[#allocation16_spill] sm:$0xff]  ;;  %v8033_v27 = vld [vmem:[#allocation14_spill] sm:$0xff] }
 0x578   :  { %v8034_v28 = vld [vmem:[#allocation18_spill] sm:$0xff] }
 0x57a   :  { %2477 = vmatpush1.bf16.msra.mxu0 %v6132_v15  ;;  %2520 = vmatpush1.bf16.msra.mxu1 %v6138_v29  ;;  %v8035_v15 = vld [vmem:[#allocation15_spill] sm:$0xff]  ;;  %v8036_v29 = vld [vmem:[#allocation20_spill] sm:$0xff] }
 0x57b   :  { %2478 = vmatprep.subr.bf16.mxu0 %v6144_v33  ;;  %2521 = vmatprep.subr.bf16.mxu1 %v6150_v35  ;;  %v8037_v33 = vld [vmem:[#allocation17_spill] sm:$0xff]  ;;  %v8038_v35 = vld [vmem:[#allocation22_spill] sm:$0xff] }
 0x57e   :  { %2479 = vmatpush1.bf16.msra.mxu0 %v6156_v34  ;;  %2522 = vmatpush1.bf16.msra.mxu1 %v6162_v31  ;;  %v8039_v34 = vld [vmem:[#allocation19_spill] sm:$0xff]  ;;  %v8040_v31 = vld [vmem:[#allocation24_spill] sm:$0xff] }
 0x57f   :  { %2480 = vmatprep.subr.bf16.mxu0 %v6168_v37  ;;  %2523 = vmatprep.subr.bf16.mxu1 %v6174_v38  ;;  %v8041_v37 = vld [vmem:[#allocation21_spill] sm:$0xff]  ;;  %v8042_v38 = vld [vmem:[#allocation26_spill] sm:$0xff] }
 0x582   :  { %2481 = vmatpush1.bf16.msra.mxu0 %v6180_v39  ;;  %2524 = vmatpush1.bf16.msra.mxu1 %v6186_v43  ;;  %v8043_v39 = vld [vmem:[#allocation23_spill] sm:$0xff] }
 0x583   :  { %2482 = vmatprep.subr.bf16.mxu0 %v6192_v56  ;;  %2525 = vmatprep.subr.bf16.mxu1 %v6198_v23  ;;  %v8044_v43 = vld [vmem:[#allocation27_spill] sm:$0xff]  ;;  %v8045_v56 = vld [vmem:[#allocation25_spill] sm:$0xff]  ;;  %v8046_v23 = vld [vmem:[#allocation28_spill] sm:$0xff] }
 0x586   :  { %2483 = vmatpush1.bf16.msra.mxu0 %v8017_v52  ;;  %2526 = vmatpush1.bf16.msra.mxu1 %v8018_v45  ;;  %v8052_v52 = vld [vmem:[#allocation34_spill] sm:$0xff] }
 0x587   :  { %2600 = vmatprep.subr.bf16.mxu0 %v8019_v58  ;;  %2643 = vmatprep.subr.bf16.mxu1 %v8020_v26 }
 0x589   :  { %2501 = vmatmul.mubr.bf16.vlgmr.msra.gmra.mxu0 %v2237_v20  ;;  %2544 = vmatmul.mubr.bf16.vlgmr.msra.gmra.mxu1 %v2237_v20  ;;  %v8049_v20 = vld [vmem:[#allocation31_spill] sm:$0xff] }
 0x58a   :  { %2601 = vmatpush1.bf16.msra.mxu0 %v8021_v13  ;;  %2644 = vmatpush1.bf16.msra.mxu1 %v8022_v42 }
 0x58b   :  { %2602 = vmatprep.subr.bf16.mxu0 %v8023_v0  ;;  %2645 = vmatprep.subr.bf16.mxu1 %v8024_v50 }
 0x58c   :  { %2632 = vmatprep.mubr.bf16.mxu0 %v7792_v60  ;;  %2675 = vmatprep.mubr.bf16.mxu1 %v7792_v60 }
 0x58e   :  { %2603 = vmatpush1.bf16.msra.mxu0 %v8025_v48  ;;  %2646 = vmatpush1.bf16.msra.mxu1 %v8026_v55 }
 0x58f   :  { %2604 = vmatprep.subr.bf16.mxu0 %v8027_v3  ;;  %2647 = vmatprep.subr.bf16.mxu1 %v8028_v63 }
 0x592   :  { %2605 = vmatpush1.bf16.msra.mxu0 %v8029_v51  ;;  %2648 = vmatpush1.bf16.msra.mxu1 %v8030_v9 }
 0x593   :  { %2606 = vmatprep.subr.bf16.mxu0 %v8031_v4  ;;  %2649 = vmatprep.subr.bf16.mxu1 %v8032_v2 }
 0x596   :  { %2607 = vmatpush1.bf16.msra.mxu0 %v8033_v27  ;;  %2650 = vmatpush1.bf16.msra.mxu1 %v8034_v28 }
 0x597   :  { %2608 = vmatprep.subr.bf16.mxu0 %v8035_v15  ;;  %2651 = vmatprep.subr.bf16.mxu1 %v8036_v29 }
 0x59a   :  { %2609 = vmatpush1.bf16.msra.mxu0 %v8037_v33  ;;  %2652 = vmatpush1.bf16.msra.mxu1 %v8038_v35 }
 0x59b   :  { %2610 = vmatprep.subr.bf16.mxu0 %v8039_v34  ;;  %2653 = vmatprep.subr.bf16.mxu1 %v8040_v31 }
 0x59e   :  { %2611 = vmatpush1.bf16.msra.mxu0 %v8041_v37  ;;  %2654 = vmatpush1.bf16.msra.mxu1 %v8042_v38 }
 0x59f   :  { %2612 = vmatprep.subr.bf16.mxu0 %v8043_v39  ;;  %2655 = vmatprep.subr.bf16.mxu1 %v8044_v43 }
 0x5a2   :  { %2613 = vmatpush1.bf16.msra.mxu0 %v8045_v56  ;;  %2656 = vmatpush1.bf16.msra.mxu1 %v8046_v23 }
 0x5a3   :  { %2614 = vmatprep.subr.bf16.mxu0 %v8047_v40  ;;  %2657 = vmatprep.subr.bf16.mxu1 %v8048_v49 }
 0x5a6   :  { %2615 = vmatpush1.bf16.msra.mxu0 %v8049_v20  ;;  %2658 = vmatpush1.bf16.msra.mxu1 %v8050_v59 }
 0x5a7   :  { %2686 = vmatprep.subr.bf16.mxu0 %v8051_v18  ;;  %2729 = vmatprep.subr.bf16.mxu1 %v8052_v52 }
 0x609   :  { %v2273_v45 = vpop.f32.mrf.mxu0  ;;  %v2316_v58 = vpop.f32.mrf.mxu1 }
 0x60b   :  { %v2275_v26 = vpop.f32.mrf.mxu0  ;;  %v2318_v13 = vpop.f32.mrf.mxu1 }
 0x60d   :  { %v2277_v42 = vpop.f32.mrf.mxu0  ;;  %v2320_v0 = vpop.f32.mrf.mxu1 }
 0x60f   :  { %v2279_v50 = vpop.f32.mrf.mxu0  ;;  %v2322_v48 = vpop.f32.mrf.mxu1 }
 0x629   :  { %v2359_v55 = vpop.f32.mrf.mxu0  ;;  %v2402_v3 = vpop.f32.mrf.mxu1 }
 0x62a   :  { %v2360_v63 = vadd.f32 %v2359_v55, %v2273_v45  ;;  %v2403_v2 = vadd.f32 %v2402_v3, %v2316_v58 }
 0x62b   :  { %v2361_v51 = vpop.f32.mrf.mxu0  ;;  %v2404_v9 = vpop.f32.mrf.mxu1 }
 0x62c   :  { %v2411_v4 = vadd.f32 %v2360_v63, %v5179_v41  ;;  %v2362_v27 = vadd.f32 %v2361_v51, %v2275_v26  ;;  %v2413_v31 = vadd.f32 %v2403_v2, %v5184_v54  ;;  %v2405_v59 = vadd.f32 %v2404_v9, %v2318_v13  ;;  %v3690_v13 = vld [vmem:[%s7568_s0 + $0xa0] sm:$0xff] }
 0x62d   :  { %v2363_v28 = vpop.f32.mrf.mxu0  ;;  %v2406_v35 = vpop.f32.mrf.mxu1 }
 0x62e   :  { %v2419_v15 = vmul.f32 0.5, %v2411_v4  ;;  %v2412_v29 = vadd.f32 %v2362_v27, %v5181_v61  ;;  %v2364_v33 = vadd.f32 %v2363_v28, %v2277_v42  ;;  %v2407_v43 = vadd.f32 %v2406_v35, %v2320_v0 }
 0x62f   :  { %v2365_v34 = vpop.f32.mrf.mxu0  ;;  %v2408_v49 = vpop.f32.mrf.mxu1  ;;  %v2414_v52 = vadd.f32 %v2405_v59, %v5191_v8  ;;  %v2460_v35 = vunpack.c.l.bf16 %v3690_v13 }
 0x630   :  { %4031 = vtanh.f32 %v2419_v15  ;;  %v2427_v37 = vmul.f32 0.5, %v2412_v29  ;;  %v2366_v38 = vadd.f32 %v2365_v34, %v2279_v50  ;;  %v2415_v39 = vadd.f32 %v2364_v33, %v5179_v41 }
 0x631   :  { %v2417_v20 = vadd.f32 %v2407_v43, %v5184_v54  ;;  %v2409_v18 = vadd.f32 %v2408_v49, %v2322_v48  ;;  %v2437_v0 = vmul.f32 0.5, %v2414_v52  ;;  %v2461_v43 = vunpack.c.h.bf16 %v3690_v13 }
 0x632   :  { %4033 = vtanh.f32 %v2427_v37  ;;  %v2416_v56 = vadd.f32 %v2366_v38, %v5181_v61  ;;  %v2420_v23 = vmul.f32 0.5, %v2415_v39  ;;  %v8053_v37 = vld [vmem:[#allocation35_spill] sm:$0xff] }
 0x633   :  { %4035 = vtanh.f32 %v2413_v31  ;;  %v2418_v45 = vadd.f32 %v2409_v18, %v5191_v8  ;;  %v3692_v31 = vld [vmem:[%s7568_s0 + $0xb0] sm:$0xff] }
 0x634   :  { %v2428_v40 = vmul.f32 0.5, %v2416_v56  ;;  %4037 = vtanh.f32 %v2420_v23 }
 0x635   :  { %v2438_v3 = vmul.f32 0.5, %v2418_v45 }
 0x636   :  { %4039 = vtanh.f32 %v2428_v40 }
 0x637   :  { %4041 = vtanh.f32 %v2417_v20  ;;  %v2464_v20 = vunpack.c.l.bf16 %v3692_v31 }
 0x638   :  { %4043 = vtanh.f32 %v2437_v0  ;;  %v3693_v0 = vld [vmem:[%s7568_s0 + $0xb8] sm:$0xff] }
 0x639   :  { %4045 = vtanh.f32 %v2438_v3 }
 0x63d   :  { %v4032_v58 = vpop.eup %4031 }
 0x63e   :  { %v2423_v26 = vmul.f32 0.5, %v4032_v58  ;;  %v2465_v58 = vunpack.c.h.bf16 %v3692_v31 }
 0x63f   :  { %v4034_v42 = vpop.eup %4033 }
 0x640   :  { %v2425_v50 = vadd.f32 0.5, %v2423_v26  ;;  %v2431_v55 = vmul.f32 0.5, %v4034_v42  ;;  %v4036_v63 = vpop.eup %4035 }
 0x641   :  { %v4038_v51 = vpop.eup %4037 }
 0x642   :  { %v2433_v4 = vadd.f32 0.5, %v2431_v55  ;;  %v2424_v27 = vmul.f32 0.5, %v4038_v51  ;;  %v2447_v9 = vmul.f32 %v4036_v63, %v2425_v50 }
 0x643   :  { %v4040_v2 = vpop.eup %4039 }
 0x644   :  { %v2445_v48 = vmul.f32 %v2433_v4, %v6433_v7  ;;  %v2432_v28 = vmul.f32 0.5, %v4040_v2  ;;  %v2426_v15 = vadd.f32 0.5, %v2424_v27  ;;  %v4042_v34 = vpop.eup %4041  ;;  %v3691_v7 = vld [vmem:[%s7568_s0 + $0xa8] sm:$0xff]  ;;  %v2466_v2 = vunpack.c.l.bf16 %v3693_v0 }
 0x645   :  { %v2462_v59 = vunpack.c.l.bf16 %v3691_v7  ;;  %v4044_v51 = vpop.eup %4043 }
 0x646   :  { %v6721_v29 = vadd.f32 %v2447_v9, %v2445_v48  ;;  %v2434_v33 = vadd.f32 0.5, %v2432_v28  ;;  %v2448_v39 = vmul.f32 %v4042_v34, %v2426_v15  ;;  %v4046_v13 = vpop.eup %4045  ;;  %v2463_v28 = vunpack.c.h.bf16 %v3691_v7 }
 0x647   :  { %v2441_v15 = vmul.f32 0.5, %v4044_v51  ;;  %v2467_v34 = vunpack.c.h.bf16 %v3693_v0 }
 0x648   :  { %v2446_v38 = vmul.f32 %v2434_v33, %v8053_v37  ;;  %4047 = vtanh.f32 %v6721_v29  ;;  %v2442_v33 = vmul.f32 0.5, %v4046_v13 }
 0x649   :  { %v2502_v56 = vpop.f32.mrf.mxu0  ;;  %v2545_v23 = vpop.f32.mrf.mxu1 }
 0x64a   :  { %v6731_v40 = vadd.f32 %v2448_v39, %v2446_v38  ;;  %v2554_v49 = vadd.f32 %v2502_v56, %v2460_v35  ;;  %v2556_v3 = vadd.f32 %v2545_v23, %v2462_v59  ;;  %v2443_v38 = vadd.f32 0.5, %v2441_v15  ;;  %v8062_v15 = vld [vmem:[#allocation44_spill] sm:$0xff] }
 0x64b   :  { %v2504_v18 = vpop.f32.mrf.mxu0  ;;  %v2547_v26 = vpop.f32.mrf.mxu1  ;;  %v2444_v39 = vadd.f32 0.5, %v2442_v33 }
 0x64c   :  { %4049 = vtanh.f32 %v6731_v40  ;;  %v2562_v52 = vmul.f32 0.5, %v2554_v49  ;;  %v2555_v45 = vadd.f32 %v2504_v18, %v2461_v43  ;;  %v2557_v43 = vadd.f32 %v2547_v26, %v2463_v28 }
 0x64d   :  { %v2506_v42 = vpop.f32.mrf.mxu0  ;;  %v2549_v48 = vpop.f32.mrf.mxu1 }
 0x64e   :  { %4051 = vtanh.f32 %v2562_v52  ;;  %v2570_v50 = vmul.f32 0.5, %v2555_v45  ;;  %v2558_v55 = vadd.f32 %v2506_v42, %v2464_v20  ;;  %v2560_v35 = vadd.f32 %v2549_v48, %v2466_v2 }
 0x64f   :  { %v2508_v63 = vpop.f32.mrf.mxu0  ;;  %v2551_v31 = vpop.f32.mrf.mxu1  ;;  %v2580_v52 = vmul.f32 0.5, %v2557_v43  ;;  %v6840_v43 = vld [vmem:[%s7565_s1 + $0xac] ss:$16 sps:$4 sm:$0xff]  }
 0x650   :  { %4053 = vtanh.f32 %v2570_v50  ;;  %v2563_v4 = vmul.f32 0.5, %v2558_v55  ;;  %v2559_v27 = vadd.f32 %v2508_v63, %v2465_v58  ;;  %v2561_v23 = vadd.f32 %v2551_v31, %v2467_v34  ;;  %v6782_v31 = vld [vmem:[%s7565_s1 + $0xe4] ss:$16 sps:$4 sm:$0xff]  }
 0x652   :  { %4055 = vtanh.f32 %v2563_v4  ;;  %v2571_v9 = vmul.f32 0.5, %v2559_v27  ;;  %v2581_v58 = vmul.f32 0.5, %v2561_v23  ;;  %v6852_v23 = vld [vmem:[%s7565_s1 + $0xa8] ss:$16 sps:$4 sm:$0xff]  }
 0x653   :  { %4057 = vtanh.f32 %v2556_v3 }
 0x654   :  { %4059 = vtanh.f32 %v2571_v9 }
 0x655   :  { %v4048_v37 = vpop.eup %4047  ;;  %4061 = vtanh.f32 %v2560_v35 }
 0x656   :  { %v2453_v49 = vmul.f32 %v4048_v37, %v2443_v38  ;;  %4063 = vtanh.f32 %v2580_v52  ;;  %v6822_v37 = vld [vmem:[%s7565_s1 + $0xc0] ss:$16 sps:$4 sm:$0xff]   ;;  %v6828_v38 = vld [vmem:[%s7565_s1 + $0xc8] ss:$16 sps:$4 sm:$0xff]   ;;  %v6882_v52 = vld [vmem:[%s7565_s1 + $0x64] ss:$16 sps:$4 sm:$0xff]  }
 0x657   :  { %4065 = vtanh.f32 %v2581_v58  ;;  %v6900_v58 = vld [vmem:[%s7565_s1 + $0x68] ss:$16 sps:$4 sm:$0xff]  }
 0x659   :  { %v4050_v56 = vpop.eup %4049 }
 0x65a   :  { %v2454_v20 = vmul.f32 %v4050_v56, %v2444_v39  ;;  %v6834_v39 = vld [vmem:[%s7565_s1 + $0xa4] ss:$16 sps:$4 sm:$0xff]   ;;  %v6846_v56 = vld [vmem:[%s7565_s1 + $0xa0] ss:$16 sps:$4 sm:$0xff]  }
 0x65b   :  { %v4052_v59 = vpop.eup %4051 }
 0x65c   :  { %v2566_v18 = vmul.f32 0.5, %v4052_v59  ;;  %v2599_v45 = vpack.c.bf16 %v2454_v20, %v2453_v49  ;;  %v6858_v49 = vld [vmem:[%s7565_s1 + $0x84] ss:$16 sps:$4 sm:$0xff]   ;;  %v6864_v20 = vld [vmem:[%s7565_s1 + $0x8c] ss:$16 sps:$4 sm:$0xff]  }
 0x65d   :  { %v4054_v7 = vpop.eup %4053  ;;  %v6870_v59 = vld [vmem:[%s7565_s1 + $0x80] ss:$16 sps:$4 sm:$0xff]  }
 0x65e   :  { %v2568_v42 = vadd.f32 0.5, %v2566_v18  ;;  %v2574_v50 = vmul.f32 0.5, %v4054_v7  ;;  %2633 = vmatmul.mubr.bf16.vlgmr.msra.gmra.mxu0 %v2599_v45  ;;  %2676 = vmatmul.mubr.bf16.vlgmr.msra.gmra.mxu1 %v2599_v45  ;;  %v6876_v18 = vld [vmem:[%s7565_s1 + $0x88] ss:$16 sps:$4 sm:$0xff]   ;;  %v6888_v45 = vld [vmem:[%s7565_s1 + $0x6c] ss:$16 sps:$4 sm:$0xff]  }
 0x65f   :  { %v4056_v0 = vpop.eup %4055  ;;  %2687 = vmatpush1.bf16.msra.mxu0 %v6452_v62  ;;  %2730 = vmatpush1.bf16.msra.mxu1 %v6458_v32  ;;  %v6894_v7 = vld [vmem:[%s7565_s1 + $0x60] ss:$16 sps:$4 sm:$0xff]  }
 0x660   :  { %v4058_v26 = vpop.eup %4057  ;;  %v2576_v55 = vadd.f32 0.5, %v2574_v50  ;;  %v2567_v3 = vmul.f32 0.5, %v4056_v0  ;;  %2688 = vmatprep.subr.bf16.mxu0 %v6464_v25  ;;  %2731 = vmatprep.subr.bf16.mxu1 %v6470_v11  ;;  %v6912_v50 = vld [vmem:[%s7565_s1 + $0x4c] ss:$16 sps:$4 sm:$0xff]   ;;  %v6918_v0 = vld [vmem:[%s7565_s1 + $0x40] ss:$16 sps:$4 sm:$0xff]  }
 0x661   :  { %v4060_v63 = vpop.eup %4059  ;;  %2718 = vmatprep.mubr.bf16.mxu0 %v7792_v60  ;;  %2761 = vmatprep.mubr.bf16.mxu1 %v7792_v60  ;;  %v2590_v4 = vmul.f32 %v4058_v26, %v2568_v42  ;;  %v6906_v42 = vld [vmem:[%s7565_s1 + $0x44] ss:$16 sps:$4 sm:$0xff]   ;;  %v6924_v26 = vld [vmem:[%s7565_s1 + $0x48] ss:$16 sps:$4 sm:$0xff]  }
 0x662   :  { %v2588_v51 = vmul.f32 %v2576_v55, %v6488_v16  ;;  %v2569_v62 = vadd.f32 0.5, %v2567_v3  ;;  %v2575_v2 = vmul.f32 0.5, %v4060_v63  ;;  %v4062_v11 = vpop.eup %4061  ;;  %v6930_v55 = vld [vmem:[%s7565_s1 + $0x24] ss:$16 sps:$4 sm:$0xff]   ;;  %v6936_v3 = vld [vmem:[%s7565_s1 + $0x2c] ss:$16 sps:$4 sm:$0xff]  }
 0x663   :  { %2689 = vmatpush1.bf16.msra.mxu0 %v6479_v10  ;;  %2732 = vmatpush1.bf16.msra.mxu1 %v6485_v1  ;;  %v4064_v1 = vpop.eup %4063  ;;  %v6942_v63 = vld [vmem:[%s7565_s1 + $0x20] ss:$16 sps:$4 sm:$0xff]  }
 0x664   :  { %v6746_v32 = vadd.f32 %v2590_v4, %v2588_v51  ;;  %v2577_v25 = vadd.f32 0.5, %v2575_v2  ;;  %2690 = vmatprep.subr.bf16.mxu0 %v6493_v36  ;;  %2733 = vmatprep.subr.bf16.mxu1 %v6499_v47  ;;  %v2591_v13 = vmul.f32 %v4062_v11, %v2569_v62  ;;  %v4066_v16 = vpop.eup %4065  ;;  %v8054_v36 = vld [vmem:[#allocation36_spill] sm:$0xff]  ;;  %v8055_v47 = vld [vmem:[#allocation37_spill] sm:$0xff] }
 0x665   :  { %v6948_v51 = vld [vmem:[%s7565_s1 + $0x28] ss:$16 sps:$4 sm:$0xff]   ;;  %v6954_v4 = vld [vmem:[%s7565_s1 + $0x4] ss:$16 sps:$4 sm:$0xff]   ;;  %v6960_v62 = vld [vmem:[%s7565_s1 + $0xc] ss:$16 sps:$4 sm:$0xff]  }
 0x666   :  { %v2589_v27 = vmul.f32 %v2577_v25, %v6516_v53  ;;  %4067 = vtanh.f32 %v6746_v32  ;;  %v2584_v53 = vmul.f32 0.5, %v4064_v1  ;;  %v6966_v2 = vld [vmem:[%s7565_s1] ss:$16 sps:$4 sm:$0xff]   ;;  %v6972_v25 = vld [vmem:[%s7565_s1 + $0x8] ss:$16 sps:$4 sm:$0xff]  }
 0x667   :  { %2691 = vmatpush1.bf16.msra.mxu0 %v6506_v44  ;;  %2734 = vmatpush1.bf16.msra.mxu1 %v6512_v46  ;;  %v8056_v44 = vld [vmem:[#allocation38_spill] sm:$0xff]  ;;  %v8057_v46 = vld [vmem:[#allocation39_spill] sm:$0xff]  ;;  %8063 = vst [vmem:[#allocation45_spill] sm:$0xff] %v6966_v2  ;;  %8064 = vst [vmem:[#allocation46_spill] sm:$0xff] %v6972_v25 }
 0x668   :  { %v6754_v10 = vadd.f32 %v2591_v13, %v2589_v27  ;;  %2692 = vmatprep.subr.bf16.mxu0 %v6521_v19  ;;  %2735 = vmatprep.subr.bf16.mxu1 %v6527_v17  ;;  %v2585_v19 = vmul.f32 0.5, %v4066_v16  ;;  %v8058_v17 = vld [vmem:[#allocation40_spill] sm:$0xff]  ;;  %v2586_v48 = vadd.f32 0.5, %v2584_v53  ;;  %v6978_v11 = vld [vmem:[%s7566_s3 + $0xe4] ss:$16 sps:$4 sm:$0xff]  }
 0x669   :  { %8065 = vst [vmem:[#allocation47_spill] sm:$0xff] %v6978_v11  ;;  %v6984_v27 = vld [vmem:[%s7566_s3 + $0xec] ss:$16 sps:$4 sm:$0xff]   ;;  %v6992_v13 = vld [vmem:[%s7566_s3 + $0xe0] ss:$16 sps:$4 sm:$0xff]  }
 0x66a   :  { %4069 = vtanh.f32 %v6754_v10  ;;  %v2587_v9 = vadd.f32 0.5, %v2585_v19  ;;  %8066 = vst [vmem:[#allocation48_spill] sm:$0xff] %v6984_v27  ;;  %8067 = vst [vmem:[#allocation49_spill] sm:$0xff] %v6992_v13  ;;  %v6998_v1 = vld [vmem:[%s7566_s3 + $0xe8] ss:$16 sps:$4 sm:$0xff]  }
 0x66b   :  { %2693 = vmatpush1.bf16.msra.mxu0 %v6534_v30  ;;  %2736 = vmatpush1.bf16.msra.mxu1 %v6540_v12  ;;  %v8059_v30 = vld [vmem:[#allocation41_spill] sm:$0xff]  ;;  %v8060_v12 = vld [vmem:[#allocation42_spill] sm:$0xff]  ;;  %8068 = vst [vmem:[#allocation50_spill] sm:$0xff] %v6998_v1 }
 0x66c   :  { %2694 = vmatprep.subr.bf16.mxu0 %v6546_v24  ;;  %2737 = vmatprep.subr.bf16.mxu1 %v6552_v22  ;;  %v8061_v24 = vld [vmem:[#allocation43_spill] sm:$0xff]  ;;  %v7036_v53 = vld [vmem:[%s7566_s3 + $0xac] ss:$16 sps:$4 sm:$0xff]  }
 0x66d   :  { %v7004_v16 = vld [vmem:[%s7566_s3 + $0xc4] ss:$16 sps:$4 sm:$0xff]   ;;  %8074 = vst [vmem:[#allocation56_spill] sm:$0xff] %v7036_v53  ;;  %v7042_v19 = vld [vmem:[%s7566_s3 + $0xa0] ss:$16 sps:$4 sm:$0xff]  }
 0x66e   :  { %8069 = vst [vmem:[#allocation51_spill] sm:$0xff] %v7004_v16  ;;  %8075 = vst [vmem:[#allocation57_spill] sm:$0xff] %v7042_v19 }
 0x66f   :  { %2695 = vmatpush1.bf16.msra.mxu0 %v8054_v36  ;;  %2738 = vmatpush1.bf16.msra.mxu1 %v8055_v47  ;;  %v7010_v36 = vld [vmem:[%s7566_s3 + $0xcc] ss:$16 sps:$4 sm:$0xff]   ;;  %v7018_v47 = vld [vmem:[%s7566_s3 + $0xc0] ss:$16 sps:$4 sm:$0xff]  }
 0x670   :  { %2696 = vmatprep.subr.bf16.mxu0 %v8056_v44  ;;  %2739 = vmatprep.subr.bf16.mxu1 %v8057_v46  ;;  %8070 = vst [vmem:[#allocation52_spill] sm:$0xff] %v7010_v36  ;;  %8071 = vst [vmem:[#allocation53_spill] sm:$0xff] %v7018_v47  ;;  %v7024_v44 = vld [vmem:[%s7566_s3 + $0xc8] ss:$16 sps:$4 sm:$0xff]   ;;  %v7030_v46 = vld [vmem:[%s7566_s3 + $0xa4] ss:$16 sps:$4 sm:$0xff]  }
 0x671   :  { %8072 = vst [vmem:[#allocation54_spill] sm:$0xff] %v7024_v44  ;;  %8073 = vst [vmem:[#allocation55_spill] sm:$0xff] %v7030_v46 }
 0x673   :  { %2697 = vmatpush1.bf16.msra.mxu0 %v8058_v17  ;;  %2740 = vmatpush1.bf16.msra.mxu1 %v8059_v30  ;;  %v4068_v22 = vpop.eup %4067  ;;  %v7048_v17 = vld [vmem:[%s7566_s3 + $0xa8] ss:$16 sps:$4 sm:$0xff]   ;;  %v7054_v30 = vld [vmem:[%s7566_s3 + $0x84] ss:$16 sps:$4 sm:$0xff]  }
 0x674   :  { %2698 = vmatprep.subr.bf16.mxu0 %v8060_v12  ;;  %2741 = vmatprep.subr.bf16.mxu1 %v8061_v24  ;;  %v2596_v33 = vmul.f32 %v4068_v22, %v2586_v48  ;;  %8076 = vst [vmem:[#allocation58_spill] sm:$0xff] %v7048_v17  ;;  %8077 = vst [vmem:[#allocation59_spill] sm:$0xff] %v7054_v30  ;;  %v7060_v12 = vld [vmem:[%s7566_s3 + $0x8c] ss:$16 sps:$4 sm:$0xff]   ;;  %v7066_v24 = vld [vmem:[%s7566_s3 + $0x80] ss:$16 sps:$4 sm:$0xff]  }
 0x675   :  { %8078 = vst [vmem:[#allocation60_spill] sm:$0xff] %v7060_v12  ;;  %8079 = vst [vmem:[#allocation7_spill] sm:$0xff] %v7066_v24  ;;  %v7072_v22 = vld [vmem:[%s7566_s3 + $0x88] ss:$16 sps:$4 sm:$0xff]   ;;  %v7078_v48 = vld [vmem:[%s7566_s3 + $0x64] ss:$16 sps:$4 sm:$0xff]  }
 0x676   :  { %8080 = vst [vmem:[#allocation9_spill] sm:$0xff] %v7072_v22  ;;  %8081 = vst [vmem:[#allocation8_spill] sm:$0xff] %v7078_v48 }
 0x677   :  { %v4070_v28 = vpop.eup %4069  ;;  %2699 = vmatpush1.bf16.msra.mxu0 %v8062_v15  ;;  %2742 = vmatpush1.bf16.msra.mxu1 %v6612_v6  ;;  %v6788_v6 = vld [vmem:[%s7565_s1 + $0xec] ss:$16 sps:$4 sm:$0xff]   ;;  %v7096_v15 = vld [vmem:[%s7566_s3 + $0x68] ss:$16 sps:$4 sm:$0xff]  }
 0x678   :  { %v2597_v35 = vmul.f32 %v4070_v28, %v2587_v9  ;;  %2700 = vmatprep.subr.bf16.mxu0 %v6618_v5  ;;  %2743 = vmatprep.subr.bf16.mxu1 %v6624_v57  ;;  %v6796_v5 = vld [vmem:[%s7565_s1 + $0xe0] ss:$16 sps:$4 sm:$0xff]   ;;  %v6802_v57 = vld [vmem:[%s7565_s1 + $0xe8] ss:$16 sps:$4 sm:$0xff]   ;;  %v7084_v9 = vld [vmem:[%s7566_s3 + $0x6c] ss:$16 sps:$4 sm:$0xff]  }
 0x679   :  { %8082 = vst [vmem:[#allocation10_spill] sm:$0xff] %v7084_v9  ;;  %v7090_v28 = vld [vmem:[%s7566_s3 + $0x60] ss:$16 sps:$4 sm:$0xff]   ;;  %8084 = vst [vmem:[#allocation13_spill] sm:$0xff] %v7096_v15 }
 0x67a   :  { %v6775_v34 = vpack.c.bf16 %v2597_v35, %v2596_v33  ;;  %8083 = vst [vmem:[#allocation11_spill] sm:$0xff] %v7090_v28  ;;  %v7102_v33 = vld [vmem:[%s7566_s3 + $0x44] ss:$16 sps:$4 sm:$0xff]   ;;  %v7108_v35 = vld [vmem:[%s7566_s3 + $0x4c] ss:$16 sps:$4 sm:$0xff]  }
 0x67b   :  { %2701 = vmatpush1.bf16.msra.mxu0 %v6630_v14  ;;  %2744 = vmatpush1.bf16.msra.mxu1 %v6636_v21  ;;  %v6808_v14 = vld [vmem:[%s7565_s1 + $0xc4] ss:$16 sps:$4 sm:$0xff]   ;;  %v6814_v21 = vld [vmem:[%s7565_s1 + $0xcc] ss:$16 sps:$4 sm:$0xff]   ;;  %8085 = vst [vmem:[#allocation12_spill] sm:$0xff] %v7102_v33  ;;  %8086 = vst [vmem:[#allocation16_spill] sm:$0xff] %v7108_v35 }
 0x67c   :  { %2829 = vmatprep.subr.bf16.mxu0 %v6782_v31  ;;  %2872 = vmatprep.subr.bf16.mxu1 %v6788_v6 }
 0x67e   :  { %2719 = vmatmul.mubr.bf16.vlgmr.msra.gmra.mxu0 %v6775_v34  ;;  %2762 = vmatmul.mubr.bf16.vlgmr.msra.gmra.mxu1 %v6775_v34 }
 0x67f   :  { %2830 = vmatpush1.bf16.msra.mxu0 %v6796_v5  ;;  %2873 = vmatpush1.bf16.msra.mxu1 %v6802_v57 }
 0x680   :  { %2831 = vmatprep.subr.bf16.mxu0 %v6808_v14  ;;  %2874 = vmatprep.subr.bf16.mxu1 %v6814_v21 }
 0x681   :  { %2861 = vmatprep.mubr.bf16.mxu0 %v7792_v60  ;;  %2904 = vmatprep.mubr.bf16.mxu1 %v7792_v60 }
 0x683   :  { %2832 = vmatpush1.bf16.msra.mxu0 %v6822_v37  ;;  %2875 = vmatpush1.bf16.msra.mxu1 %v6828_v38 }
 0x684   :  { %2833 = vmatprep.subr.bf16.mxu0 %v6834_v39  ;;  %2876 = vmatprep.subr.bf16.mxu1 %v6840_v43 }
 0x687   :  { %2834 = vmatpush1.bf16.msra.mxu0 %v6846_v56  ;;  %2877 = vmatpush1.bf16.msra.mxu1 %v6852_v23 }
 0x688   :  { %2835 = vmatprep.subr.bf16.mxu0 %v6858_v49  ;;  %2878 = vmatprep.subr.bf16.mxu1 %v6864_v20 }
 0x68b   :  { %2836 = vmatpush1.bf16.msra.mxu0 %v6870_v59  ;;  %2879 = vmatpush1.bf16.msra.mxu1 %v6876_v18 }
 0x68c   :  { %2837 = vmatprep.subr.bf16.mxu0 %v6882_v52  ;;  %2880 = vmatprep.subr.bf16.mxu1 %v6888_v45 }
 0x68f   :  { %2838 = vmatpush1.bf16.msra.mxu0 %v6894_v7  ;;  %2881 = vmatpush1.bf16.msra.mxu1 %v6900_v58 }
 0x690   :  { %2839 = vmatprep.subr.bf16.mxu0 %v6906_v42  ;;  %2882 = vmatprep.subr.bf16.mxu1 %v6912_v50 }
 0x693   :  { %2840 = vmatpush1.bf16.msra.mxu0 %v6918_v0  ;;  %2883 = vmatpush1.bf16.msra.mxu1 %v6924_v26 }
 0x694   :  { %2841 = vmatprep.subr.bf16.mxu0 %v6930_v55  ;;  %2884 = vmatprep.subr.bf16.mxu1 %v6936_v3 }
 0x697   :  { %2842 = vmatpush1.bf16.msra.mxu0 %v6942_v63  ;;  %2885 = vmatpush1.bf16.msra.mxu1 %v6948_v51 }
 0x698   :  { %2843 = vmatprep.subr.bf16.mxu0 %v6954_v4  ;;  %2886 = vmatprep.subr.bf16.mxu1 %v6960_v62 }
 0x69b   :  { %2844 = vmatpush1.bf16.msra.mxu0 %v6966_v2  ;;  %2887 = vmatpush1.bf16.msra.mxu1 %v6972_v25 }
 0x69c   :  { %2961 = vmatprep.subr.bf16.mxu0 %v6978_v11  ;;  %3004 = vmatprep.subr.bf16.mxu1 %v6984_v27 }
 0x69e   :  { %2862 = vmatmul.mubr.bf16.vlgmr.msra.gmra.mxu0 %v6775_v34  ;;  %2905 = vmatmul.mubr.bf16.vlgmr.msra.gmra.mxu1 %v6775_v34  ;;  %v7114_v34 = vld [vmem:[%s7566_s3 + $0x40] ss:$16 sps:$4 sm:$0xff]  }
 0x69f   :  { %2962 = vmatpush1.bf16.msra.mxu0 %v6992_v13  ;;  %3005 = vmatpush1.bf16.msra.mxu1 %v6998_v1  ;;  %8087 = vst [vmem:[#allocation14_spill] sm:$0xff] %v7114_v34 }
 0x6a0   :  { %2963 = vmatprep.subr.bf16.mxu0 %v7004_v16  ;;  %3006 = vmatprep.subr.bf16.mxu1 %v7010_v36 }
 0x6a1   :  { %2993 = vmatprep.mubr.bf16.mxu0 %v7792_v60  ;;  %3036 = vmatprep.mubr.bf16.mxu1 %v7792_v60 }
 0x6a3   :  { %2964 = vmatpush1.bf16.msra.mxu0 %v7018_v47  ;;  %3007 = vmatpush1.bf16.msra.mxu1 %v7024_v44 }
 0x6a4   :  { %2965 = vmatprep.subr.bf16.mxu0 %v7030_v46  ;;  %3008 = vmatprep.subr.bf16.mxu1 %v7036_v53 }
 0x6a7   :  { %2966 = vmatpush1.bf16.msra.mxu0 %v7042_v19  ;;  %3009 = vmatpush1.bf16.msra.mxu1 %v7048_v17 }
 0x6a8   :  { %2967 = vmatprep.subr.bf16.mxu0 %v7054_v30  ;;  %3010 = vmatprep.subr.bf16.mxu1 %v7060_v12 }
 0x6ab   :  { %2968 = vmatpush1.bf16.msra.mxu0 %v7066_v24  ;;  %3011 = vmatpush1.bf16.msra.mxu1 %v7072_v22 }
 0x6ac   :  { %2969 = vmatprep.subr.bf16.mxu0 %v7078_v48  ;;  %3012 = vmatprep.subr.bf16.mxu1 %v7084_v9 }
 0x6af   :  { %2970 = vmatpush1.bf16.msra.mxu0 %v7090_v28  ;;  %3013 = vmatpush1.bf16.msra.mxu1 %v7096_v15  ;;  %v7120_v15 = vld [vmem:[%s7566_s3 + $0x48] ss:$16 sps:$4 sm:$0xff]  }
 0x6b0   :  { %2971 = vmatprep.subr.bf16.mxu0 %v7102_v33  ;;  %3014 = vmatprep.subr.bf16.mxu1 %v7108_v35  ;;  %8088 = vst [vmem:[#allocation18_spill] sm:$0xff] %v7120_v15  ;;  %v7126_v33 = vld [vmem:[%s7566_s3 + $0x24] ss:$16 sps:$4 sm:$0xff]   ;;  %v7132_v35 = vld [vmem:[%s7566_s3 + $0x2c] ss:$16 sps:$4 sm:$0xff]  }
 0x6b1   :  { %8089 = vst [vmem:[#allocation15_spill] sm:$0xff] %v7126_v33  ;;  %8090 = vst [vmem:[#allocation20_spill] sm:$0xff] %v7132_v35 }
 0x6b3   :  { %2972 = vmatpush1.bf16.msra.mxu0 %v7114_v34  ;;  %3015 = vmatpush1.bf16.msra.mxu1 %v7120_v15  ;;  %v7138_v34 = vld [vmem:[%s7566_s3 + $0x20] ss:$16 sps:$4 sm:$0xff]   ;;  %v7144_v15 = vld [vmem:[%s7566_s3 + $0x28] ss:$16 sps:$4 sm:$0xff]  }
 0x6b4   :  { %2973 = vmatprep.subr.bf16.mxu0 %v7126_v33  ;;  %3016 = vmatprep.subr.bf16.mxu1 %v7132_v35  ;;  %8091 = vst [vmem:[#allocation17_spill] sm:$0xff] %v7138_v34  ;;  %8092 = vst [vmem:[#allocation22_spill] sm:$0xff] %v7144_v15  ;;  %v7150_v33 = vld [vmem:[%s7566_s3 + $0x4] ss:$16 sps:$4 sm:$0xff]   ;;  %v7156_v35 = vld [vmem:[%s7566_s3 + $0xc] ss:$16 sps:$4 sm:$0xff]  }
 0x6b5   :  { %8093 = vst [vmem:[#allocation19_spill] sm:$0xff] %v7150_v33  ;;  %8094 = vst [vmem:[#allocation24_spill] sm:$0xff] %v7156_v35 }
 0x6b7   :  { %2974 = vmatpush1.bf16.msra.mxu0 %v7138_v34  ;;  %3017 = vmatpush1.bf16.msra.mxu1 %v7144_v15  ;;  %v7162_v34 = vld [vmem:[%s7566_s3] ss:$16 sps:$4 sm:$0xff]   ;;  %v7168_v15 = vld [vmem:[%s7566_s3 + $0x8] ss:$16 sps:$4 sm:$0xff]  }
 0x6b8   :  { %2975 = vmatprep.subr.bf16.mxu0 %v7150_v33  ;;  %3018 = vmatprep.subr.bf16.mxu1 %v7156_v35  ;;  %8095 = vst [vmem:[#allocation21_spill] sm:$0xff] %v7162_v34  ;;  %8096 = vst [vmem:[#allocation26_spill] sm:$0xff] %v7168_v15  ;;  %v7174_v33 = vld [vmem:[%s7567_s2 + $0xe4] ss:$16 sps:$4 sm:$0xff]   ;;  %v7180_v35 = vld [vmem:[%s7567_s2 + $0xec] ss:$16 sps:$4 sm:$0xff]  }
 0x6b9   :  { %8097 = vst [vmem:[#allocation23_spill] sm:$0xff] %v7174_v33  ;;  %8098 = vst [vmem:[#allocation27_spill] sm:$0xff] %v7180_v35 }
 0x6bb   :  { %2976 = vmatpush1.bf16.msra.mxu0 %v7162_v34  ;;  %3019 = vmatpush1.bf16.msra.mxu1 %v7168_v15 }
 0x6bc   :  { %3047 = vmatprep.subr.bf16.mxu0 %v7174_v33  ;;  %3090 = vmatprep.subr.bf16.mxu1 %v7180_v35 }
 0x71e   :  { %v2634_v34 = vpop.f32.mrf.mxu0  ;;  %v2677_v28 = vpop.f32.mrf.mxu1 }
 0x720   :  { %v2636_v9 = vpop.f32.mrf.mxu0  ;;  %v2679_v48 = vpop.f32.mrf.mxu1 }
 0x722   :  { %v2638_v22 = vpop.f32.mrf.mxu0  ;;  %v2681_v15 = vpop.f32.mrf.mxu1 }
 0x724   :  { %v2640_v24 = vpop.f32.mrf.mxu0  ;;  %v2683_v12 = vpop.f32.mrf.mxu1 }
 0x73e   :  { %v2720_v30 = vpop.f32.mrf.mxu0  ;;  %v2763_v17 = vpop.f32.mrf.mxu1 }
 0x73f   :  { %v2721_v19 = vadd.f32 %v2720_v30, %v2634_v34  ;;  %v2764_v44 = vadd.f32 %v2763_v17, %v2677_v28 }
 0x740   :  { %v2722_v53 = vpop.f32.mrf.mxu0  ;;  %v2765_v33 = vpop.f32.mrf.mxu1 }
 0x741   :  { %v2772_v46 = vadd.f32 %v2721_v19, %v5179_v41  ;;  %v2723_v47 = vadd.f32 %v2722_v53, %v2636_v9  ;;  %v2774_v11 = vadd.f32 %v2764_v44, %v5184_v54 }
 0x742   :  { %v2724_v36 = vpop.f32.mrf.mxu0  ;;  %v2767_v13 = vpop.f32.mrf.mxu1 }
 0x743   :  { %v2780_v16 = vmul.f32 0.5, %v2772_v46  ;;  %v2773_v35 = vadd.f32 %v2723_v47, %v5181_v61  ;;  %v2725_v1 = vadd.f32 %v2724_v36, %v2638_v22  ;;  %v2768_v34 = vadd.f32 %v2767_v13, %v2681_v15 }
 0x744   :  { %v2726_v27 = vpop.f32.mrf.mxu0  ;;  %v2769_v46 = vpop.f32.mrf.mxu1  ;;  %v2766_v47 = vadd.f32 %v2765_v33, %v2679_v48 }
 0x745   :  { %4071 = vtanh.f32 %v2780_v16  ;;  %v2788_v25 = vmul.f32 0.5, %v2773_v35  ;;  %v2727_v2 = vadd.f32 %v2726_v27, %v2640_v24  ;;  %v2776_v30 = vadd.f32 %v2725_v1, %v5179_v41 }
 0x746   :  { %v2778_v36 = vadd.f32 %v2768_v34, %v5184_v54  ;;  %v2770_v16 = vadd.f32 %v2769_v46, %v2683_v12  ;;  %v2775_v44 = vadd.f32 %v2766_v47, %v5191_v8  ;;  %v3694_v12 = vld [vmem:[%s7568_s0 + $0xc0] sm:$0xff]  ;;  %v3696_v47 = vld [vmem:[%s7568_s0 + $0xd0] sm:$0xff] }
 0x747   :  { %4073 = vtanh.f32 %v2788_v25  ;;  %v2777_v19 = vadd.f32 %v2727_v2, %v5181_v61  ;;  %v2781_v17 = vmul.f32 0.5, %v2776_v30  ;;  %v2821_v46 = vunpack.c.l.bf16 %v3694_v12 }
 0x748   :  { %4075 = vtanh.f32 %v2774_v11  ;;  %v2779_v27 = vadd.f32 %v2770_v16, %v5191_v8  ;;  %v2798_v24 = vmul.f32 0.5, %v2775_v44 }
 0x749   :  { %v2789_v53 = vmul.f32 0.5, %v2777_v19  ;;  %4077 = vtanh.f32 %v2781_v17 }
 0x74a   :  { %v2799_v11 = vmul.f32 0.5, %v2779_v27  ;;  %v2822_v27 = vunpack.c.h.bf16 %v3694_v12 }
 0x74b   :  { %4079 = vtanh.f32 %v2789_v53 }
 0x74c   :  { %4081 = vtanh.f32 %v2778_v36 }
 0x74d   :  { %4083 = vtanh.f32 %v2798_v24 }
 0x74e   :  { %4085 = vtanh.f32 %v2799_v11 }
 0x752   :  { %v4072_v1 = vpop.eup %4071 }
 0x753   :  { %v2784_v25 = vmul.f32 0.5, %v4072_v1 }
 0x754   :  { %v4074_v13 = vpop.eup %4073 }
 0x755   :  { %v2786_v2 = vadd.f32 0.5, %v2784_v25  ;;  %v2792_v22 = vmul.f32 0.5, %v4074_v13  ;;  %v4076_v9 = vpop.eup %4075 }
 0x756   :  { %v4078_v28 = vpop.eup %4077 }
 0x757   :  { %v2794_v15 = vadd.f32 0.5, %v2792_v22  ;;  %v2785_v30 = vmul.f32 0.5, %v4078_v28  ;;  %v2808_v33 = vmul.f32 %v4076_v9, %v2786_v2  ;;  %v2825_v2 = vunpack.c.l.bf16 %v3696_v47 }
 0x758   :  { %v4080_v35 = vpop.eup %4079  ;;  %v2826_v28 = vunpack.c.h.bf16 %v3696_v47 }
 0x759   :  { %v2806_v48 = vmul.f32 %v2794_v15, %v6721_v29  ;;  %v2793_v34 = vmul.f32 0.5, %v4080_v35  ;;  %v2787_v19 = vadd.f32 0.5, %v2785_v30  ;;  %v4082_v36 = vpop.eup %4081  ;;  %v3695_v29 = vld [vmem:[%s7568_s0 + $0xc8] sm:$0xff]  ;;  %v3697_v30 = vld [vmem:[%s7568_s0 + $0xd8] sm:$0xff] }
 0x75a   :  { %v2823_v22 = vunpack.c.l.bf16 %v3695_v29 }
 0x75b   :  { %v7195_v17 = vadd.f32 %v2808_v33, %v2806_v48  ;;  %v2795_v53 = vadd.f32 0.5, %v2793_v34  ;;  %v2809_v44 = vmul.f32 %v4082_v36, %v2787_v19  ;;  %v4084_v19 = vpop.eup %4083 }
 0x75d   :  { %v2807_v16 = vmul.f32 %v2795_v53, %v6731_v40  ;;  %4087 = vtanh.f32 %v7195_v17 }
 0x75e   :  { %v2863_v1 = vpop.f32.mrf.mxu0  ;;  %v2906_v25 = vpop.f32.mrf.mxu1 }
 0x75f   :  { %v7205_v13 = vadd.f32 %v2809_v44, %v2807_v16  ;;  %v2915_v24 = vadd.f32 %v2863_v1, %v2821_v46  ;;  %v2917_v33 = vadd.f32 %v2906_v25, %v2823_v22  ;;  %v2827_v46 = vunpack.c.l.bf16 %v3697_v30  ;;  %v4086_v16 = vpop.eup %4085 }
 0x760   :  { %v2865_v11 = vpop.f32.mrf.mxu0  ;;  %v2908_v15 = vpop.f32.mrf.mxu1  ;;  %v2802_v1 = vmul.f32 0.5, %v4084_v19 }
 0x761   :  { %8099 = vst [vmem:[#allocation25_spill] sm:$0xff] %v7205_v13  ;;  %4089 = vtanh.f32 %v7205_v13  ;;  %v2923_v9 = vmul.f32 0.5, %v2915_v24  ;;  %v2916_v40 = vadd.f32 %v2865_v11, %v2822_v27  ;;  %v2824_v27 = vunpack.c.h.bf16 %v3695_v29 }
 0x762   :  { %v2867_v35 = vpop.f32.mrf.mxu0  ;;  %v2910_v44 = vpop.f32.mrf.mxu1  ;;  %v2803_v24 = vmul.f32 0.5, %v4086_v16  ;;  %v2804_v25 = vadd.f32 0.5, %v2802_v1  ;;  %v7226_v1 = vld [vmem:[%s7567_s2 + $0xc4] ss:$16 sps:$4 sm:$0xff]  }
 0x763   :  { %4091 = vtanh.f32 %v2923_v9  ;;  %v2931_v12 = vmul.f32 0.5, %v2916_v40  ;;  %v2919_v48 = vadd.f32 %v2867_v35, %v2825_v2  ;;  %v2921_v11 = vadd.f32 %v2910_v44, %v2827_v46 }
 0x764   :  { %v2869_v34 = vpop.f32.mrf.mxu0  ;;  %v2828_v9 = vunpack.c.h.bf16 %v3697_v30  ;;  %v2912_v40 = vpop.f32.mrf.mxu1  ;;  %v2805_v22 = vadd.f32 0.5, %v2803_v24  ;;  %v2918_v35 = vadd.f32 %v2908_v15, %v2824_v27  ;;  %v7214_v15 = vld [vmem:[%s7567_s2 + $0xe0] ss:$16 sps:$4 sm:$0xff]   ;;  %v7232_v24 = vld [vmem:[%s7567_s2 + $0xcc] ss:$16 sps:$4 sm:$0xff]  }
 0x765   :  { %4093 = vtanh.f32 %v2931_v12  ;;  %v2924_v53 = vmul.f32 0.5, %v2919_v48  ;;  %v2920_v36 = vadd.f32 %v2869_v34, %v2826_v28 }
 0x766   :  { %v2922_v48 = vadd.f32 %v2912_v40, %v2828_v9 }
 0x767   :  { %4095 = vtanh.f32 %v2924_v53  ;;  %v2932_v47 = vmul.f32 0.5, %v2920_v36  ;;  %v2941_v36 = vmul.f32 0.5, %v2918_v35  ;;  %v7247_v35 = vld [vmem:[%s7567_s2 + $0xc8] ss:$16 sps:$4 sm:$0xff]  }
 0x768   :  { %4097 = vtanh.f32 %v2917_v33  ;;  %v2942_v19 = vmul.f32 0.5, %v2922_v48  ;;  %v7255_v48 = vld [vmem:[%s7567_s2 + $0xa4] ss:$16 sps:$4 sm:$0xff]  }
 0x769   :  { %4099 = vtanh.f32 %v2932_v47 }
 0x76a   :  { %v4088_v2 = vpop.eup %4087  ;;  %4101 = vtanh.f32 %v2921_v11 }
 0x76b   :  { %v2814_v28 = vmul.f32 %v4088_v2, %v2804_v25  ;;  %4103 = vtanh.f32 %v2941_v36 }
 0x76c   :  { %4105 = vtanh.f32 %v2942_v19 }
 0x76e   :  { %v4090_v12 = vpop.eup %4089 }
 0x76f   :  { %v2815_v34 = vmul.f32 %v4090_v12, %v2805_v22  ;;  %v7241_v22 = vld [vmem:[%s7567_s2 + $0xc0] ss:$16 sps:$4 sm:$0xff]  }
 0x770   :  { %v4092_v13 = vpop.eup %4091 }
 0x771   :  { %v2927_v53 = vmul.f32 0.5, %v4092_v13  ;;  %v2960_v33 = vpack.c.bf16 %v2815_v34, %v2814_v28  ;;  %v7220_v13 = vld [vmem:[%s7567_s2 + $0xe8] ss:$16 sps:$4 sm:$0xff]   ;;  %v7261_v28 = vld [vmem:[%s7567_s2 + $0xac] ss:$16 sps:$4 sm:$0xff]  }
 0x772   :  { %v4094_v29 = vpop.eup %4093 }
 0x773   :  { %v2929_v16 = vadd.f32 0.5, %v2927_v53  ;;  %v2935_v46 = vmul.f32 0.5, %v4094_v29  ;;  %2994 = vmatmul.mubr.bf16.vlgmr.msra.gmra.mxu0 %v2960_v33  ;;  %3037 = vmatmul.mubr.bf16.vlgmr.msra.gmra.mxu1 %v2960_v33  ;;  %v7268_v33 = vld [vmem:[%s7567_s2 + $0xa0] ss:$16 sps:$4 sm:$0xff]   ;;  %v7274_v29 = vld [vmem:[%s7567_s2 + $0xa8] ss:$16 sps:$4 sm:$0xff]  }
 0x774   :  { %v4096_v30 = vpop.eup %4095  ;;  %3048 = vmatpush1.bf16.msra.mxu0 %v7214_v15  ;;  %3091 = vmatpush1.bf16.msra.mxu1 %v7220_v13 }
 0x775   :  { %v4098_v44 = vpop.eup %4097  ;;  %v2937_v47 = vadd.f32 0.5, %v2935_v46  ;;  %v2928_v27 = vmul.f32 0.5, %v4096_v30  ;;  %3049 = vmatprep.subr.bf16.mxu0 %v7226_v1  ;;  %3092 = vmatprep.subr.bf16.mxu1 %v7232_v24  ;;  %v7296_v46 = vld [vmem:[%s7567_s2 + $0x80] ss:$16 sps:$4 sm:$0xff]   ;;  %v7302_v30 = vld [vmem:[%s7567_s2 + $0x88] ss:$16 sps:$4 sm:$0xff]  }
 0x776   :  { %v4100_v11 = vpop.eup %4099  ;;  %3079 = vmatprep.mubr.bf16.mxu0 %v7792_v60  ;;  %3122 = vmatprep.mubr.bf16.mxu1 %v7792_v60  ;;  %v2951_v40 = vmul.f32 %v4098_v44, %v2929_v16  ;;  %v7289_v16 = vld [vmem:[%s7567_s2 + $0x8c] ss:$16 sps:$4 sm:$0xff]   ;;  %v7308_v44 = vld [vmem:[%s7567_s2 + $0x64] ss:$16 sps:$4 sm:$0xff]  }
 0x777   :  { %v2949_v9 = vmul.f32 %v2937_v47, %v6746_v32  ;;  %v2930_v2 = vadd.f32 0.5, %v2928_v27  ;;  %v2936_v25 = vmul.f32 0.5, %v4100_v11  ;;  %v4102_v34 = vpop.eup %4101  ;;  %v7314_v47 = vld [vmem:[%s7567_s2 + $0x6c] ss:$16 sps:$4 sm:$0xff]  }
 0x778   :  { %3050 = vmatpush1.bf16.msra.mxu0 %v7241_v22  ;;  %3093 = vmatpush1.bf16.msra.mxu1 %v7247_v35  ;;  %v4104_v27 = vpop.eup %4103 }
 0x779   :  { %v7250_v12 = vadd.f32 %v2951_v40, %v2949_v9  ;;  %v2938_v32 = vadd.f32 0.5, %v2936_v25  ;;  %3051 = vmatprep.subr.bf16.mxu0 %v7255_v48  ;;  %3094 = vmatprep.subr.bf16.mxu1 %v7261_v28  ;;  %v2952_v36 = vmul.f32 %v4102_v34, %v2930_v2  ;;  %v4106_v11 = vpop.eup %4105  ;;  %v7320_v9 = vld [vmem:[%s7567_s2 + $0x60] ss:$16 sps:$4 sm:$0xff]   ;;  %v7326_v40 = vld [vmem:[%s7567_s2 + $0x68] ss:$16 sps:$4 sm:$0xff]  }
 0x77a   :  { %8100 = vst [vmem:[#allocation28_spill] sm:$0xff] %v7320_v9  ;;  %8101 = vst [vmem:[#allocation29_spill] sm:$0xff] %v7326_v40  ;;  %v7332_v2 = vld [vmem:[%s7567_s2 + $0x44] ss:$16 sps:$4 sm:$0xff]   ;;  %v7338_v25 = vld [vmem:[%s7567_s2 + $0x4c] ss:$16 sps:$4 sm:$0xff]  }
 0x77b   :  { %v2950_v53 = vmul.f32 %v2938_v32, %v6754_v10  ;;  %4107 = vtanh.f32 %v7250_v12  ;;  %v7283_v10 = vld [vmem:[%s7567_s2 + $0x84] ss:$16 sps:$4 sm:$0xff]   ;;  %8102 = vst [vmem:[#allocation30_spill] sm:$0xff] %v7332_v2  ;;  %8103 = vst [vmem:[#allocation31_spill] sm:$0xff] %v7338_v25  ;;  %v2945_v32 = vmul.f32 0.5, %v4104_v27  ;;  %v2946_v34 = vmul.f32 0.5, %v4106_v11 }
 0x77c   :  { %3052 = vmatpush1.bf16.msra.mxu0 %v7268_v33  ;;  %3095 = vmatpush1.bf16.msra.mxu1 %v7274_v29  ;;  %v7362_v27 = vld [vmem:[%s7567_s2 + $0x2c] ss:$16 sps:$4 sm:$0xff]  }
 0x77d   :  { %v7278_v19 = vadd.f32 %v2952_v36, %v2950_v53  ;;  %3053 = vmatprep.subr.bf16.mxu0 %v7283_v10  ;;  %3096 = vmatprep.subr.bf16.mxu1 %v7289_v16  ;;  %v7344_v53 = vld [vmem:[%s7567_s2 + $0x40] ss:$16 sps:$4 sm:$0xff]   ;;  %v7350_v36 = vld [vmem:[%s7567_s2 + $0x48] ss:$16 sps:$4 sm:$0xff]   ;;  %8107 = vst [vmem:[#allocation35_spill] sm:$0xff] %v7362_v27 }
 0x77e   :  { %8104 = vst [vmem:[#allocation32_spill] sm:$0xff] %v7344_v53  ;;  %8105 = vst [vmem:[#allocation33_spill] sm:$0xff] %v7350_v36 }
 0x77f   :  { %4109 = vtanh.f32 %v7278_v19 }
 0x780   :  { %3054 = vmatpush1.bf16.msra.mxu0 %v7296_v46  ;;  %3097 = vmatpush1.bf16.msra.mxu1 %v7302_v30 }
 0x781   :  { %3055 = vmatprep.subr.bf16.mxu0 %v7308_v44  ;;  %3098 = vmatprep.subr.bf16.mxu1 %v7314_v47 }
 0x784   :  { %3056 = vmatpush1.bf16.msra.mxu0 %v7320_v9  ;;  %3099 = vmatpush1.bf16.msra.mxu1 %v7326_v40 }
 0x785   :  { %3057 = vmatprep.subr.bf16.mxu0 %v7332_v2  ;;  %3100 = vmatprep.subr.bf16.mxu1 %v7338_v25  ;;  %v7356_v25 = vld [vmem:[%s7567_s2 + $0x24] ss:$16 sps:$4 sm:$0xff]   ;;  %v2948_v2 = vadd.f32 0.5, %v2946_v34  ;;  %v7386_v34 = vld [vmem:[%s7567_s2 + $0xc] ss:$16 sps:$4 sm:$0xff]  }
 0x786   :  { %8106 = vst [vmem:[#allocation34_spill] sm:$0xff] %v7356_v25 }
 0x788   :  { %3058 = vmatpush1.bf16.msra.mxu0 %v7344_v53  ;;  %3101 = vmatpush1.bf16.msra.mxu1 %v7350_v36  ;;  %v4108_v11 = vpop.eup %4107  ;;  %v2947_v53 = vadd.f32 0.5, %v2945_v32  ;;  %v7368_v36 = vld [vmem:[%s7567_s2 + $0x20] ss:$16 sps:$4 sm:$0xff]   ;;  %v7380_v32 = vld [vmem:[%s7567_s2 + $0x4] ss:$16 sps:$4 sm:$0xff]  }
 0x789   :  { %3059 = vmatprep.subr.bf16.mxu0 %v7356_v25  ;;  %3102 = vmatprep.subr.bf16.mxu1 %v7362_v27  ;;  %8108 = vst [vmem:[#allocation36_spill] sm:$0xff] %v7368_v36  ;;  %v7374_v25 = vld [vmem:[%s7567_s2 + $0x28] ss:$16 sps:$4 sm:$0xff]  }
 0x78a   :  { %v2957_v9 = vmul.f32 %v4108_v11, %v2947_v53  ;;  %v7392_v53 = vld [vmem:[%s7567_s2] ss:$16 sps:$4 sm:$0xff]  }
 0x78b   :  { %v8143_v11 = vld [vmem:[#allocation23_spill] sm:$0xff] }
 0x78c   :  { %v4110_v40 = vpop.eup %4109  ;;  %3060 = vmatpush1.bf16.msra.mxu0 %v7368_v36  ;;  %3103 = vmatpush1.bf16.msra.mxu1 %v7374_v25 }
 0x78d   :  { %v2958_v27 = vmul.f32 %v4110_v40, %v2948_v2  ;;  %3061 = vmatprep.subr.bf16.mxu0 %v7380_v32  ;;  %3104 = vmatprep.subr.bf16.mxu1 %v7386_v34  ;;  %v7398_v40 = vld [vmem:[%s7567_s2 + $0x8] ss:$16 sps:$4 sm:$0xff]  }
 0x78e   :  { %v8140_v2 = vld [vmem:[#allocation24_spill] sm:$0xff] }
 0x78f   :  { %v2959_v36 = vpack.c.bf16 %v2958_v27, %v2957_v9  ;;  %v8139_v9 = vld [vmem:[#allocation19_spill] sm:$0xff]  ;;  %v8142_v27 = vld [vmem:[#allocation26_spill] sm:$0xff] }
 0x790   :  { %3062 = vmatpush1.bf16.msra.mxu0 %v7392_v53  ;;  %3105 = vmatpush1.bf16.msra.mxu1 %v7398_v40 }
 0x791   :  { %3190 = vmatprep.subr.bf16.mxu0 %v6782_v31  ;;  %3233 = vmatprep.subr.bf16.mxu1 %v6788_v6  ;;  %v8109_v31 = vld [vmem:[#allocation45_spill] sm:$0xff]  ;;  %v8110_v6 = vld [vmem:[#allocation46_spill] sm:$0xff] }
 0x793   :  { %3080 = vmatmul.mubr.bf16.vlgmr.msra.gmra.mxu0 %v2959_v36  ;;  %3123 = vmatmul.mubr.bf16.vlgmr.msra.gmra.mxu1 %v2959_v36 }
 0x794   :  { %3191 = vmatpush1.bf16.msra.mxu0 %v6796_v5  ;;  %3234 = vmatpush1.bf16.msra.mxu1 %v6802_v57  ;;  %v8111_v5 = vld [vmem:[#allocation47_spill] sm:$0xff]  ;;  %v8112_v57 = vld [vmem:[#allocation48_spill] sm:$0xff] }
 0x795   :  { %3192 = vmatprep.subr.bf16.mxu0 %v6808_v14  ;;  %3235 = vmatprep.subr.bf16.mxu1 %v6814_v21  ;;  %v8113_v14 = vld [vmem:[#allocation49_spill] sm:$0xff]  ;;  %v8114_v21 = vld [vmem:[#allocation50_spill] sm:$0xff] }
 0x796   :  { %3222 = vmatprep.mubr.bf16.mxu0 %v7792_v60  ;;  %3265 = vmatprep.mubr.bf16.mxu1 %v7792_v60 }
 0x798   :  { %3193 = vmatpush1.bf16.msra.mxu0 %v6822_v37  ;;  %3236 = vmatpush1.bf16.msra.mxu1 %v6828_v38  ;;  %v8115_v37 = vld [vmem:[#allocation51_spill] sm:$0xff]  ;;  %v8116_v38 = vld [vmem:[#allocation52_spill] sm:$0xff] }
 0x799   :  { %3194 = vmatprep.subr.bf16.mxu0 %v6834_v39  ;;  %3237 = vmatprep.subr.bf16.mxu1 %v6840_v43  ;;  %v8117_v39 = vld [vmem:[#allocation53_spill] sm:$0xff]  ;;  %v8118_v43 = vld [vmem:[#allocation54_spill] sm:$0xff] }
 0x79c   :  { %3195 = vmatpush1.bf16.msra.mxu0 %v6846_v56  ;;  %3238 = vmatpush1.bf16.msra.mxu1 %v6852_v23  ;;  %v8119_v56 = vld [vmem:[#allocation55_spill] sm:$0xff]  ;;  %v8120_v23 = vld [vmem:[#allocation56_spill] sm:$0xff] }
 0x79d   :  { %3196 = vmatprep.subr.bf16.mxu0 %v6858_v49  ;;  %3239 = vmatprep.subr.bf16.mxu1 %v6864_v20  ;;  %v8121_v49 = vld [vmem:[#allocation57_spill] sm:$0xff]  ;;  %v8122_v20 = vld [vmem:[#allocation58_spill] sm:$0xff] }
 0x7a0   :  { %3197 = vmatpush1.bf16.msra.mxu0 %v6870_v59  ;;  %3240 = vmatpush1.bf16.msra.mxu1 %v6876_v18  ;;  %v8123_v59 = vld [vmem:[#allocation59_spill] sm:$0xff]  ;;  %v8124_v18 = vld [vmem:[#allocation60_spill] sm:$0xff] }
 0x7a1   :  { %3198 = vmatprep.subr.bf16.mxu0 %v6882_v52  ;;  %3241 = vmatprep.subr.bf16.mxu1 %v6888_v45  ;;  %v8125_v52 = vld [vmem:[#allocation7_spill] sm:$0xff]  ;;  %v8126_v45 = vld [vmem:[#allocation9_spill] sm:$0xff] }
 0x7a4   :  { %3199 = vmatpush1.bf16.msra.mxu0 %v6894_v7  ;;  %3242 = vmatpush1.bf16.msra.mxu1 %v6900_v58  ;;  %v8127_v7 = vld [vmem:[#allocation8_spill] sm:$0xff]  ;;  %v8128_v58 = vld [vmem:[#allocation10_spill] sm:$0xff] }
 0x7a5   :  { %3200 = vmatprep.subr.bf16.mxu0 %v6906_v42  ;;  %3243 = vmatprep.subr.bf16.mxu1 %v6912_v50  ;;  %v8129_v42 = vld [vmem:[#allocation11_spill] sm:$0xff]  ;;  %v8130_v50 = vld [vmem:[#allocation13_spill] sm:$0xff] }
 0x7a8   :  { %3201 = vmatpush1.bf16.msra.mxu0 %v6918_v0  ;;  %3244 = vmatpush1.bf16.msra.mxu1 %v6924_v26  ;;  %v8131_v0 = vld [vmem:[#allocation12_spill] sm:$0xff] }
 0x7a9   :  { %3202 = vmatprep.subr.bf16.mxu0 %v6930_v55  ;;  %3245 = vmatprep.subr.bf16.mxu1 %v6936_v3  ;;  %v8132_v26 = vld [vmem:[#allocation16_spill] sm:$0xff]  ;;  %v8133_v55 = vld [vmem:[#allocation14_spill] sm:$0xff] }
 0x7aa   :  { %v8134_v3 = vld [vmem:[#allocation18_spill] sm:$0xff] }
 0x7ac   :  { %3203 = vmatpush1.bf16.msra.mxu0 %v6942_v63  ;;  %3246 = vmatpush1.bf16.msra.mxu1 %v6948_v51  ;;  %v8135_v63 = vld [vmem:[#allocation15_spill] sm:$0xff]  ;;  %v8136_v51 = vld [vmem:[#allocation20_spill] sm:$0xff] }
 0x7ad   :  { %3204 = vmatprep.subr.bf16.mxu0 %v6954_v4  ;;  %3247 = vmatprep.subr.bf16.mxu1 %v6960_v62  ;;  %v8137_v4 = vld [vmem:[#allocation17_spill] sm:$0xff]  ;;  %v8138_v62 = vld [vmem:[#allocation22_spill] sm:$0xff] }
 0x7b0   :  { %3205 = vmatpush1.bf16.msra.mxu0 %v8109_v31  ;;  %3248 = vmatpush1.bf16.msra.mxu1 %v8110_v6  ;;  %v8144_v31 = vld [vmem:[#allocation27_spill] sm:$0xff] }
 0x7b1   :  { %3322 = vmatprep.subr.bf16.mxu0 %v8111_v5  ;;  %3365 = vmatprep.subr.bf16.mxu1 %v8112_v57 }
 0x7b3   :  { %3223 = vmatmul.mubr.bf16.vlgmr.msra.gmra.mxu0 %v2959_v36  ;;  %3266 = vmatmul.mubr.bf16.vlgmr.msra.gmra.mxu1 %v2959_v36  ;;  %v8141_v36 = vld [vmem:[#allocation21_spill] sm:$0xff] }
 0x7b4   :  { %3323 = vmatpush1.bf16.msra.mxu0 %v8113_v14  ;;  %3366 = vmatpush1.bf16.msra.mxu1 %v8114_v21 }
 0x7b5   :  { %3324 = vmatprep.subr.bf16.mxu0 %v8115_v37  ;;  %3367 = vmatprep.subr.bf16.mxu1 %v8116_v38 }
 0x7b6   :  { %3354 = vmatprep.mubr.bf16.mxu0 %v7792_v60  ;;  %3397 = vmatprep.mubr.bf16.mxu1 %v7792_v60 }
 0x7b8   :  { %3325 = vmatpush1.bf16.msra.mxu0 %v8117_v39  ;;  %3368 = vmatpush1.bf16.msra.mxu1 %v8118_v43 }
 0x7b9   :  { %3326 = vmatprep.subr.bf16.mxu0 %v8119_v56  ;;  %3369 = vmatprep.subr.bf16.mxu1 %v8120_v23 }
 0x7bc   :  { %3327 = vmatpush1.bf16.msra.mxu0 %v8121_v49  ;;  %3370 = vmatpush1.bf16.msra.mxu1 %v8122_v20 }
 0x7bd   :  { %3328 = vmatprep.subr.bf16.mxu0 %v8123_v59  ;;  %3371 = vmatprep.subr.bf16.mxu1 %v8124_v18 }
 0x7c0   :  { %3329 = vmatpush1.bf16.msra.mxu0 %v8125_v52  ;;  %3372 = vmatpush1.bf16.msra.mxu1 %v8126_v45 }
 0x7c1   :  { %3330 = vmatprep.subr.bf16.mxu0 %v8127_v7  ;;  %3373 = vmatprep.subr.bf16.mxu1 %v8128_v58 }
 0x7c4   :  { %3331 = vmatpush1.bf16.msra.mxu0 %v8129_v42  ;;  %3374 = vmatpush1.bf16.msra.mxu1 %v8130_v50 }
 0x7c5   :  { %3332 = vmatprep.subr.bf16.mxu0 %v8131_v0  ;;  %3375 = vmatprep.subr.bf16.mxu1 %v8132_v26 }
 0x7c8   :  { %3333 = vmatpush1.bf16.msra.mxu0 %v8133_v55  ;;  %3376 = vmatpush1.bf16.msra.mxu1 %v8134_v3 }
 0x7c9   :  { %3334 = vmatprep.subr.bf16.mxu0 %v8135_v63  ;;  %3377 = vmatprep.subr.bf16.mxu1 %v8136_v51 }
 0x7cc   :  { %3335 = vmatpush1.bf16.msra.mxu0 %v8137_v4  ;;  %3378 = vmatpush1.bf16.msra.mxu1 %v8138_v62 }
 0x7cd   :  { %3336 = vmatprep.subr.bf16.mxu0 %v8139_v9  ;;  %3379 = vmatprep.subr.bf16.mxu1 %v8140_v2 }
 0x7d0   :  { %3337 = vmatpush1.bf16.msra.mxu0 %v8141_v36  ;;  %3380 = vmatpush1.bf16.msra.mxu1 %v8142_v27 }
 0x7d1   :  { %3408 = vmatprep.subr.bf16.mxu0 %v8143_v11  ;;  %3451 = vmatprep.subr.bf16.mxu1 %v8144_v31 }
 0x833   :  { %v2995_v6 = vpop.f32.mrf.mxu0  ;;  %v3038_v5 = vpop.f32.mrf.mxu1 }
 0x835   :  { %v2997_v57 = vpop.f32.mrf.mxu0  ;;  %v3040_v14 = vpop.f32.mrf.mxu1 }
 0x837   :  { %v2999_v21 = vpop.f32.mrf.mxu0  ;;  %v3042_v37 = vpop.f32.mrf.mxu1 }
 0x839   :  { %v3001_v38 = vpop.f32.mrf.mxu0  ;;  %v3044_v39 = vpop.f32.mrf.mxu1 }
 0x853   :  { %v3081_v43 = vpop.f32.mrf.mxu0  ;;  %v3124_v56 = vpop.f32.mrf.mxu1 }
 0x854   :  { %v3082_v23 = vadd.f32 %v3081_v43, %v2995_v6  ;;  %v3125_v18 = vadd.f32 %v3124_v56, %v3038_v5 }
 0x855   :  { %v3083_v49 = vpop.f32.mrf.mxu0  ;;  %v3126_v20 = vpop.f32.mrf.mxu1 }
 0x856   :  { %v3133_v59 = vadd.f32 %v3082_v23, %v5179_v41  ;;  %v3084_v52 = vadd.f32 %v3083_v49, %v2997_v57  ;;  %v3135_v26 = vadd.f32 %v3125_v18, %v5184_v54  ;;  %v3127_v27 = vadd.f32 %v3126_v20, %v3040_v14  ;;  %v3698_v14 = vld [vmem:[%s7568_s0 + $0xe0] sm:$0xff] }
 0x857   :  { %v3085_v45 = vpop.f32.mrf.mxu0  ;;  %v3128_v50 = vpop.f32.mrf.mxu1 }
 0x858   :  { %v3141_v7 = vmul.f32 0.5, %v3133_v59  ;;  %v3134_v58 = vadd.f32 %v3084_v52, %v5181_v61  ;;  %v3086_v42 = vadd.f32 %v3085_v45, %v2999_v21  ;;  %v3129_v51 = vadd.f32 %v3128_v50, %v3042_v37 }
 0x859   :  { %v3087_v0 = vpop.f32.mrf.mxu0  ;;  %v3130_v2 = vpop.f32.mrf.mxu1  ;;  %v3136_v31 = vadd.f32 %v3127_v27, %v5191_v8  ;;  %v3182_v50 = vunpack.c.l.bf16 %v3698_v14 }
 0x85a   :  { %4111 = vtanh.f32 %v3141_v7  ;;  %v3149_v55 = vmul.f32 0.5, %v3134_v58  ;;  %v3088_v3 = vadd.f32 %v3087_v0, %v3001_v38  ;;  %v3137_v63 = vadd.f32 %v3086_v42, %v5179_v41 }
 0x85b   :  { %v3139_v36 = vadd.f32 %v3129_v51, %v5184_v54  ;;  %v3131_v11 = vadd.f32 %v3130_v2, %v3044_v39  ;;  %v3159_v37 = vmul.f32 0.5, %v3136_v31  ;;  %v3183_v51 = vunpack.c.h.bf16 %v3698_v14 }
 0x85c   :  { %4113 = vtanh.f32 %v3149_v55  ;;  %v3138_v4 = vadd.f32 %v3088_v3, %v5181_v61  ;;  %v3142_v62 = vmul.f32 0.5, %v3137_v63  ;;  %v8145_v55 = vld [vmem:[#allocation25_spill] sm:$0xff] }
 0x85d   :  { %4115 = vtanh.f32 %v3135_v26  ;;  %v3140_v6 = vadd.f32 %v3131_v11, %v5191_v8  ;;  %v3700_v26 = vld [vmem:[%s7568_s0 + $0xf0] sm:$0xff] }
 0x85e   :  { %v3150_v9 = vmul.f32 0.5, %v3138_v4  ;;  %4117 = vtanh.f32 %v3142_v62 }
 0x85f   :  { %v3160_v56 = vmul.f32 0.5, %v3140_v6 }
 0x860   :  { %4119 = vtanh.f32 %v3150_v9 }
 0x861   :  { %4121 = vtanh.f32 %v3139_v36  ;;  %v3186_v36 = vunpack.c.l.bf16 %v3700_v26 }
 0x862   :  { %4123 = vtanh.f32 %v3159_v37  ;;  %v3701_v37 = vld [vmem:[%s7568_s0 + $0xf8] sm:$0xff] }
 0x863   :  { %4125 = vtanh.f32 %v3160_v56 }
 0x867   :  { %v4112_v5 = vpop.eup %4111 }
 0x868   :  { %v3145_v57 = vmul.f32 0.5, %v4112_v5  ;;  %v3187_v5 = vunpack.c.h.bf16 %v3700_v26 }
 0x869   :  { %v4114_v21 = vpop.eup %4113 }
 0x86a   :  { %v3147_v38 = vadd.f32 0.5, %v3145_v57  ;;  %v3153_v43 = vmul.f32 0.5, %v4114_v21  ;;  %v4116_v23 = vpop.eup %4115 }
 0x86b   :  { %v4118_v49 = vpop.eup %4117 }
 0x86c   :  { %v3155_v59 = vadd.f32 0.5, %v3153_v43  ;;  %v3146_v52 = vmul.f32 0.5, %v4118_v49  ;;  %v3169_v20 = vmul.f32 %v4116_v23, %v3147_v38 }
 0x86d   :  { %v4120_v18 = vpop.eup %4119 }
 0x86e   :  { %v3167_v39 = vmul.f32 %v3155_v59, %v7195_v17  ;;  %v3154_v45 = vmul.f32 0.5, %v4120_v18  ;;  %v3148_v7 = vadd.f32 0.5, %v3146_v52  ;;  %v4122_v0 = vpop.eup %4121  ;;  %v3699_v17 = vld [vmem:[%s7568_s0 + $0xe8] sm:$0xff]  ;;  %v3188_v18 = vunpack.c.l.bf16 %v3701_v37 }
 0x86f   :  { %v3184_v27 = vunpack.c.l.bf16 %v3699_v17  ;;  %v4124_v49 = vpop.eup %4123 }
 0x870   :  { %v7483_v58 = vadd.f32 %v3169_v20, %v3167_v39  ;;  %v3156_v42 = vadd.f32 0.5, %v3154_v45  ;;  %v3170_v63 = vmul.f32 %v4122_v0, %v3148_v7  ;;  %v4126_v14 = vpop.eup %4125  ;;  %v3185_v45 = vunpack.c.h.bf16 %v3699_v17 }
 0x871   :  { %v3163_v7 = vmul.f32 0.5, %v4124_v49  ;;  %v3189_v0 = vunpack.c.h.bf16 %v3701_v37 }
 0x872   :  { %v3168_v3 = vmul.f32 %v3156_v42, %v8145_v55  ;;  %4127 = vtanh.f32 %v7483_v58  ;;  %v3164_v42 = vmul.f32 0.5, %v4126_v14 }
 0x873   :  { %v3224_v4 = vpop.f32.mrf.mxu0  ;;  %v3267_v62 = vpop.f32.mrf.mxu1 }
 0x874   :  { %v7493_v9 = vadd.f32 %v3170_v63, %v3168_v3  ;;  %v3276_v2 = vadd.f32 %v3224_v4, %v3182_v50  ;;  %v3278_v56 = vadd.f32 %v3267_v62, %v3184_v27  ;;  %v3165_v3 = vadd.f32 0.5, %v3163_v7 }
 0x875   :  { %v3226_v11 = vpop.f32.mrf.mxu0  ;;  %v3269_v57 = vpop.f32.mrf.mxu1  ;;  %v3166_v63 = vadd.f32 0.5, %v3164_v42 }
 0x876   :  { %4129 = vtanh.f32 %v7493_v9  ;;  %v3284_v31 = vmul.f32 0.5, %v3276_v2  ;;  %v3277_v6 = vadd.f32 %v3226_v11, %v3183_v51  ;;  %v3279_v51 = vadd.f32 %v3269_v57, %v3185_v45  ;;  %v8154_v45 = vld [vmem:[#allocation36_spill] sm:$0xff] }
 0x877   :  { %v3228_v21 = vpop.f32.mrf.mxu0  ;;  %v3271_v39 = vpop.f32.mrf.mxu1 }
 0x878   :  { %4131 = vtanh.f32 %v3284_v31  ;;  %v3292_v38 = vmul.f32 0.5, %v3277_v6  ;;  %v3280_v43 = vadd.f32 %v3228_v21, %v3186_v36  ;;  %v3282_v50 = vadd.f32 %v3271_v39, %v3188_v18 }
 0x879   :  { %v3230_v23 = vpop.f32.mrf.mxu0  ;;  %v3273_v26 = vpop.f32.mrf.mxu1  ;;  %v3302_v31 = vmul.f32 0.5, %v3279_v51 }
 0x87a   :  { %4133 = vtanh.f32 %v3292_v38  ;;  %v3285_v59 = vmul.f32 0.5, %v3280_v43  ;;  %v3281_v52 = vadd.f32 %v3230_v23, %v3187_v5  ;;  %v3283_v62 = vadd.f32 %v3273_v26, %v3189_v0 }
 0x87b   :  { %v12_v0 = vstv %s7570_s6  ;;  %v4461_v26 = vmov 0.0  }
 0x87c   :  { %4135 = vtanh.f32 %v3285_v59  ;;  %v3293_v20 = vmul.f32 0.5, %v3281_v52  ;;  %v3303_v5 = vmul.f32 0.5, %v3283_v62  ;;  %42 = vst.msk [vmem:[%s7571_s7] sm:$0xff] %vm41_vm0, %v4461_v26  ;;  %43 = vst.msk [vmem:[%s7571_s7 + $0x8] sm:$0xff] %vm41_vm0, %v4461_v26 }
 0x87d   :  { %4137 = vtanh.f32 %v3278_v56  ;;  %13 = vst [vmem:[#allocation6] sm:$0x1] %v12_v0 }
 0x87e   :  { %4139 = vtanh.f32 %v3293_v20 }
 0x87f   :  { %v4128_v55 = vpop.eup %4127  ;;  %4141 = vtanh.f32 %v3282_v50 }
 0x880   :  { %v3175_v2 = vmul.f32 %v4128_v55, %v3165_v3  ;;  %4143 = vtanh.f32 %v3302_v31 }
 0x881   :  { %4145 = vtanh.f32 %v3303_v5 }
 0x883   :  { %v4130_v4 = vpop.eup %4129 }
 0x884   :  { %v3176_v36 = vmul.f32 %v4130_v4, %v3166_v63 }
 0x885   :  { %v4132_v27 = vpop.eup %4131 }
 0x886   :  { %v3288_v11 = vmul.f32 0.5, %v4132_v27  ;;  %v3321_v6 = vpack.c.bf16 %v3176_v36, %v3175_v2 }
 0x887   :  { %v4134_v17 = vpop.eup %4133 }
 0x888   :  { %v3290_v21 = vadd.f32 0.5, %v3288_v11  ;;  %v3296_v38 = vmul.f32 0.5, %v4134_v17  ;;  %3355 = vmatmul.mubr.bf16.vlgmr.msra.gmra.mxu0 %v3321_v6  ;;  %3398 = vmatmul.mubr.bf16.vlgmr.msra.gmra.mxu1 %v3321_v6 }
 0x889   :  { %v4136_v37 = vpop.eup %4135  ;;  %3409 = vmatpush1.bf16.msra.mxu0 %v7214_v15  ;;  %3452 = vmatpush1.bf16.msra.mxu1 %v7220_v13 }
 0x88a   :  { %v4138_v57 = vpop.eup %4137  ;;  %v3298_v43 = vadd.f32 0.5, %v3296_v38  ;;  %v3289_v56 = vmul.f32 0.5, %v4136_v37  ;;  %3410 = vmatprep.subr.bf16.mxu0 %v7226_v1  ;;  %3453 = vmatprep.subr.bf16.mxu1 %v7232_v24 }
 0x88b   :  { %v4140_v23 = vpop.eup %4139  ;;  %3440 = vmatprep.mubr.bf16.mxu0 %v7792_v60  ;;  %3483 = vmatprep.mubr.bf16.mxu1 %v7792_v60  ;;  %v3312_v59 = vmul.f32 %v4138_v57, %v3290_v21 }
 0x88c   :  { %v3310_v49 = vmul.f32 %v3298_v43, %v7250_v12  ;;  %v3291_v15 = vadd.f32 0.5, %v3289_v56  ;;  %v3297_v18 = vmul.f32 0.5, %v4140_v23  ;;  %v4142_v1 = vpop.eup %4141  ;;  %v8146_v12 = vld [vmem:[#allocation28_spill] sm:$0xff] }
 0x88d   :  { %3411 = vmatpush1.bf16.msra.mxu0 %v7241_v22  ;;  %3454 = vmatpush1.bf16.msra.mxu1 %v7247_v35  ;;  %v4144_v22 = vpop.eup %4143 }
 0x88e   :  { %v3314_v13 = vadd.f32 %v3312_v59, %v3310_v49  ;;  %v3299_v52 = vadd.f32 0.5, %v3297_v18  ;;  %3412 = vmatprep.subr.bf16.mxu0 %v7255_v48  ;;  %3455 = vmatprep.subr.bf16.mxu1 %v7261_v28  ;;  %v3313_v14 = vmul.f32 %v4142_v1, %v3291_v15  ;;  %v4146_v35 = vpop.eup %4145  ;;  %v8147_v48 = vld [vmem:[#allocation29_spill] sm:$0xff]  ;;  %v8148_v28 = vld [vmem:[#allocation30_spill] sm:$0xff] }
 0x890   :  { %v3311_v24 = vmul.f32 %v3299_v52, %v7278_v19  ;;  %4147 = vtanh.f32 %v3314_v13  ;;  %v3307_v19 = vmul.f32 0.5, %v4146_v35 }
 0x891   :  { %3413 = vmatpush1.bf16.msra.mxu0 %v7268_v33  ;;  %3456 = vmatpush1.bf16.msra.mxu1 %v7274_v29  ;;  %v8149_v33 = vld [vmem:[#allocation31_spill] sm:$0xff]  ;;  %v3306_v29 = vmul.f32 0.5, %v4144_v22 }
 0x892   :  { %v3315_v60 = vadd.f32 %v3313_v14, %v3311_v24  ;;  %3414 = vmatprep.subr.bf16.mxu0 %v7283_v10  ;;  %3457 = vmatprep.subr.bf16.mxu1 %v7289_v16  ;;  %v8150_v10 = vld [vmem:[#allocation32_spill] sm:$0xff]  ;;  %v8151_v16 = vld [vmem:[#allocation33_spill] sm:$0xff]  ;;  %v3309_v39 = vadd.f32 0.5, %v3307_v19 }
 0x894   :  { %4149 = vtanh.f32 %v3315_v60 }
 0x895   :  { %3415 = vmatpush1.bf16.msra.mxu0 %v7296_v46  ;;  %3458 = vmatpush1.bf16.msra.mxu1 %v7302_v30  ;;  %v8152_v46 = vld [vmem:[#allocation34_spill] sm:$0xff]  ;;  %v8153_v30 = vld [vmem:[#allocation35_spill] sm:$0xff] }
 0x896   :  { %3416 = vmatprep.subr.bf16.mxu0 %v7308_v44  ;;  %3459 = vmatprep.subr.bf16.mxu1 %v7314_v47  ;;  %v3308_v47 = vadd.f32 0.5, %v3306_v29 }
 0x899   :  { %3417 = vmatpush1.bf16.msra.mxu0 %v8146_v12  ;;  %3460 = vmatpush1.bf16.msra.mxu1 %v8147_v48 }
 0x89a   :  { %3418 = vmatprep.subr.bf16.mxu0 %v8148_v28  ;;  %3461 = vmatprep.subr.bf16.mxu1 %v8149_v33 }
 0x89d   :  { %3419 = vmatpush1.bf16.msra.mxu0 %v8150_v10  ;;  %3462 = vmatpush1.bf16.msra.mxu1 %v8151_v16  ;;  %v4148_v44 = vpop.eup %4147 }
 0x89e   :  { %3420 = vmatprep.subr.bf16.mxu0 %v8152_v46  ;;  %3463 = vmatprep.subr.bf16.mxu1 %v8153_v30  ;;  %v3318_v7 = vmul.f32 %v4148_v44, %v3308_v47 }
 0x8a1   :  { %v4150_v20 = vpop.eup %4149  ;;  %3421 = vmatpush1.bf16.msra.mxu0 %v8154_v45  ;;  %3464 = vmatpush1.bf16.msra.mxu1 %v7374_v25 }
 0x8a2   :  { %v3319_v42 = vmul.f32 %v4150_v20, %v3309_v39  ;;  %3422 = vmatprep.subr.bf16.mxu0 %v7380_v32  ;;  %3465 = vmatprep.subr.bf16.mxu1 %v7386_v34 }
 0x8a4   :  { %v3320_v50 = vpack.c.bf16 %v3319_v42, %v3318_v7 }
 0x8a5   :  { %3423 = vmatpush1.bf16.msra.mxu0 %v7392_v53  ;;  %3466 = vmatpush1.bf16.msra.mxu1 %v7398_v40 }
 0x8a8   :  { %3441 = vmatmul.mubr.bf16.vlgmr.msra.gmra.mxu0 %v3320_v50  ;;  %3484 = vmatmul.mubr.bf16.vlgmr.msra.gmra.mxu1 %v3320_v50 }
 0x948   :  { %v3356_v25 = vpop.f32.mrf.mxu0  ;;  %v3399_v32 = vpop.f32.mrf.mxu1 }
 0x94a   :  { %v3358_v34 = vpop.f32.mrf.mxu0  ;;  %v3401_v53 = vpop.f32.mrf.mxu1 }
 0x94c   :  { %v3360_v40 = vpop.f32.mrf.mxu0  ;;  %v3403_v55 = vpop.f32.mrf.mxu1 }
 0x94e   :  { %v3362_v3 = vpop.f32.mrf.mxu0  ;;  %v3405_v63 = vpop.f32.mrf.mxu1 }
 0x968   :  { %v3442_v51 = vpop.f32.mrf.mxu0  ;;  %v3485_v4 = vpop.f32.mrf.mxu1 }
 0x969   :  { %v3443_v62 = vadd.f32 %v3442_v51, %v3356_v25  ;;  %v3486_v11 = vadd.f32 %v3485_v4, %v3399_v32 }
 0x96a   :  { %v3444_v2 = vpop.f32.mrf.mxu0  ;;  %v3487_v36 = vpop.f32.mrf.mxu1 }
 0x96b   :  { %v3494_v27 = vadd.f32 %v3443_v62, %v5179_v41  ;;  %v3445_v31 = vadd.f32 %v3444_v2, %v3358_v34  ;;  %v3496_v57 = vadd.f32 %v3486_v11, %v5184_v54  ;;  %v3488_v18 = vadd.f32 %v3487_v36, %v3401_v53 }
 0x96c   :  { %v3446_v6 = vpop.f32.mrf.mxu0  ;;  %v3489_v38 = vpop.f32.mrf.mxu1 }
 0x96d   :  { %v3502_v17 = vmul.f32 0.5, %v3494_v27  ;;  %v3495_v5 = vadd.f32 %v3445_v31, %v5181_v61  ;;  %v3447_v21 = vadd.f32 %v3446_v6, %v3360_v40  ;;  %v3490_v49 = vadd.f32 %v3489_v38, %v3403_v55 }
 0x96e   :  { %v3448_v37 = vpop.f32.mrf.mxu0  ;;  %v3491_v52 = vpop.f32.mrf.mxu1  ;;  %v3497_v24 = vadd.f32 %v3488_v18, %v5191_v8 }
 0x96f   :  { %4151 = vtanh.f32 %v3502_v17  ;;  %v3510_v43 = vmul.f32 0.5, %v3495_v5  ;;  %v3449_v56 = vadd.f32 %v3448_v37, %v3362_v3  ;;  %v3498_v23 = vadd.f32 %v3447_v21, %v5179_v41 }
 0x970   :  { %v3500_v1 = vadd.f32 %v3490_v49, %v5184_v54  ;;  %v3492_v14 = vadd.f32 %v3491_v52, %v3405_v63  ;;  %v3520_v60 = vmul.f32 0.5, %v3497_v24  ;;  %v3703_v63 = vld [vmem:[#allocation6] ss:$0 sm:$0xff] }
 0x971   :  { %4153 = vtanh.f32 %v3510_v43  ;;  %v3499_v59 = vadd.f32 %v3449_v56, %v5181_v61  ;;  %v3503_v15 = vmul.f32 0.5, %v3498_v23 }
 0x972   :  { %4155 = vtanh.f32 %v3496_v57  ;;  %v3501_v41 = vadd.f32 %v3492_v14, %v5191_v8 }
 0x973   :  { %v3511_v13 = vmul.f32 0.5, %v3499_v59  ;;  %4157 = vtanh.f32 %v3503_v15 }
 0x974   :  { %v3521_v28 = vmul.f32 0.5, %v3501_v41 }
 0x975   :  { %4159 = vtanh.f32 %v3511_v13 }
 0x976   :  { %4161 = vtanh.f32 %v3500_v1 }
 0x977   :  { %4163 = vtanh.f32 %v3520_v60 }
 0x978   :  { %4165 = vtanh.f32 %v3521_v28 }
 0x97c   :  { %v4152_v22 = vpop.eup %4151 }
 0x97d   :  { %v3506_v35 = vmul.f32 0.5, %v4152_v22 }
 0x97e   :  { %v4154_v12 = vpop.eup %4153 }
 0x97f   :  { %v3508_v61 = vadd.f32 0.5, %v3506_v35  ;;  %v3514_v48 = vmul.f32 0.5, %v4154_v12  ;;  %v4156_v33 = vpop.eup %4155 }
 0x980   :  { %v4158_v29 = vpop.eup %4157 }
 0x981   :  { %v3516_v19 = vadd.f32 0.5, %v3514_v48  ;;  %v3507_v54 = vmul.f32 0.5, %v4158_v29  ;;  %v3530_v46 = vmul.f32 %v4156_v33, %v3508_v61 }
 0x982   :  { %v4160_v10 = vpop.eup %4159 }
 0x983   :  { %v3528_v16 = vmul.f32 %v3516_v19, %v7483_v58  ;;  %v3515_v30 = vmul.f32 0.5, %v4160_v10  ;;  %v3509_v44 = vadd.f32 0.5, %v3507_v54  ;;  %v4162_v39 = vpop.eup %4161  ;;  %v3702_v58 = vld [vmem:[%s7572_s5] ss:$0 sm:$0xff] }
 0x984   :  { %v4164_v42 = vpop.eup %4163 }
 0x985   :  { %v3532_v47 = vadd.f32 %v3530_v46, %v3528_v16  ;;  %v3517_v8 = vadd.f32 0.5, %v3515_v30  ;;  %v3531_v45 = vmul.f32 %v4162_v39, %v3509_v44  ;;  %v3524_v50 = vmul.f32 0.5, %v4164_v42  ;;  %v4166_v0 = vpop.eup %4165 }
 0x986   :  { %v3525_v25 = vmul.f32 0.5, %v4166_v0 }
 0x987   :  { %4167 = vtanh.f32 %v3532_v47  ;;  %v3529_v20 = vmul.f32 %v3517_v8, %v7493_v9  ;;  %v3526_v26 = vadd.f32 0.5, %v3524_v50 }
 0x988   :  { %v3527_v40 = vadd.f32 0.5, %v3525_v25 }
 0x989   :  { %v3533_v7 = vadd.f32 %v3531_v45, %v3529_v20 }
 0x98b   :  { %4169 = vtanh.f32 %v3533_v7 }
 0x994   :  { %v4168_v32 = vpop.eup %4167 }
 0x995   :  { %v3536_v34 = vmul.f32 %v4168_v32, %v3526_v26 }
 0x997   :  { %v3556_v53 = vmul.f32 %v3702_v58, %v3536_v34 }
 0x998   :  { %v4170_v55 = vpop.eup %4169 }
 0x999   :  { %3558 = vadd.xlane.f32.xlu0 %v3556_v53  ;;  %v3537_v3 = vmul.f32 %v4170_v55, %v3527_v40 }
 0x99b   :  { %v3557_v9 = vmul.f32 %v3702_v58, %v3537_v3 }
 0x99d   :  { %3560 = vadd.xlane.f32.xlu0 %v3557_v9 }
 0xa22   :  { %v3559_v51 = vpop.xlane.xlu0 %3558 }
 0xa23   :  { %v3569_v4 = vadd.f32 %v3703_v63, %v3559_v51 }
 0xa25   :  { %3572 = vst.msk [vmem:[%s7571_s7] sm:$0xff] %vm41_vm0, %v3569_v4 }
 0xa26   :  { %v3561_v62 = vpop.xlane.xlu0 %3560 }
 0xa27   :  { %v3570_v2 = vadd.f32 %v3703_v63, %v3561_v62 }
 0xa29   :  { %3573 = vst.msk [vmem:[%s7571_s7 + $0x8] sm:$0xff] %vm41_vm0, %v3570_v2 }

</bundles_post_ra>
